<compile_context>
chip_gen: v7x
topology: tpu7x:2x2x1
jax: 0.10.0
libtpu: 0.0.40
codegen_flags: <defaults>
</compile_context>

<pallas_src>
import functools

import jax
import jax.numpy as jnp
from jax.experimental import pallas as pl
from jax.experimental.pallas import tpu as pltpu


# ----------------------------- Pallas kernel -----------------------------

def _lstm_cell(gates, c_prev, H):
    # gates: (B, 4H) pre-activation, PyTorch order [i, f, g, o].
    sg = jax.nn.sigmoid(gates)
    tg = jnp.tanh(gates)
    i = sg[:, 0 * H:1 * H]
    f = sg[:, 1 * H:2 * H]
    g = tg[:, 2 * H:3 * H]
    o = sg[:, 3 * H:4 * H]
    c = f * c_prev + i * g
    h = o * jnp.tanh(c)
    return h, c


def _myrnn_fused_kernel(x_ref, w1_ref, b1_ref,
                        wih0_ref, whh0_ref, bg0_ref,
                        wih1_ref, whh1_ref, bg1_ref,
                        wih2_ref, whh2_ref, bg2_ref,
                        wh_ref, bh_ref,
                        out1_ref, out2_ref,
                        act_sc, xproj_sc, *, T, B, H):
    """Entire Myrnn forward, VMEM-resident.

    x_ref:    (T*B, D)                flattened input
    w_ih:     (Din, 8H)               fwd gates in lanes [:4H], rev gates in [4H:]
    w_hh_blk: (2H, 8H)                block-diagonal: [h_f || h_r] @ w_hh_blk
    bias:     (1, 8H)                 (b_ih + b_hh) per direction, pre-folded
    act_sc:   (T*B, 2H)  scratch      inter-layer activations (fwd lanes [:H], rev [H:])
    xproj_sc: (T*B, 8H)  scratch      batched all-timestep input projections
    """
    G = 4 * H

    def run_layer(xproj, whh_ref):
        # xproj: (T*B, 8H) value = batched input projection (+bias) for all timesteps
        # and both directions.  Stored once to VMEM scratch, then consumed per step.
        xproj_sc[...] = xproj

        def step(t, carry):
            hc, c_f, c_r = carry                      # hc = [h_f || h_r]  (B, 2H)
            recur = jnp.dot(hc, whh_ref[...],
                            preferred_element_type=jnp.float32)  # (B, 8H)
            rf = t * B
            rr = (T - 1 - t) * B
            gates_f = xproj_sc[pl.ds(rf, B), 0:G] + recur[:, 0:G]
            gates_r = xproj_sc[pl.ds(rr, B), G:2 * G] + recur[:, G:2 * G]
            h_f, c_f = _lstm_cell(gates_f, c_f, H)
            h_r, c_r = _lstm_cell(gates_r, c_r, H)
            # Write straight into the activation slab (output of this layer).
            act_sc[pl.ds(rf, B), 0:H] = h_f
            act_sc[pl.ds(rr, B), H:2 * H] = h_r
            return jnp.concatenate([h_f, h_r], axis=-1), c_f, c_r

        zero2 = jnp.zeros((B, 2 * H), jnp.float32)
        zero1 = jnp.zeros((B, H), jnp.float32)
        jax.lax.fori_loop(0, T, step, (zero2, zero1, zero1), unroll=True)

    # ---- Layer 0: Linear1 + ReLU fused directly into the batched gate projection.
    h0 = jnp.maximum(
        jnp.dot(x_ref[...], w1_ref[...], preferred_element_type=jnp.float32)
        + b1_ref[...], 0.0)                                          # (T*B, H)
    run_layer(jnp.dot(h0, wih0_ref[...], preferred_element_type=jnp.float32)
              + bg0_ref[...], whh0_ref)

    # ---- Layers 1 & 2: batched projection of the previous layer's (T*B, 2H) output.
    # (act_sc is fully read before the recurrence overwrites it.)
    # TODO(synk): nn.LSTM inter-layer dropout (p=0.5) is training-only; eval semantics (identity).
    run_layer(jnp.dot(act_sc[...], wih1_ref[...], preferred_element_type=jnp.float32)
              + bg1_ref[...], whh1_ref)
    run_layer(jnp.dot(act_sc[...], wih2_ref[...], preferred_element_type=jnp.float32)
              + bg2_ref[...], whh2_ref)

    # ---- Fused output heads: cols [0:2] = sigmoid(Linear2), col [2] = Linear3.
    heads = (jnp.dot(act_sc[...], wh_ref[...], preferred_element_type=jnp.float32)
             + bh_ref[...])                                          # (T*B, 3)
    out1_ref[...] = jax.nn.sigmoid(heads[:, 0:2]).astype(out1_ref.dtype)
    out2_ref[...] = heads[:, 2:3].astype(out2_ref.dtype)


def myrnn_forward(params, x):
    """x: (T, B, input_dim) -> (out1: (T, B, 2) sigmoid, out2: (T, B, 1))."""
    T, B, D = x.shape
    H = params["b1"].shape[1]          # static shape -> safe under jit
    G = 4 * H
    x_flat = x.reshape(T * B, D)

    l0, l1, l2 = params["lstm"]
    out1, out2 = pl.pallas_call(
        functools.partial(_myrnn_fused_kernel, T=T, B=B, H=H),
        out_shape=(jax.ShapeDtypeStruct((T * B, 2), jnp.float32),
                   jax.ShapeDtypeStruct((T * B, 1), jnp.float32)),
        grid=(1,),
        in_specs=[
            pl.BlockSpec((T * B, D), lambda i: (0, 0)),
            pl.BlockSpec((D, H), lambda i: (0, 0)),
            pl.BlockSpec((1, H), lambda i: (0, 0)),
            pl.BlockSpec((H, 2 * G), lambda i: (0, 0)),
            pl.BlockSpec((2 * H, 2 * G), lambda i: (0, 0)),
            pl.BlockSpec((1, 2 * G), lambda i: (0, 0)),
            pl.BlockSpec((2 * H, 2 * G), lambda i: (0, 0)),
            pl.BlockSpec((2 * H, 2 * G), lambda i: (0, 0)),
            pl.BlockSpec((1, 2 * G), lambda i: (0, 0)),
            pl.BlockSpec((2 * H, 2 * G), lambda i: (0, 0)),
            pl.BlockSpec((2 * H, 2 * G), lambda i: (0, 0)),
            pl.BlockSpec((1, 2 * G), lambda i: (0, 0)),
            pl.BlockSpec((2 * H, 3), lambda i: (0, 0)),
            pl.BlockSpec((1, 3), lambda i: (0, 0)),
        ],
        out_specs=(pl.BlockSpec((T * B, 2), lambda i: (0, 0)),
                   pl.BlockSpec((T * B, 1), lambda i: (0, 0))),
        scratch_shapes=[pltpu.VMEM((T * B, 2 * H), jnp.float32),    # inter-layer activations
                        pltpu.VMEM((T * B, 2 * G), jnp.float32)],   # batched gate projections
        compiler_params=pltpu.CompilerParams(
            dimension_semantics=("arbitrary",)),
    )(x_flat,
      params["w1_t"], params["b1"],
      l0["w_ih_t"], l0["w_hh_blk"], l0["bias"],
      l1["w_ih_t"], l1["w_hh_blk"], l1["bias"],
      l2["w_ih_t"], l2["w_hh_blk"], l2["bias"],
      params["w_heads_t"], params["b_heads"])

    return out1.reshape(T, B, 2), out2.reshape(T, B, 1)


# ----------------------------- Parameters -----------------------------

def init_raw_params(key, input_dim, hidden_size, num_layers=3):
    """PyTorch-layout parameters (used by the pure-JAX reference and then packed)."""
    H = hidden_size
    bound = 1.0 / float(H) ** 0.5

    def uni(k, shape):
        return jax.random.uniform(k, shape, jnp.float32, -bound, bound)

    keys = iter(jax.random.split(key, 64))
    raw = {
        "w1": uni(next(keys), (H, input_dim)),
        "b1": uni(next(keys), (H,)),
        "lstm": [],
        "w2": uni(next(keys), (2, 2 * H)),
        "b2": uni(next(keys), (2,)),
        "w3": uni(next(keys), (1, 2 * H)),
        "b3": uni(next(keys), (1,)),
    }
    for layer in range(num_layers):
        in_dim = H if layer == 0 else 2 * H
        dirs = []
        for _direction in range(2):
            dirs.append({
                "w_ih": uni(next(keys), (4 * H, in_dim)),
                "w_hh": uni(next(keys), (4 * H, H)),
                "b_ih": uni(next(keys), (4 * H,)),
                "b_hh": uni(next(keys), (4 * H,)),
            })
        raw["lstm"].append(dirs)
    return raw


def pack_params(raw, hidden_size):
    """Pre-pack weights into the fused kernel layout (done once, outside the kernel)."""
    H = hidden_size
    params = {"w1_t": raw["w1"].T, "b1": raw["b1"].reshape(1, H)}
    lstm = []
    for fwd, rev in raw["lstm"]:
        # Stack fwd||rev input projections along N -> (Din, 8H).
        w_ih_t = jnp.concatenate([fwd["w_ih"].T, rev["w_ih"].T], axis=1)
        # Block-diagonal recurrent weight -> (2H, 8H): [h_f || h_r] @ w_hh_blk.
        whh_blk = jnp.zeros((2 * H, 8 * H), jnp.float32)
        whh_blk = whh_blk.at[:H, :4 * H].set(fwd["w_hh"].T)
        whh_blk = whh_blk.at[H:, 4 * H:].set(rev["w_hh"].T)
        bias = jnp.concatenate([fwd["b_ih"] + fwd["b_hh"],
                                rev["b_ih"] + rev["b_hh"]]).reshape(1, 8 * H)
        lstm.append({"w_ih_t": w_ih_t, "w_hh_blk": whh_blk, "bias": bias})
    params["lstm"] = lstm
    # Fused heads: Linear2 (2H -> 2, sigmoid) || Linear3 (2H -> 1).
    params["w_heads_t"] = jnp.concatenate([raw["w2"].T, raw["w3"].T], axis=1)  # (2H, 3)
    params["b_heads"] = jnp.concatenate([raw["b2"], raw["b3"]]).reshape(1, 3)
    return params


# ----------------------------- Pure-JAX reference -----------------------------

def reference_forward(raw, x, hidden_size):
    H = hidden_size
    hp = jax.lax.Precision.HIGHEST
    out = jax.nn.relu(jnp.einsum("tbd,hd->tbh", x, raw["w1"], precision=hp) + raw["b1"])
    for fwd, rev in raw["lstm"]:
        def run_dir(p, xs):
            def cell(carry, x_t):
                h, c = carry
                gates = (jnp.dot(x_t, p["w_ih"].T, precision=hp)
                         + jnp.dot(h, p["w_hh"].T, precision=hp)
                         + p["b_ih"] + p["b_hh"])
                i, f, g, o = jnp.split(gates, 4, axis=-1)
                c = jax.nn.sigmoid(f) * c + jax.nn.sigmoid(i) * jnp.tanh(g)
                h = jax.nn.sigmoid(o) * jnp.tanh(c)
                return (h, c), h
            z = jnp.zeros((xs.shape[1], H), jnp.float32)
            _, hs = jax.lax.scan(cell, (z, z), xs)
            return hs
        h_f = run_dir(fwd, out)
        h_r = run_dir(rev, out[::-1])[::-1]
        out = jnp.concatenate([h_f, h_r], axis=-1)
    out1 = jax.nn.sigmoid(jnp.einsum("tbk,ok->tbo", out, raw["w2"], precision=hp) + raw["b2"])
    out2 = jnp.einsum("tbk,ok->tbo", out, raw["w3"], precision=hp) + raw["b3"]
    return out1, out2


# ----------------------------- Main -----------------------------

if __name__ == "__main__":
    T, B, input_dim, hidden_size = 8, 2, 16, 32
    key = jax.random.PRNGKey(0)
    k_param, k_data = jax.random.split(key)
    raw = init_raw_params(k_param, input_dim, hidden_size)
    params = pack_params(raw, hidden_size)
    x = jax.random.normal(k_data, (T, B, input_dim), jnp.float32)

    out1, out2 = jax.jit(myrnn_forward)(params, x)
    jax.block_until_ready((out1, out2))

    assert out1.shape == (T, B, 2) and out2.shape == (T, B, 1)
    assert bool(jnp.all((out1 >= 0.0) & (out1 <= 1.0)))

    ref1, ref2 = reference_forward(raw, x, hidden_size)
    assert bool(jnp.allclose(out1, ref1, atol=2e-2, rtol=2e-2))
    assert bool(jnp.allclose(out2, ref2, atol=2e-2, rtol=2e-2))
    print("KERNEL_OK")
</pallas_src>

<mosaic_0001>
module attributes {stable_mosaic.version = 11 : i64} {
  func.func @_myrnn_fused_kernel(%arg0: i32, %arg1: memref<16x16xf32, #tpu.memory_space<vmem>>, %arg2: memref<16x32xf32, #tpu.memory_space<vmem>>, %arg3: memref<1x32xf32, #tpu.memory_space<vmem>>, %arg4: memref<32x256xf32, #tpu.memory_space<vmem>>, %arg5: memref<64x256xf32, #tpu.memory_space<vmem>>, %arg6: memref<1x256xf32, #tpu.memory_space<vmem>>, %arg7: memref<64x256xf32, #tpu.memory_space<vmem>>, %arg8: memref<64x256xf32, #tpu.memory_space<vmem>>, %arg9: memref<1x256xf32, #tpu.memory_space<vmem>>, %arg10: memref<64x256xf32, #tpu.memory_space<vmem>>, %arg11: memref<64x256xf32, #tpu.memory_space<vmem>>, %arg12: memref<1x256xf32, #tpu.memory_space<vmem>>, %arg13: memref<64x3xf32, #tpu.memory_space<vmem>>, %arg14: memref<1x3xf32, #tpu.memory_space<vmem>>, %arg15: memref<16x2xf32, #tpu.memory_space<vmem>>, %arg16: memref<16x1xf32, #tpu.memory_space<vmem>>, %arg17: memref<16x64xf32, #tpu.memory_space<vmem>>, %arg18: memref<16x256xf32, #tpu.memory_space<vmem>>) attributes {dimension_semantics = [#tpu.dimension_semantics<arbitrary>], iteration_bounds = array<i64: 1>, scalar_prefetch = 0 : i64, scratch_operands = 2 : i64, tpu.core_type = #tpu.core_type<tc>, window_params = [{pipeline_mode = #tpu.pipeline_mode<synchronous>, transform_indices = @transform_0, window_bounds = array<i64: 16, 16>}, {pipeline_mode = #tpu.pipeline_mode<synchronous>, transform_indices = @transform_1, window_bounds = array<i64: 16, 32>}, {pipeline_mode = #tpu.pipeline_mode<synchronous>, transform_indices = @transform_2, window_bounds = array<i64: 1, 32>}, {pipeline_mode = #tpu.pipeline_mode<synchronous>, transform_indices = @transform_3, window_bounds = array<i64: 32, 256>}, {pipeline_mode = #tpu.pipeline_mode<synchronous>, transform_indices = @transform_4, window_bounds = array<i64: 64, 256>}, {pipeline_mode = #tpu.pipeline_mode<synchronous>, transform_indices = @transform_5, window_bounds = array<i64: 1, 256>}, {pipeline_mode = #tpu.pipeline_mode<synchronous>, transform_indices = @transform_6, window_bounds = array<i64: 64, 256>}, {pipeline_mode = #tpu.pipeline_mode<synchronous>, transform_indices = @transform_7, window_bounds = array<i64: 64, 256>}, {pipeline_mode = #tpu.pipeline_mode<synchronous>, transform_indices = @transform_8, window_bounds = array<i64: 1, 256>}, {pipeline_mode = #tpu.pipeline_mode<synchronous>, transform_indices = @transform_9, window_bounds = array<i64: 64, 256>}, {pipeline_mode = #tpu.pipeline_mode<synchronous>, transform_indices = @transform_10, window_bounds = array<i64: 64, 256>}, {pipeline_mode = #tpu.pipeline_mode<synchronous>, transform_indices = @transform_11, window_bounds = array<i64: 1, 256>}, {pipeline_mode = #tpu.pipeline_mode<synchronous>, transform_indices = @transform_12, window_bounds = array<i64: 64, 3>}, {pipeline_mode = #tpu.pipeline_mode<synchronous>, transform_indices = @transform_13, window_bounds = array<i64: 1, 3>}, {pipeline_mode = #tpu.pipeline_mode<synchronous>, transform_indices = @transform_14, window_bounds = array<i64: 16, 2>}, {pipeline_mode = #tpu.pipeline_mode<synchronous>, transform_indices = @transform_15, window_bounds = array<i64: 16, 1>}]} {
    %c0 = arith.constant 0 : index
    %c0_0 = arith.constant 0 : index
    %0 = vector.load %arg1[%c0, %c0_0] : memref<16x16xf32, #tpu.memory_space<vmem>>, vector<16x16xf32>
    %c0_1 = arith.constant 0 : index
    %c0_2 = arith.constant 0 : index
    %1 = vector.load %arg2[%c0_1, %c0_2] : memref<16x32xf32, #tpu.memory_space<vmem>>, vector<16x32xf32>
    %cst = arith.constant dense<0.000000e+00> : vector<16x32xf32>
    %2 = tpu.matmul %0, %1, %cst {dimension_numbers = #tpu.dot_dimension_numbers<[1], [0], [0], [1], [0, 0, 1, 1], [], []>} : vector<16x16xf32>, vector<16x32xf32>, vector<16x32xf32> -> vector<16x32xf32>
    %c0_3 = arith.constant 0 : index
    %c0_4 = arith.constant 0 : index
    %3 = vector.load %arg3[%c0_3, %c0_4] : memref<1x32xf32, #tpu.memory_space<vmem>>, vector<1x32xf32>
    %4 = vector.broadcast %3 : vector<1x32xf32> to vector<16x32xf32>
    %5 = arith.addf %2, %4 : vector<16x32xf32>
    %cst_5 = arith.constant 0.000000e+00 : f32
    %6 = vector.broadcast %cst_5 : f32 to vector<16x32xf32>
    %7 = arith.maximumf %5, %6 : vector<16x32xf32>
    %c0_6 = arith.constant 0 : index
    %c0_7 = arith.constant 0 : index
    %8 = vector.load %arg4[%c0_6, %c0_7] : memref<32x256xf32, #tpu.memory_space<vmem>>, vector<32x256xf32>
    %cst_8 = arith.constant dense<0.000000e+00> : vector<16x256xf32>
    %9 = tpu.matmul %7, %8, %cst_8 {dimension_numbers = #tpu.dot_dimension_numbers<[1], [0], [0], [1], [0, 0, 1, 1], [], []>} : vector<16x32xf32>, vector<32x256xf32>, vector<16x256xf32> -> vector<16x256xf32>
    %c0_9 = arith.constant 0 : index
    %c0_10 = arith.constant 0 : index
    %10 = vector.load %arg6[%c0_9, %c0_10] : memref<1x256xf32, #tpu.memory_space<vmem>>, vector<1x256xf32>
    %11 = vector.broadcast %10 : vector<1x256xf32> to vector<16x256xf32>
    %12 = arith.addf %9, %11 : vector<16x256xf32>
    %c0_11 = arith.constant 0 : index
    %c0_12 = arith.constant 0 : index
    %13 = vector.load %arg18[%c0_11, %c0_12] : memref<16x256xf32, #tpu.memory_space<vmem>>, vector<16x256xf32>
    tpu.vector_store %arg18[%c0_11, %c0_12], %12 {strides = array<i32>} : memref<16x256xf32, #tpu.memory_space<vmem>>, vector<16x256xf32>,
    %cst_13 = arith.constant 0.000000e+00 : f32
    %14 = vector.broadcast %cst_13 : f32 to vector<2x64xf32>
    %cst_14 = arith.constant 0.000000e+00 : f32
    %15 = vector.broadcast %cst_14 : f32 to vector<2x32xf32>
    %c0_i32 = arith.constant 0 : i32
    %c0_15 = arith.constant 0 : index
    %c0_16 = arith.constant 0 : index
    %16 = vector.load %arg5[%c0_15, %c0_16] : memref<64x256xf32, #tpu.memory_space<vmem>>, vector<64x256xf32>
    %cst_17 = arith.constant dense<0.000000e+00> : vector<2x256xf32>
    %17 = tpu.matmul %14, %16, %cst_17 {dimension_numbers = #tpu.dot_dimension_numbers<[1], [0], [0], [1], [0, 0, 1, 1], [], []>} : vector<2x64xf32>, vector<64x256xf32>, vector<2x256xf32> -> vector<2x256xf32>
    %c2_i32 = arith.constant 2 : i32
    %18 = arith.muli %c0_i32, %c2_i32 : i32
    %c7_i32 = arith.constant 7 : i32
    %19 = arith.subi %c7_i32, %c0_i32 : i32
    %c2_i32_18 = arith.constant 2 : i32
    %20 = arith.muli %19, %c2_i32_18 : i32
    %21 = arith.index_cast %18 : i32 to index
    %c0_19 = arith.constant 0 : index
    %22 = vector.load %arg18[%21, %c0_19] : memref<16x256xf32, #tpu.memory_space<vmem>>, vector<2x128xf32>
    %23 = vector.extract_strided_slice %17 {offsets = [0, 0], sizes = [2, 128], strides = [1, 1]} : vector<2x256xf32> to vector<2x128xf32>
    %24 = arith.addf %22, %23 : vector<2x128xf32>
    %25 = arith.index_cast %20 : i32 to index
    %c128 = arith.constant 128 : index
    %26 = vector.load %arg18[%25, %c128] : memref<16x256xf32, #tpu.memory_space<vmem>>, vector<2x128xf32>
    %27 = vector.extract_strided_slice %17 {offsets = [0, 128], sizes = [2, 128], strides = [1, 1]} : vector<2x256xf32> to vector<2x128xf32>
    %28 = arith.addf %26, %27 : vector<2x128xf32>
    %29 = arith.negf %24 : vector<2x128xf32>
    %30 = math.exp %29 : vector<2x128xf32>
    %cst_20 = arith.constant 1.000000e+00 : f32
    %31 = vector.broadcast %cst_20 : f32 to vector<2x128xf32>
    %32 = arith.addf %31, %30 : vector<2x128xf32>
    %33 = arith.divf %31, %32 : vector<2x128xf32>
    %34 = math.tanh %24 : vector<2x128xf32>
    %35 = vector.extract_strided_slice %33 {offsets = [0, 0], sizes = [2, 32], strides = [1, 1]} : vector<2x128xf32> to vector<2x32xf32>
    %36 = vector.extract_strided_slice %33 {offsets = [0, 32], sizes = [2, 32], strides = [1, 1]} : vector<2x128xf32> to vector<2x32xf32>
    %37 = vector.extract_strided_slice %34 {offsets = [0, 64], sizes = [2, 32], strides = [1, 1]} : vector<2x128xf32> to vector<2x32xf32>
    %38 = vector.extract_strided_slice %33 {offsets = [0, 96], sizes = [2, 32], strides = [1, 1]} : vector<2x128xf32> to vector<2x32xf32>
    %39 = arith.mulf %36, %15 : vector<2x32xf32>
    %40 = arith.mulf %35, %37 : vector<2x32xf32>
    %41 = arith.addf %39, %40 : vector<2x32xf32>
    %42 = math.tanh %41 : vector<2x32xf32>
    %43 = arith.mulf %38, %42 : vector<2x32xf32>
    %44 = arith.negf %28 : vector<2x128xf32>
    %45 = math.exp %44 : vector<2x128xf32>
    %cst_21 = arith.constant 1.000000e+00 : f32
    %46 = vector.broadcast %cst_21 : f32 to vector<2x128xf32>
    %47 = arith.addf %46, %45 : vector<2x128xf32>
    %48 = arith.divf %46, %47 : vector<2x128xf32>
    %49 = math.tanh %28 : vector<2x128xf32>
    %50 = vector.extract_strided_slice %48 {offsets = [0, 0], sizes = [2, 32], strides = [1, 1]} : vector<2x128xf32> to vector<2x32xf32>
    %51 = vector.extract_strided_slice %48 {offsets = [0, 32], sizes = [2, 32], strides = [1, 1]} : vector<2x128xf32> to vector<2x32xf32>
    %52 = vector.extract_strided_slice %49 {offsets = [0, 64], sizes = [2, 32], strides = [1, 1]} : vector<2x128xf32> to vector<2x32xf32>
    %53 = vector.extract_strided_slice %48 {offsets = [0, 96], sizes = [2, 32], strides = [1, 1]} : vector<2x128xf32> to vector<2x32xf32>
    %54 = arith.mulf %51, %15 : vector<2x32xf32>
    %55 = arith.mulf %50, %52 : vector<2x32xf32>
    %56 = arith.addf %54, %55 : vector<2x32xf32>
    %57 = math.tanh %56 : vector<2x32xf32>
    %58 = arith.mulf %53, %57 : vector<2x32xf32>
    %59 = arith.index_cast %18 : i32 to index
    %c0_22 = arith.constant 0 : index
    %60 = vector.load %arg17[%59, %c0_22] : memref<16x64xf32, #tpu.memory_space<vmem>>, vector<2x32xf32>
    tpu.vector_store %arg17[%59, %c0_22], %43 {strides = array<i32>} : memref<16x64xf32, #tpu.memory_space<vmem>>, vector<2x32xf32>,
    %61 = arith.index_cast %20 : i32 to index
    %c32 = arith.constant 32 : index
    %62 = vector.load %arg17[%61, %c32] : memref<16x64xf32, #tpu.memory_space<vmem>>, vector<2x32xf32>
    tpu.vector_store %arg17[%61, %c32], %58 {strides = array<i32>} : memref<16x64xf32, #tpu.memory_space<vmem>>, vector<2x32xf32>,
    %63 = tpu.concatenate %43, %58 in 1 : vector<2x32xf32>, vector<2x32xf32> -> vector<2x64xf32>
    %c1_i32 = arith.constant 1 : i32
    %c0_23 = arith.constant 0 : index
    %c0_24 = arith.constant 0 : index
    %64 = vector.load %arg5[%c0_23, %c0_24] : memref<64x256xf32, #tpu.memory_space<vmem>>, vector<64x256xf32>
    %cst_25 = arith.constant dense<0.000000e+00> : vector<2x256xf32>
    %65 = tpu.matmul %63, %64, %cst_25 {dimension_numbers = #tpu.dot_dimension_numbers<[1], [0], [0], [1], [0, 0, 1, 1], [], []>} : vector<2x64xf32>, vector<64x256xf32>, vector<2x256xf32> -> vector<2x256xf32>
    %c2_i32_26 = arith.constant 2 : i32
    %66 = arith.muli %c1_i32, %c2_i32_26 : i32
    %c7_i32_27 = arith.constant 7 : i32
    %67 = arith.subi %c7_i32_27, %c1_i32 : i32
    %c2_i32_28 = arith.constant 2 : i32
    %68 = arith.muli %67, %c2_i32_28 : i32
    %69 = arith.index_cast %66 : i32 to index
    %c0_29 = arith.constant 0 : index
    %70 = vector.load %arg18[%69, %c0_29] : memref<16x256xf32, #tpu.memory_space<vmem>>, vector<2x128xf32>
    %71 = vector.extract_strided_slice %65 {offsets = [0, 0], sizes = [2, 128], strides = [1, 1]} : vector<2x256xf32> to vector<2x128xf32>
    %72 = arith.addf %70, %71 : vector<2x128xf32>
    %73 = arith.index_cast %68 : i32 to index
    %c128_30 = arith.constant 128 : index
    %74 = vector.load %arg18[%73, %c128_30] : memref<16x256xf32, #tpu.memory_space<vmem>>, vector<2x128xf32>
    %75 = vector.extract_strided_slice %65 {offsets = [0, 128], sizes = [2, 128], strides = [1, 1]} : vector<2x256xf32> to vector<2x128xf32>
    %76 = arith.addf %74, %75 : vector<2x128xf32>
    %77 = arith.negf %72 : vector<2x128xf32>
    %78 = math.exp %77 : vector<2x128xf32>
    %cst_31 = arith.constant 1.000000e+00 : f32
    %79 = vector.broadcast %cst_31 : f32 to vector<2x128xf32>
    %80 = arith.addf %79, %78 : vector<2x128xf32>
    %81 = arith.divf %79, %80 : vector<2x128xf32>
    %82 = math.tanh %72 : vector<2x128xf32>
    %83 = vector.extract_strided_slice %81 {offsets = [0, 0], sizes = [2, 32], strides = [1, 1]} : vector<2x128xf32> to vector<2x32xf32>
    %84 = vector.extract_strided_slice %81 {offsets = [0, 32], sizes = [2, 32], strides = [1, 1]} : vector<2x128xf32> to vector<2x32xf32>
    %85 = vector.extract_strided_slice %82 {offsets = [0, 64], sizes = [2, 32], strides = [1, 1]} : vector<2x128xf32> to vector<2x32xf32>
    %86 = vector.extract_strided_slice %81 {offsets = [0, 96], sizes = [2, 32], strides = [1, 1]} : vector<2x128xf32> to vector<2x32xf32>
    %87 = arith.mulf %84, %41 : vector<2x32xf32>
    %88 = arith.mulf %83, %85 : vector<2x32xf32>
    %89 = arith.addf %87, %88 : vector<2x32xf32>
    %90 = math.tanh %89 : vector<2x32xf32>
    %91 = arith.mulf %86, %90 : vector<2x32xf32>
    %92 = arith.negf %76 : vector<2x128xf32>
    %93 = math.exp %92 : vector<2x128xf32>
    %cst_32 = arith.constant 1.000000e+00 : f32
    %94 = vector.broadcast %cst_32 : f32 to vector<2x128xf32>
    %95 = arith.addf %94, %93 : vector<2x128xf32>
    %96 = arith.divf %94, %95 : vector<2x128xf32>
    %97 = math.tanh %76 : vector<2x128xf32>
    %98 = vector.extract_strided_slice %96 {offsets = [0, 0], sizes = [2, 32], strides = [1, 1]} : vector<2x128xf32> to vector<2x32xf32>
    %99 = vector.extract_strided_slice %96 {offsets = [0, 32], sizes = [2, 32], strides = [1, 1]} : vector<2x128xf32> to vector<2x32xf32>
    %100 = vector.extract_strided_slice %97 {offsets = [0, 64], sizes = [2, 32], strides = [1, 1]} : vector<2x128xf32> to vector<2x32xf32>
    %101 = vector.extract_strided_slice %96 {offsets = [0, 96], sizes = [2, 32], strides = [1, 1]} : vector<2x128xf32> to vector<2x32xf32>
    %102 = arith.mulf %99, %56 : vector<2x32xf32>
    %103 = arith.mulf %98, %100 : vector<2x32xf32>
    %104 = arith.addf %102, %103 : vector<2x32xf32>
    %105 = math.tanh %104 : vector<2x32xf32>
    %106 = arith.mulf %101, %105 : vector<2x32xf32>
    %107 = arith.index_cast %66 : i32 to index
    %c0_33 = arith.constant 0 : index
    %108 = vector.load %arg17[%107, %c0_33] : memref<16x64xf32, #tpu.memory_space<vmem>>, vector<2x32xf32>
    tpu.vector_store %arg17[%107, %c0_33], %91 {strides = array<i32>} : memref<16x64xf32, #tpu.memory_space<vmem>>, vector<2x32xf32>,
    %109 = arith.index_cast %68 : i32 to index
    %c32_34 = arith.constant 32 : index
    %110 = vector.load %arg17[%109, %c32_34] : memref<16x64xf32, #tpu.memory_space<vmem>>, vector<2x32xf32>
    tpu.vector_store %arg17[%109, %c32_34], %106 {strides = array<i32>} : memref<16x64xf32, #tpu.memory_space<vmem>>, vector<2x32xf32>,
    %111 = tpu.concatenate %91, %106 in 1 : vector<2x32xf32>, vector<2x32xf32> -> vector<2x64xf32>
    %c2_i32_35 = arith.constant 2 : i32
    %c0_36 = arith.constant 0 : index
    %c0_37 = arith.constant 0 : index
    %112 = vector.load %arg5[%c0_36, %c0_37] : memref<64x256xf32, #tpu.memory_space<vmem>>, vector<64x256xf32>
    %cst_38 = arith.constant dense<0.000000e+00> : vector<2x256xf32>
    %113 = tpu.matmul %111, %112, %cst_38 {dimension_numbers = #tpu.dot_dimension_numbers<[1], [0], [0], [1], [0, 0, 1, 1], [], []>} : vector<2x64xf32>, vector<64x256xf32>, vector<2x256xf32> -> vector<2x256xf32>
    %c2_i32_39 = arith.constant 2 : i32
    %114 = arith.muli %c2_i32_35, %c2_i32_39 : i32
    %c7_i32_40 = arith.constant 7 : i32
    %115 = arith.subi %c7_i32_40, %c2_i32_35 : i32
    %c2_i32_41 = arith.constant 2 : i32
    %116 = arith.muli %115, %c2_i32_41 : i32
    %117 = arith.index_cast %114 : i32 to index
    %c0_42 = arith.constant 0 : index
    %118 = vector.load %arg18[%117, %c0_42] : memref<16x256xf32, #tpu.memory_space<vmem>>, vector<2x128xf32>
    %119 = vector.extract_strided_slice %113 {offsets = [0, 0], sizes = [2, 128], strides = [1, 1]} : vector<2x256xf32> to vector<2x128xf32>
    %120 = arith.addf %118, %119 : vector<2x128xf32>
    %121 = arith.index_cast %116 : i32 to index
    %c128_43 = arith.constant 128 : index
    %122 = vector.load %arg18[%121, %c128_43] : memref<16x256xf32, #tpu.memory_space<vmem>>, vector<2x128xf32>
    %123 = vector.extract_strided_slice %113 {offsets = [0, 128], sizes = [2, 128], strides = [1, 1]} : vector<2x256xf32> to vector<2x128xf32>
    %124 = arith.addf %122, %123 : vector<2x128xf32>
    %125 = arith.negf %120 : vector<2x128xf32>
    %126 = math.exp %125 : vector<2x128xf32>
    %cst_44 = arith.constant 1.000000e+00 : f32
    %127 = vector.broadcast %cst_44 : f32 to vector<2x128xf32>
    %128 = arith.addf %127, %126 : vector<2x128xf32>
    %129 = arith.divf %127, %128 : vector<2x128xf32>
    %130 = math.tanh %120 : vector<2x128xf32>
    %131 = vector.extract_strided_slice %129 {offsets = [0, 0], sizes = [2, 32], strides = [1, 1]} : vector<2x128xf32> to vector<2x32xf32>
    %132 = vector.extract_strided_slice %129 {offsets = [0, 32], sizes = [2, 32], strides = [1, 1]} : vector<2x128xf32> to vector<2x32xf32>
    %133 = vector.extract_strided_slice %130 {offsets = [0, 64], sizes = [2, 32], strides = [1, 1]} : vector<2x128xf32> to vector<2x32xf32>
    %134 = vector.extract_strided_slice %129 {offsets = [0, 96], sizes = [2, 32], strides = [1, 1]} : vector<2x128xf32> to vector<2x32xf32>
    %135 = arith.mulf %132, %89 : vector<2x32xf32>
    %136 = arith.mulf %131, %133 : vector<2x32xf32>
    %137 = arith.addf %135, %136 : vector<2x32xf32>
    %138 = math.tanh %137 : vector<2x32xf32>
    %139 = arith.mulf %134, %138 : vector<2x32xf32>
    %140 = arith.negf %124 : vector<2x128xf32>
    %141 = math.exp %140 : vector<2x128xf32>
    %cst_45 = arith.constant 1.000000e+00 : f32
    %142 = vector.broadcast %cst_45 : f32 to vector<2x128xf32>
    %143 = arith.addf %142, %141 : vector<2x128xf32>
    %144 = arith.divf %142, %143 : vector<2x128xf32>
    %145 = math.tanh %124 : vector<2x128xf32>
    %146 = vector.extract_strided_slice %144 {offsets = [0, 0], sizes = [2, 32], strides = [1, 1]} : vector<2x128xf32> to vector<2x32xf32>
    %147 = vector.extract_strided_slice %144 {offsets = [0, 32], sizes = [2, 32], strides = [1, 1]} : vector<2x128xf32> to vector<2x32xf32>
    %148 = vector.extract_strided_slice %145 {offsets = [0, 64], sizes = [2, 32], strides = [1, 1]} : vector<2x128xf32> to vector<2x32xf32>
    %149 = vector.extract_strided_slice %144 {offsets = [0, 96], sizes = [2, 32], strides = [1, 1]} : vector<2x128xf32> to vector<2x32xf32>
    %150 = arith.mulf %147, %104 : vector<2x32xf32>
    %151 = arith.mulf %146, %148 : vector<2x32xf32>
    %152 = arith.addf %150, %151 : vector<2x32xf32>
    %153 = math.tanh %152 : vector<2x32xf32>
    %154 = arith.mulf %149, %153 : vector<2x32xf32>
    %155 = arith.index_cast %114 : i32 to index
    %c0_46 = arith.constant 0 : index
    %156 = vector.load %arg17[%155, %c0_46] : memref<16x64xf32, #tpu.memory_space<vmem>>, vector<2x32xf32>
    tpu.vector_store %arg17[%155, %c0_46], %139 {strides = array<i32>} : memref<16x64xf32, #tpu.memory_space<vmem>>, vector<2x32xf32>,
    %157 = arith.index_cast %116 : i32 to index
    %c32_47 = arith.constant 32 : index
    %158 = vector.load %arg17[%157, %c32_47] : memref<16x64xf32, #tpu.memory_space<vmem>>, vector<2x32xf32>
    tpu.vector_store %arg17[%157, %c32_47], %154 {strides = array<i32>} : memref<16x64xf32, #tpu.memory_space<vmem>>, vector<2x32xf32>,
    %159 = tpu.concatenate %139, %154 in 1 : vector<2x32xf32>, vector<2x32xf32> -> vector<2x64xf32>
    %c3_i32 = arith.constant 3 : i32
    %c0_48 = arith.constant 0 : index
    %c0_49 = arith.constant 0 : index
    %160 = vector.load %arg5[%c0_48, %c0_49] : memref<64x256xf32, #tpu.memory_space<vmem>>, vector<64x256xf32>
    %cst_50 = arith.constant dense<0.000000e+00> : vector<2x256xf32>
    %161 = tpu.matmul %159, %160, %cst_50 {dimension_numbers = #tpu.dot_dimension_numbers<[1], [0], [0], [1], [0, 0, 1, 1], [], []>} : vector<2x64xf32>, vector<64x256xf32>, vector<2x256xf32> -> vector<2x256xf32>
    %c2_i32_51 = arith.constant 2 : i32
    %162 = arith.muli %c3_i32, %c2_i32_51 : i32
    %c7_i32_52 = arith.constant 7 : i32
    %163 = arith.subi %c7_i32_52, %c3_i32 : i32
    %c2_i32_53 = arith.constant 2 : i32
    %164 = arith.muli %163, %c2_i32_53 : i32
    %165 = arith.index_cast %162 : i32 to index
    %c0_54 = arith.constant 0 : index
    %166 = vector.load %arg18[%165, %c0_54] : memref<16x256xf32, #tpu.memory_space<vmem>>, vector<2x128xf32>
    %167 = vector.extract_strided_slice %161 {offsets = [0, 0], sizes = [2, 128], strides = [1, 1]} : vector<2x256xf32> to vector<2x128xf32>
    %168 = arith.addf %166, %167 : vector<2x128xf32>
    %169 = arith.index_cast %164 : i32 to index
    %c128_55 = arith.constant 128 : index
    %170 = vector.load %arg18[%169, %c128_55] : memref<16x256xf32, #tpu.memory_space<vmem>>, vector<2x128xf32>
    %171 = vector.extract_strided_slice %161 {offsets = [0, 128], sizes = [2, 128], strides = [1, 1]} : vector<2x256xf32> to vector<2x128xf32>
    %172 = arith.addf %170, %171 : vector<2x128xf32>
    %173 = arith.negf %168 : vector<2x128xf32>
    %174 = math.exp %173 : vector<2x128xf32>
    %cst_56 = arith.constant 1.000000e+00 : f32
    %175 = vector.broadcast %cst_56 : f32 to vector<2x128xf32>
    %176 = arith.addf %175, %174 : vector<2x128xf32>
    %177 = arith.divf %175, %176 : vector<2x128xf32>
    %178 = math.tanh %168 : vector<2x128xf32>
    %179 = vector.extract_strided_slice %177 {offsets = [0, 0], sizes = [2, 32], strides = [1, 1]} : vector<2x128xf32> to vector<2x32xf32>
    %180 = vector.extract_strided_slice %177 {offsets = [0, 32], sizes = [2, 32], strides = [1, 1]} : vector<2x128xf32> to vector<2x32xf32>
    %181 = vector.extract_strided_slice %178 {offsets = [0, 64], sizes = [2, 32], strides = [1, 1]} : vector<2x128xf32> to vector<2x32xf32>
    %182 = vector.extract_strided_slice %177 {offsets = [0, 96], sizes = [2, 32], strides = [1, 1]} : vector<2x128xf32> to vector<2x32xf32>
    %183 = arith.mulf %180, %137 : vector<2x32xf32>
    %184 = arith.mulf %179, %181 : vector<2x32xf32>
    %185 = arith.addf %183, %184 : vector<2x32xf32>
    %186 = math.tanh %185 : vector<2x32xf32>
    %187 = arith.mulf %182, %186 : vector<2x32xf32>
    %188 = arith.negf %172 : vector<2x128xf32>
    %189 = math.exp %188 : vector<2x128xf32>
    %cst_57 = arith.constant 1.000000e+00 : f32
    %190 = vector.broadcast %cst_57 : f32 to vector<2x128xf32>
    %191 = arith.addf %190, %189 : vector<2x128xf32>
    %192 = arith.divf %190, %191 : vector<2x128xf32>
    %193 = math.tanh %172 : vector<2x128xf32>
    %194 = vector.extract_strided_slice %192 {offsets = [0, 0], sizes = [2, 32], strides = [1, 1]} : vector<2x128xf32> to vector<2x32xf32>
    %195 = vector.extract_strided_slice %192 {offsets = [0, 32], sizes = [2, 32], strides = [1, 1]} : vector<2x128xf32> to vector<2x32xf32>
    %196 = vector.extract_strided_slice %193 {offsets = [0, 64], sizes = [2, 32], strides = [1, 1]} : vector<2x128xf32> to vector<2x32xf32>
    %197 = vector.extract_strided_slice %192 {offsets = [0, 96], sizes = [2, 32], strides = [1, 1]} : vector<2x128xf32> to vector<2x32xf32>
    %198 = arith.mulf %195, %152 : vector<2x32xf32>
    %199 = arith.mulf %194, %196 : vector<2x32xf32>
    %200 = arith.addf %198, %199 : vector<2x32xf32>
    %201 = math.tanh %200 : vector<2x32xf32>
    %202 = arith.mulf %197, %201 : vector<2x32xf32>
    %203 = arith.index_cast %162 : i32 to index
    %c0_58 = arith.constant 0 : index
    %204 = vector.load %arg17[%203, %c0_58] : memref<16x64xf32, #tpu.memory_space<vmem>>, vector<2x32xf32>
    tpu.vector_store %arg17[%203, %c0_58], %187 {strides = array<i32>} : memref<16x64xf32, #tpu.memory_space<vmem>>, vector<2x32xf32>,
    %205 = arith.index_cast %164 : i32 to index
    %c32_59 = arith.constant 32 : index
    %206 = vector.load %arg17[%205, %c32_59] : memref<16x64xf32, #tpu.memory_space<vmem>>, vector<2x32xf32>
    tpu.vector_store %arg17[%205, %c32_59], %202 {strides = array<i32>} : memref<16x64xf32, #tpu.memory_space<vmem>>, vector<2x32xf32>,
    %207 = tpu.concatenate %187, %202 in 1 : vector<2x32xf32>, vector<2x32xf32> -> vector<2x64xf32>
    %c4_i32 = arith.constant 4 : i32
    %c0_60 = arith.constant 0 : index
    %c0_61 = arith.constant 0 : index
    %208 = vector.load %arg5[%c0_60, %c0_61] : memref<64x256xf32, #tpu.memory_space<vmem>>, vector<64x256xf32>
    %cst_62 = arith.constant dense<0.000000e+00> : vector<2x256xf32>
    %209 = tpu.matmul %207, %208, %cst_62 {dimension_numbers = #tpu.dot_dimension_numbers<[1], [0], [0], [1], [0, 0, 1, 1], [], []>} : vector<2x64xf32>, vector<64x256xf32>, vector<2x256xf32> -> vector<2x256xf32>
    %c2_i32_63 = arith.constant 2 : i32
    %210 = arith.muli %c4_i32, %c2_i32_63 : i32
    %c7_i32_64 = arith.constant 7 : i32
    %211 = arith.subi %c7_i32_64, %c4_i32 : i32
    %c2_i32_65 = arith.constant 2 : i32
    %212 = arith.muli %211, %c2_i32_65 : i32
    %213 = arith.index_cast %210 : i32 to index
    %c0_66 = arith.constant 0 : index
    %214 = vector.load %arg18[%213, %c0_66] : memref<16x256xf32, #tpu.memory_space<vmem>>, vector<2x128xf32>
    %215 = vector.extract_strided_slice %209 {offsets = [0, 0], sizes = [2, 128], strides = [1, 1]} : vector<2x256xf32> to vector<2x128xf32>
    %216 = arith.addf %214, %215 : vector<2x128xf32>
    %217 = arith.index_cast %212 : i32 to index
    %c128_67 = arith.constant 128 : index
    %218 = vector.load %arg18[%217, %c128_67] : memref<16x256xf32, #tpu.memory_space<vmem>>, vector<2x128xf32>
    %219 = vector.extract_strided_slice %209 {offsets = [0, 128], sizes = [2, 128], strides = [1, 1]} : vector<2x256xf32> to vector<2x128xf32>
    %220 = arith.addf %218, %219 : vector<2x128xf32>
    %221 = arith.negf %216 : vector<2x128xf32>
    %222 = math.exp %221 : vector<2x128xf32>
    %cst_68 = arith.constant 1.000000e+00 : f32
    %223 = vector.broadcast %cst_68 : f32 to vector<2x128xf32>
    %224 = arith.addf %223, %222 : vector<2x128xf32>
    %225 = arith.divf %223, %224 : vector<2x128xf32>
    %226 = math.tanh %216 : vector<2x128xf32>
    %227 = vector.extract_strided_slice %225 {offsets = [0, 0], sizes = [2, 32], strides = [1, 1]} : vector<2x128xf32> to vector<2x32xf32>
    %228 = vector.extract_strided_slice %225 {offsets = [0, 32], sizes = [2, 32], strides = [1, 1]} : vector<2x128xf32> to vector<2x32xf32>
    %229 = vector.extract_strided_slice %226 {offsets = [0, 64], sizes = [2, 32], strides = [1, 1]} : vector<2x128xf32> to vector<2x32xf32>
    %230 = vector.extract_strided_slice %225 {offsets = [0, 96], sizes = [2, 32], strides = [1, 1]} : vector<2x128xf32> to vector<2x32xf32>
    %231 = arith.mulf %228, %185 : vector<2x32xf32>
    %232 = arith.mulf %227, %229 : vector<2x32xf32>
    %233 = arith.addf %231, %232 : vector<2x32xf32>
    %234 = math.tanh %233 : vector<2x32xf32>
    %235 = arith.mulf %230, %234 : vector<2x32xf32>
    %236 = arith.negf %220 : vector<2x128xf32>
    %237 = math.exp %236 : vector<2x128xf32>
    %cst_69 = arith.constant 1.000000e+00 : f32
    %238 = vector.broadcast %cst_69 : f32 to vector<2x128xf32>
    %239 = arith.addf %238, %237 : vector<2x128xf32>
    %240 = arith.divf %238, %239 : vector<2x128xf32>
    %241 = math.tanh %220 : vector<2x128xf32>
    %242 = vector.extract_strided_slice %240 {offsets = [0, 0], sizes = [2, 32], strides = [1, 1]} : vector<2x128xf32> to vector<2x32xf32>
    %243 = vector.extract_strided_slice %240 {offsets = [0, 32], sizes = [2, 32], strides = [1, 1]} : vector<2x128xf32> to vector<2x32xf32>
    %244 = vector.extract_strided_slice %241 {offsets = [0, 64], sizes = [2, 32], strides = [1, 1]} : vector<2x128xf32> to vector<2x32xf32>
    %245 = vector.extract_strided_slice %240 {offsets = [0, 96], sizes = [2, 32], strides = [1, 1]} : vector<2x128xf32> to vector<2x32xf32>
    %246 = arith.mulf %243, %200 : vector<2x32xf32>
    %247 = arith.mulf %242, %244 : vector<2x32xf32>
    %248 = arith.addf %246, %247 : vector<2x32xf32>
    %249 = math.tanh %248 : vector<2x32xf32>
    %250 = arith.mulf %245, %249 : vector<2x32xf32>
    %251 = arith.index_cast %210 : i32 to index
    %c0_70 = arith.constant 0 : index
    %252 = vector.load %arg17[%251, %c0_70] : memref<16x64xf32, #tpu.memory_space<vmem>>, vector<2x32xf32>
    tpu.vector_store %arg17[%251, %c0_70], %235 {strides = array<i32>} : memref<16x64xf32, #tpu.memory_space<vmem>>, vector<2x32xf32>,
    %253 = arith.index_cast %212 : i32 to index
    %c32_71 = arith.constant 32 : index
    %254 = vector.load %arg17[%253, %c32_71] : memref<16x64xf32, #tpu.memory_space<vmem>>, vector<2x32xf32>
    tpu.vector_store %arg17[%253, %c32_71], %250 {strides = array<i32>} : memref<16x64xf32, #tpu.memory_space<vmem>>, vector<2x32xf32>,
    %255 = tpu.concatenate %235, %250 in 1 : vector<2x32xf32>, vector<2x32xf32> -> vector<2x64xf32>
    %c5_i32 = arith.constant 5 : i32
    %c0_72 = arith.constant 0 : index
    %c0_73 = arith.constant 0 : index
    %256 = vector.load %arg5[%c0_72, %c0_73] : memref<64x256xf32, #tpu.memory_space<vmem>>, vector<64x256xf32>
    %cst_74 = arith.constant dense<0.000000e+00> : vector<2x256xf32>
    %257 = tpu.matmul %255, %256, %cst_74 {dimension_numbers = #tpu.dot_dimension_numbers<[1], [0], [0], [1], [0, 0, 1, 1], [], []>} : vector<2x64xf32>, vector<64x256xf32>, vector<2x256xf32> -> vector<2x256xf32>
    %c2_i32_75 = arith.constant 2 : i32
    %258 = arith.muli %c5_i32, %c2_i32_75 : i32
    %c7_i32_76 = arith.constant 7 : i32
    %259 = arith.subi %c7_i32_76, %c5_i32 : i32
    %c2_i32_77 = arith.constant 2 : i32
    %260 = arith.muli %259, %c2_i32_77 : i32
    %261 = arith.index_cast %258 : i32 to index
    %c0_78 = arith.constant 0 : index
    %262 = vector.load %arg18[%261, %c0_78] : memref<16x256xf32, #tpu.memory_space<vmem>>, vector<2x128xf32>
    %263 = vector.extract_strided_slice %257 {offsets = [0, 0], sizes = [2, 128], strides = [1, 1]} : vector<2x256xf32> to vector<2x128xf32>
    %264 = arith.addf %262, %263 : vector<2x128xf32>
    %265 = arith.index_cast %260 : i32 to index
    %c128_79 = arith.constant 128 : index
    %266 = vector.load %arg18[%265, %c128_79] : memref<16x256xf32, #tpu.memory_space<vmem>>, vector<2x128xf32>
    %267 = vector.extract_strided_slice %257 {offsets = [0, 128], sizes = [2, 128], strides = [1, 1]} : vector<2x256xf32> to vector<2x128xf32>
    %268 = arith.addf %266, %267 : vector<2x128xf32>
    %269 = arith.negf %264 : vector<2x128xf32>
    %270 = math.exp %269 : vector<2x128xf32>
    %cst_80 = arith.constant 1.000000e+00 : f32
    %271 = vector.broadcast %cst_80 : f32 to vector<2x128xf32>
    %272 = arith.addf %271, %270 : vector<2x128xf32>
    %273 = arith.divf %271, %272 : vector<2x128xf32>
    %274 = math.tanh %264 : vector<2x128xf32>
    %275 = vector.extract_strided_slice %273 {offsets = [0, 0], sizes = [2, 32], strides = [1, 1]} : vector<2x128xf32> to vector<2x32xf32>
    %276 = vector.extract_strided_slice %273 {offsets = [0, 32], sizes = [2, 32], strides = [1, 1]} : vector<2x128xf32> to vector<2x32xf32>
    %277 = vector.extract_strided_slice %274 {offsets = [0, 64], sizes = [2, 32], strides = [1, 1]} : vector<2x128xf32> to vector<2x32xf32>
    %278 = vector.extract_strided_slice %273 {offsets = [0, 96], sizes = [2, 32], strides = [1, 1]} : vector<2x128xf32> to vector<2x32xf32>
    %279 = arith.mulf %276, %233 : vector<2x32xf32>
    %280 = arith.mulf %275, %277 : vector<2x32xf32>
    %281 = arith.addf %279, %280 : vector<2x32xf32>
    %282 = math.tanh %281 : vector<2x32xf32>
    %283 = arith.mulf %278, %282 : vector<2x32xf32>
    %284 = arith.negf %268 : vector<2x128xf32>
    %285 = math.exp %284 : vector<2x128xf32>
    %cst_81 = arith.constant 1.000000e+00 : f32
    %286 = vector.broadcast %cst_81 : f32 to vector<2x128xf32>
    %287 = arith.addf %286, %285 : vector<2x128xf32>
    %288 = arith.divf %286, %287 : vector<2x128xf32>
    %289 = math.tanh %268 : vector<2x128xf32>
    %290 = vector.extract_strided_slice %288 {offsets = [0, 0], sizes = [2, 32], strides = [1, 1]} : vector<2x128xf32> to vector<2x32xf32>
    %291 = vector.extract_strided_slice %288 {offsets = [0, 32], sizes = [2, 32], strides = [1, 1]} : vector<2x128xf32> to vector<2x32xf32>
    %292 = vector.extract_strided_slice %289 {offsets = [0, 64], sizes = [2, 32], strides = [1, 1]} : vector<2x128xf32> to vector<2x32xf32>
    %293 = vector.extract_strided_slice %288 {offsets = [0, 96], sizes = [2, 32], strides = [1, 1]} : vector<2x128xf32> to vector<2x32xf32>
    %294 = arith.mulf %291, %248 : vector<2x32xf32>
    %295 = arith.mulf %290, %292 : vector<2x32xf32>
    %296 = arith.addf %294, %295 : vector<2x32xf32>
    %297 = math.tanh %296 : vector<2x32xf32>
    %298 = arith.mulf %293, %297 : vector<2x32xf32>
    %299 = arith.index_cast %258 : i32 to index
    %c0_82 = arith.constant 0 : index
    %300 = vector.load %arg17[%299, %c0_82] : memref<16x64xf32, #tpu.memory_space<vmem>>, vector<2x32xf32>
    tpu.vector_store %arg17[%299, %c0_82], %283 {strides = array<i32>} : memref<16x64xf32, #tpu.memory_space<vmem>>, vector<2x32xf32>,
    %301 = arith.index_cast %260 : i32 to index
    %c32_83 = arith.constant 32 : index
    %302 = vector.load %arg17[%301, %c32_83] : memref<16x64xf32, #tpu.memory_space<vmem>>, vector<2x32xf32>
    tpu.vector_store %arg17[%301, %c32_83], %298 {strides = array<i32>} : memref<16x64xf32, #tpu.memory_space<vmem>>, vector<2x32xf32>,
    %303 = tpu.concatenate %283, %298 in 1 : vector<2x32xf32>, vector<2x32xf32> -> vector<2x64xf32>
    %c6_i32 = arith.constant 6 : i32
    %c0_84 = arith.constant 0 : index
    %c0_85 = arith.constant 0 : index
    %304 = vector.load %arg5[%c0_84, %c0_85] : memref<64x256xf32, #tpu.memory_space<vmem>>, vector<64x256xf32>
    %cst_86 = arith.constant dense<0.000000e+00> : vector<2x256xf32>
    %305 = tpu.matmul %303, %304, %cst_86 {dimension_numbers = #tpu.dot_dimension_numbers<[1], [0], [0], [1], [0, 0, 1, 1], [], []>} : vector<2x64xf32>, vector<64x256xf32>, vector<2x256xf32> -> vector<2x256xf32>
    %c2_i32_87 = arith.constant 2 : i32
    %306 = arith.muli %c6_i32, %c2_i32_87 : i32
    %c7_i32_88 = arith.constant 7 : i32
    %307 = arith.subi %c7_i32_88, %c6_i32 : i32
    %c2_i32_89 = arith.constant 2 : i32
    %308 = arith.muli %307, %c2_i32_89 : i32
    %309 = arith.index_cast %306 : i32 to index
    %c0_90 = arith.constant 0 : index
    %310 = vector.load %arg18[%309, %c0_90] : memref<16x256xf32, #tpu.memory_space<vmem>>, vector<2x128xf32>
    %311 = vector.extract_strided_slice %305 {offsets = [0, 0], sizes = [2, 128], strides = [1, 1]} : vector<2x256xf32> to vector<2x128xf32>
    %312 = arith.addf %310, %311 : vector<2x128xf32>
    %313 = arith.index_cast %308 : i32 to index
    %c128_91 = arith.constant 128 : index
    %314 = vector.load %arg18[%313, %c128_91] : memref<16x256xf32, #tpu.memory_space<vmem>>, vector<2x128xf32>
    %315 = vector.extract_strided_slice %305 {offsets = [0, 128], sizes = [2, 128], strides = [1, 1]} : vector<2x256xf32> to vector<2x128xf32>
    %316 = arith.addf %314, %315 : vector<2x128xf32>
    %317 = arith.negf %312 : vector<2x128xf32>
    %318 = math.exp %317 : vector<2x128xf32>
    %cst_92 = arith.constant 1.000000e+00 : f32
    %319 = vector.broadcast %cst_92 : f32 to vector<2x128xf32>
    %320 = arith.addf %319, %318 : vector<2x128xf32>
    %321 = arith.divf %319, %320 : vector<2x128xf32>
    %322 = math.tanh %312 : vector<2x128xf32>
    %323 = vector.extract_strided_slice %321 {offsets = [0, 0], sizes = [2, 32], strides = [1, 1]} : vector<2x128xf32> to vector<2x32xf32>
    %324 = vector.extract_strided_slice %321 {offsets = [0, 32], sizes = [2, 32], strides = [1, 1]} : vector<2x128xf32> to vector<2x32xf32>
    %325 = vector.extract_strided_slice %322 {offsets = [0, 64], sizes = [2, 32], strides = [1, 1]} : vector<2x128xf32> to vector<2x32xf32>
    %326 = vector.extract_strided_slice %321 {offsets = [0, 96], sizes = [2, 32], strides = [1, 1]} : vector<2x128xf32> to vector<2x32xf32>
    %327 = arith.mulf %324, %281 : vector<2x32xf32>
    %328 = arith.mulf %323, %325 : vector<2x32xf32>
    %329 = arith.addf %327, %328 : vector<2x32xf32>
    %330 = math.tanh %329 : vector<2x32xf32>
    %331 = arith.mulf %326, %330 : vector<2x32xf32>
    %332 = arith.negf %316 : vector<2x128xf32>
    %333 = math.exp %332 : vector<2x128xf32>
    %cst_93 = arith.constant 1.000000e+00 : f32
    %334 = vector.broadcast %cst_93 : f32 to vector<2x128xf32>
    %335 = arith.addf %334, %333 : vector<2x128xf32>
    %336 = arith.divf %334, %335 : vector<2x128xf32>
    %337 = math.tanh %316 : vector<2x128xf32>
    %338 = vector.extract_strided_slice %336 {offsets = [0, 0], sizes = [2, 32], strides = [1, 1]} : vector<2x128xf32> to vector<2x32xf32>
    %339 = vector.extract_strided_slice %336 {offsets = [0, 32], sizes = [2, 32], strides = [1, 1]} : vector<2x128xf32> to vector<2x32xf32>
    %340 = vector.extract_strided_slice %337 {offsets = [0, 64], sizes = [2, 32], strides = [1, 1]} : vector<2x128xf32> to vector<2x32xf32>
    %341 = vector.extract_strided_slice %336 {offsets = [0, 96], sizes = [2, 32], strides = [1, 1]} : vector<2x128xf32> to vector<2x32xf32>
    %342 = arith.mulf %339, %296 : vector<2x32xf32>
    %343 = arith.mulf %338, %340 : vector<2x32xf32>
    %344 = arith.addf %342, %343 : vector<2x32xf32>
    %345 = math.tanh %344 : vector<2x32xf32>
    %346 = arith.mulf %341, %345 : vector<2x32xf32>
    %347 = arith.index_cast %306 : i32 to index
    %c0_94 = arith.constant 0 : index
    %348 = vector.load %arg17[%347, %c0_94] : memref<16x64xf32, #tpu.memory_space<vmem>>, vector<2x32xf32>
    tpu.vector_store %arg17[%347, %c0_94], %331 {strides = array<i32>} : memref<16x64xf32, #tpu.memory_space<vmem>>, vector<2x32xf32>,
    %349 = arith.index_cast %308 : i32 to index
    %c32_95 = arith.constant 32 : index
    %350 = vector.load %arg17[%349, %c32_95] : memref<16x64xf32, #tpu.memory_space<vmem>>, vector<2x32xf32>
    tpu.vector_store %arg17[%349, %c32_95], %346 {strides = array<i32>} : memref<16x64xf32, #tpu.memory_space<vmem>>, vector<2x32xf32>,
    %351 = tpu.concatenate %331, %346 in 1 : vector<2x32xf32>, vector<2x32xf32> -> vector<2x64xf32>
    %c7_i32_96 = arith.constant 7 : i32
    %c0_97 = arith.constant 0 : index
    %c0_98 = arith.constant 0 : index
    %352 = vector.load %arg5[%c0_97, %c0_98] : memref<64x256xf32, #tpu.memory_space<vmem>>, vector<64x256xf32>
    %cst_99 = arith.constant dense<0.000000e+00> : vector<2x256xf32>
    %353 = tpu.matmul %351, %352, %cst_99 {dimension_numbers = #tpu.dot_dimension_numbers<[1], [0], [0], [1], [0, 0, 1, 1], [], []>} : vector<2x64xf32>, vector<64x256xf32>, vector<2x256xf32> -> vector<2x256xf32>
    %c2_i32_100 = arith.constant 2 : i32
    %354 = arith.muli %c7_i32_96, %c2_i32_100 : i32
    %c7_i32_101 = arith.constant 7 : i32
    %355 = arith.subi %c7_i32_101, %c7_i32_96 : i32
    %c2_i32_102 = arith.constant 2 : i32
    %356 = arith.muli %355, %c2_i32_102 : i32
    %357 = arith.index_cast %354 : i32 to index
    %c0_103 = arith.constant 0 : index
    %358 = vector.load %arg18[%357, %c0_103] : memref<16x256xf32, #tpu.memory_space<vmem>>, vector<2x128xf32>
    %359 = vector.extract_strided_slice %353 {offsets = [0, 0], sizes = [2, 128], strides = [1, 1]} : vector<2x256xf32> to vector<2x128xf32>
    %360 = arith.addf %358, %359 : vector<2x128xf32>
    %361 = arith.index_cast %356 : i32 to index
    %c128_104 = arith.constant 128 : index
    %362 = vector.load %arg18[%361, %c128_104] : memref<16x256xf32, #tpu.memory_space<vmem>>, vector<2x128xf32>
    %363 = vector.extract_strided_slice %353 {offsets = [0, 128], sizes = [2, 128], strides = [1, 1]} : vector<2x256xf32> to vector<2x128xf32>
    %364 = arith.addf %362, %363 : vector<2x128xf32>
    %365 = arith.negf %360 : vector<2x128xf32>
    %366 = math.exp %365 : vector<2x128xf32>
    %cst_105 = arith.constant 1.000000e+00 : f32
    %367 = vector.broadcast %cst_105 : f32 to vector<2x128xf32>
    %368 = arith.addf %367, %366 : vector<2x128xf32>
    %369 = arith.divf %367, %368 : vector<2x128xf32>
    %370 = math.tanh %360 : vector<2x128xf32>
    %371 = vector.extract_strided_slice %369 {offsets = [0, 0], sizes = [2, 32], strides = [1, 1]} : vector<2x128xf32> to vector<2x32xf32>
    %372 = vector.extract_strided_slice %369 {offsets = [0, 32], sizes = [2, 32], strides = [1, 1]} : vector<2x128xf32> to vector<2x32xf32>
    %373 = vector.extract_strided_slice %370 {offsets = [0, 64], sizes = [2, 32], strides = [1, 1]} : vector<2x128xf32> to vector<2x32xf32>
    %374 = vector.extract_strided_slice %369 {offsets = [0, 96], sizes = [2, 32], strides = [1, 1]} : vector<2x128xf32> to vector<2x32xf32>
    %375 = arith.mulf %372, %329 : vector<2x32xf32>
    %376 = arith.mulf %371, %373 : vector<2x32xf32>
    %377 = arith.addf %375, %376 : vector<2x32xf32>
    %378 = math.tanh %377 : vector<2x32xf32>
    %379 = arith.mulf %374, %378 : vector<2x32xf32>
    %380 = arith.negf %364 : vector<2x128xf32>
    %381 = math.exp %380 : vector<2x128xf32>
    %cst_106 = arith.constant 1.000000e+00 : f32
    %382 = vector.broadcast %cst_106 : f32 to vector<2x128xf32>
    %383 = arith.addf %382, %381 : vector<2x128xf32>
    %384 = arith.divf %382, %383 : vector<2x128xf32>
    %385 = math.tanh %364 : vector<2x128xf32>
    %386 = vector.extract_strided_slice %384 {offsets = [0, 0], sizes = [2, 32], strides = [1, 1]} : vector<2x128xf32> to vector<2x32xf32>
    %387 = vector.extract_strided_slice %384 {offsets = [0, 32], sizes = [2, 32], strides = [1, 1]} : vector<2x128xf32> to vector<2x32xf32>
    %388 = vector.extract_strided_slice %385 {offsets = [0, 64], sizes = [2, 32], strides = [1, 1]} : vector<2x128xf32> to vector<2x32xf32>
    %389 = vector.extract_strided_slice %384 {offsets = [0, 96], sizes = [2, 32], strides = [1, 1]} : vector<2x128xf32> to vector<2x32xf32>
    %390 = arith.mulf %387, %344 : vector<2x32xf32>
    %391 = arith.mulf %386, %388 : vector<2x32xf32>
    %392 = arith.addf %390, %391 : vector<2x32xf32>
    %393 = math.tanh %392 : vector<2x32xf32>
    %394 = arith.mulf %389, %393 : vector<2x32xf32>
    %395 = arith.index_cast %354 : i32 to index
    %c0_107 = arith.constant 0 : index
    %396 = vector.load %arg17[%395, %c0_107] : memref<16x64xf32, #tpu.memory_space<vmem>>, vector<2x32xf32>
    tpu.vector_store %arg17[%395, %c0_107], %379 {strides = array<i32>} : memref<16x64xf32, #tpu.memory_space<vmem>>, vector<2x32xf32>,
    %397 = arith.index_cast %356 : i32 to index
    %c32_108 = arith.constant 32 : index
    %398 = vector.load %arg17[%397, %c32_108] : memref<16x64xf32, #tpu.memory_space<vmem>>, vector<2x32xf32>
    tpu.vector_store %arg17[%397, %c32_108], %394 {strides = array<i32>} : memref<16x64xf32, #tpu.memory_space<vmem>>, vector<2x32xf32>,
    %399 = tpu.concatenate %379, %394 in 1 : vector<2x32xf32>, vector<2x32xf32> -> vector<2x64xf32>
    %c8_i32 = arith.constant 8 : i32
    %c0_109 = arith.constant 0 : index
    %c0_110 = arith.constant 0 : index
    %400 = vector.load %arg17[%c0_109, %c0_110] : memref<16x64xf32, #tpu.memory_space<vmem>>, vector<16x64xf32>
    %c0_111 = arith.constant 0 : index
    %c0_112 = arith.constant 0 : index
    %401 = vector.load %arg7[%c0_111, %c0_112] : memref<64x256xf32, #tpu.memory_space<vmem>>, vector<64x256xf32>
    %cst_113 = arith.constant dense<0.000000e+00> : vector<16x256xf32>
    %402 = tpu.matmul %400, %401, %cst_113 {dimension_numbers = #tpu.dot_dimension_numbers<[1], [0], [0], [1], [0, 0, 1, 1], [], []>} : vector<16x64xf32>, vector<64x256xf32>, vector<16x256xf32> -> vector<16x256xf32>
    %c0_114 = arith.constant 0 : index
    %c0_115 = arith.constant 0 : index
    %403 = vector.load %arg9[%c0_114, %c0_115] : memref<1x256xf32, #tpu.memory_space<vmem>>, vector<1x256xf32>
    %404 = vector.broadcast %403 : vector<1x256xf32> to vector<16x256xf32>
    %405 = arith.addf %402, %404 : vector<16x256xf32>
    %c0_116 = arith.constant 0 : index
    %c0_117 = arith.constant 0 : index
    %406 = vector.load %arg18[%c0_116, %c0_117] : memref<16x256xf32, #tpu.memory_space<vmem>>, vector<16x256xf32>
    tpu.vector_store %arg18[%c0_116, %c0_117], %405 {strides = array<i32>} : memref<16x256xf32, #tpu.memory_space<vmem>>, vector<16x256xf32>,
    %cst_118 = arith.constant 0.000000e+00 : f32
    %407 = vector.broadcast %cst_118 : f32 to vector<2x64xf32>
    %cst_119 = arith.constant 0.000000e+00 : f32
    %408 = vector.broadcast %cst_119 : f32 to vector<2x32xf32>
    %c0_i32_120 = arith.constant 0 : i32
    %c0_121 = arith.constant 0 : index
    %c0_122 = arith.constant 0 : index
    %409 = vector.load %arg8[%c0_121, %c0_122] : memref<64x256xf32, #tpu.memory_space<vmem>>, vector<64x256xf32>
    %cst_123 = arith.constant dense<0.000000e+00> : vector<2x256xf32>
    %410 = tpu.matmul %407, %409, %cst_123 {dimension_numbers = #tpu.dot_dimension_numbers<[1], [0], [0], [1], [0, 0, 1, 1], [], []>} : vector<2x64xf32>, vector<64x256xf32>, vector<2x256xf32> -> vector<2x256xf32>
    %c2_i32_124 = arith.constant 2 : i32
    %411 = arith.muli %c0_i32_120, %c2_i32_124 : i32
    %c7_i32_125 = arith.constant 7 : i32
    %412 = arith.subi %c7_i32_125, %c0_i32_120 : i32
    %c2_i32_126 = arith.constant 2 : i32
    %413 = arith.muli %412, %c2_i32_126 : i32
    %414 = arith.index_cast %411 : i32 to index
    %c0_127 = arith.constant 0 : index
    %415 = vector.load %arg18[%414, %c0_127] : memref<16x256xf32, #tpu.memory_space<vmem>>, vector<2x128xf32>
    %416 = vector.extract_strided_slice %410 {offsets = [0, 0], sizes = [2, 128], strides = [1, 1]} : vector<2x256xf32> to vector<2x128xf32>
    %417 = arith.addf %415, %416 : vector<2x128xf32>
    %418 = arith.index_cast %413 : i32 to index
    %c128_128 = arith.constant 128 : index
    %419 = vector.load %arg18[%418, %c128_128] : memref<16x256xf32, #tpu.memory_space<vmem>>, vector<2x128xf32>
    %420 = vector.extract_strided_slice %410 {offsets = [0, 128], sizes = [2, 128], strides = [1, 1]} : vector<2x256xf32> to vector<2x128xf32>
    %421 = arith.addf %419, %420 : vector<2x128xf32>
    %422 = arith.negf %417 : vector<2x128xf32>
    %423 = math.exp %422 : vector<2x128xf32>
    %cst_129 = arith.constant 1.000000e+00 : f32
    %424 = vector.broadcast %cst_129 : f32 to vector<2x128xf32>
    %425 = arith.addf %424, %423 : vector<2x128xf32>
    %426 = arith.divf %424, %425 : vector<2x128xf32>
    %427 = math.tanh %417 : vector<2x128xf32>
    %428 = vector.extract_strided_slice %426 {offsets = [0, 0], sizes = [2, 32], strides = [1, 1]} : vector<2x128xf32> to vector<2x32xf32>
    %429 = vector.extract_strided_slice %426 {offsets = [0, 32], sizes = [2, 32], strides = [1, 1]} : vector<2x128xf32> to vector<2x32xf32>
    %430 = vector.extract_strided_slice %427 {offsets = [0, 64], sizes = [2, 32], strides = [1, 1]} : vector<2x128xf32> to vector<2x32xf32>
    %431 = vector.extract_strided_slice %426 {offsets = [0, 96], sizes = [2, 32], strides = [1, 1]} : vector<2x128xf32> to vector<2x32xf32>
    %432 = arith.mulf %429, %408 : vector<2x32xf32>
    %433 = arith.mulf %428, %430 : vector<2x32xf32>
    %434 = arith.addf %432, %433 : vector<2x32xf32>
    %435 = math.tanh %434 : vector<2x32xf32>
    %436 = arith.mulf %431, %435 : vector<2x32xf32>
    %437 = arith.negf %421 : vector<2x128xf32>
    %438 = math.exp %437 : vector<2x128xf32>
    %cst_130 = arith.constant 1.000000e+00 : f32
    %439 = vector.broadcast %cst_130 : f32 to vector<2x128xf32>
    %440 = arith.addf %439, %438 : vector<2x128xf32>
    %441 = arith.divf %439, %440 : vector<2x128xf32>
    %442 = math.tanh %421 : vector<2x128xf32>
    %443 = vector.extract_strided_slice %441 {offsets = [0, 0], sizes = [2, 32], strides = [1, 1]} : vector<2x128xf32> to vector<2x32xf32>
    %444 = vector.extract_strided_slice %441 {offsets = [0, 32], sizes = [2, 32], strides = [1, 1]} : vector<2x128xf32> to vector<2x32xf32>
    %445 = vector.extract_strided_slice %442 {offsets = [0, 64], sizes = [2, 32], strides = [1, 1]} : vector<2x128xf32> to vector<2x32xf32>
    %446 = vector.extract_strided_slice %441 {offsets = [0, 96], sizes = [2, 32], strides = [1, 1]} : vector<2x128xf32> to vector<2x32xf32>
    %447 = arith.mulf %444, %408 : vector<2x32xf32>
    %448 = arith.mulf %443, %445 : vector<2x32xf32>
    %449 = arith.addf %447, %448 : vector<2x32xf32>
    %450 = math.tanh %449 : vector<2x32xf32>
    %451 = arith.mulf %446, %450 : vector<2x32xf32>
    %452 = arith.index_cast %411 : i32 to index
    %c0_131 = arith.constant 0 : index
    %453 = vector.load %arg17[%452, %c0_131] : memref<16x64xf32, #tpu.memory_space<vmem>>, vector<2x32xf32>
    tpu.vector_store %arg17[%452, %c0_131], %436 {strides = array<i32>} : memref<16x64xf32, #tpu.memory_space<vmem>>, vector<2x32xf32>,
    %454 = arith.index_cast %413 : i32 to index
    %c32_132 = arith.constant 32 : index
    %455 = vector.load %arg17[%454, %c32_132] : memref<16x64xf32, #tpu.memory_space<vmem>>, vector<2x32xf32>
    tpu.vector_store %arg17[%454, %c32_132], %451 {strides = array<i32>} : memref<16x64xf32, #tpu.memory_space<vmem>>, vector<2x32xf32>,
    %456 = tpu.concatenate %436, %451 in 1 : vector<2x32xf32>, vector<2x32xf32> -> vector<2x64xf32>
    %c1_i32_133 = arith.constant 1 : i32
    %c0_134 = arith.constant 0 : index
    %c0_135 = arith.constant 0 : index
    %457 = vector.load %arg8[%c0_134, %c0_135] : memref<64x256xf32, #tpu.memory_space<vmem>>, vector<64x256xf32>
    %cst_136 = arith.constant dense<0.000000e+00> : vector<2x256xf32>
    %458 = tpu.matmul %456, %457, %cst_136 {dimension_numbers = #tpu.dot_dimension_numbers<[1], [0], [0], [1], [0, 0, 1, 1], [], []>} : vector<2x64xf32>, vector<64x256xf32>, vector<2x256xf32> -> vector<2x256xf32>
    %c2_i32_137 = arith.constant 2 : i32
    %459 = arith.muli %c1_i32_133, %c2_i32_137 : i32
    %c7_i32_138 = arith.constant 7 : i32
    %460 = arith.subi %c7_i32_138, %c1_i32_133 : i32
    %c2_i32_139 = arith.constant 2 : i32
    %461 = arith.muli %460, %c2_i32_139 : i32
    %462 = arith.index_cast %459 : i32 to index
    %c0_140 = arith.constant 0 : index
    %463 = vector.load %arg18[%462, %c0_140] : memref<16x256xf32, #tpu.memory_space<vmem>>, vector<2x128xf32>
    %464 = vector.extract_strided_slice %458 {offsets = [0, 0], sizes = [2, 128], strides = [1, 1]} : vector<2x256xf32> to vector<2x128xf32>
    %465 = arith.addf %463, %464 : vector<2x128xf32>
    %466 = arith.index_cast %461 : i32 to index
    %c128_141 = arith.constant 128 : index
    %467 = vector.load %arg18[%466, %c128_141] : memref<16x256xf32, #tpu.memory_space<vmem>>, vector<2x128xf32>
    %468 = vector.extract_strided_slice %458 {offsets = [0, 128], sizes = [2, 128], strides = [1, 1]} : vector<2x256xf32> to vector<2x128xf32>
    %469 = arith.addf %467, %468 : vector<2x128xf32>
    %470 = arith.negf %465 : vector<2x128xf32>
    %471 = math.exp %470 : vector<2x128xf32>
    %cst_142 = arith.constant 1.000000e+00 : f32
    %472 = vector.broadcast %cst_142 : f32 to vector<2x128xf32>
    %473 = arith.addf %472, %471 : vector<2x128xf32>
    %474 = arith.divf %472, %473 : vector<2x128xf32>
    %475 = math.tanh %465 : vector<2x128xf32>
    %476 = vector.extract_strided_slice %474 {offsets = [0, 0], sizes = [2, 32], strides = [1, 1]} : vector<2x128xf32> to vector<2x32xf32>
    %477 = vector.extract_strided_slice %474 {offsets = [0, 32], sizes = [2, 32], strides = [1, 1]} : vector<2x128xf32> to vector<2x32xf32>
    %478 = vector.extract_strided_slice %475 {offsets = [0, 64], sizes = [2, 32], strides = [1, 1]} : vector<2x128xf32> to vector<2x32xf32>
    %479 = vector.extract_strided_slice %474 {offsets = [0, 96], sizes = [2, 32], strides = [1, 1]} : vector<2x128xf32> to vector<2x32xf32>
    %480 = arith.mulf %477, %434 : vector<2x32xf32>
    %481 = arith.mulf %476, %478 : vector<2x32xf32>
    %482 = arith.addf %480, %481 : vector<2x32xf32>
    %483 = math.tanh %482 : vector<2x32xf32>
    %484 = arith.mulf %479, %483 : vector<2x32xf32>
    %485 = arith.negf %469 : vector<2x128xf32>
    %486 = math.exp %485 : vector<2x128xf32>
    %cst_143 = arith.constant 1.000000e+00 : f32
    %487 = vector.broadcast %cst_143 : f32 to vector<2x128xf32>
    %488 = arith.addf %487, %486 : vector<2x128xf32>
    %489 = arith.divf %487, %488 : vector<2x128xf32>
    %490 = math.tanh %469 : vector<2x128xf32>
    %491 = vector.extract_strided_slice %489 {offsets = [0, 0], sizes = [2, 32], strides = [1, 1]} : vector<2x128xf32> to vector<2x32xf32>
    %492 = vector.extract_strided_slice %489 {offsets = [0, 32], sizes = [2, 32], strides = [1, 1]} : vector<2x128xf32> to vector<2x32xf32>
    %493 = vector.extract_strided_slice %490 {offsets = [0, 64], sizes = [2, 32], strides = [1, 1]} : vector<2x128xf32> to vector<2x32xf32>
    %494 = vector.extract_strided_slice %489 {offsets = [0, 96], sizes = [2, 32], strides = [1, 1]} : vector<2x128xf32> to vector<2x32xf32>
    %495 = arith.mulf %492, %449 : vector<2x32xf32>
    %496 = arith.mulf %491, %493 : vector<2x32xf32>
    %497 = arith.addf %495, %496 : vector<2x32xf32>
    %498 = math.tanh %497 : vector<2x32xf32>
    %499 = arith.mulf %494, %498 : vector<2x32xf32>
    %500 = arith.index_cast %459 : i32 to index
    %c0_144 = arith.constant 0 : index
    %501 = vector.load %arg17[%500, %c0_144] : memref<16x64xf32, #tpu.memory_space<vmem>>, vector<2x32xf32>
    tpu.vector_store %arg17[%500, %c0_144], %484 {strides = array<i32>} : memref<16x64xf32, #tpu.memory_space<vmem>>, vector<2x32xf32>,
    %502 = arith.index_cast %461 : i32 to index
    %c32_145 = arith.constant 32 : index
    %503 = vector.load %arg17[%502, %c32_145] : memref<16x64xf32, #tpu.memory_space<vmem>>, vector<2x32xf32>
    tpu.vector_store %arg17[%502, %c32_145], %499 {strides = array<i32>} : memref<16x64xf32, #tpu.memory_space<vmem>>, vector<2x32xf32>,
    %504 = tpu.concatenate %484, %499 in 1 : vector<2x32xf32>, vector<2x32xf32> -> vector<2x64xf32>
    %c2_i32_146 = arith.constant 2 : i32
    %c0_147 = arith.constant 0 : index
    %c0_148 = arith.constant 0 : index
    %505 = vector.load %arg8[%c0_147, %c0_148] : memref<64x256xf32, #tpu.memory_space<vmem>>, vector<64x256xf32>
    %cst_149 = arith.constant dense<0.000000e+00> : vector<2x256xf32>
    %506 = tpu.matmul %504, %505, %cst_149 {dimension_numbers = #tpu.dot_dimension_numbers<[1], [0], [0], [1], [0, 0, 1, 1], [], []>} : vector<2x64xf32>, vector<64x256xf32>, vector<2x256xf32> -> vector<2x256xf32>
    %c2_i32_150 = arith.constant 2 : i32
    %507 = arith.muli %c2_i32_146, %c2_i32_150 : i32
    %c7_i32_151 = arith.constant 7 : i32
    %508 = arith.subi %c7_i32_151, %c2_i32_146 : i32
    %c2_i32_152 = arith.constant 2 : i32
    %509 = arith.muli %508, %c2_i32_152 : i32
    %510 = arith.index_cast %507 : i32 to index
    %c0_153 = arith.constant 0 : index
    %511 = vector.load %arg18[%510, %c0_153] : memref<16x256xf32, #tpu.memory_space<vmem>>, vector<2x128xf32>
    %512 = vector.extract_strided_slice %506 {offsets = [0, 0], sizes = [2, 128], strides = [1, 1]} : vector<2x256xf32> to vector<2x128xf32>
    %513 = arith.addf %511, %512 : vector<2x128xf32>
    %514 = arith.index_cast %509 : i32 to index
    %c128_154 = arith.constant 128 : index
    %515 = vector.load %arg18[%514, %c128_154] : memref<16x256xf32, #tpu.memory_space<vmem>>, vector<2x128xf32>
    %516 = vector.extract_strided_slice %506 {offsets = [0, 128], sizes = [2, 128], strides = [1, 1]} : vector<2x256xf32> to vector<2x128xf32>
    %517 = arith.addf %515, %516 : vector<2x128xf32>
    %518 = arith.negf %513 : vector<2x128xf32>
    %519 = math.exp %518 : vector<2x128xf32>
    %cst_155 = arith.constant 1.000000e+00 : f32
    %520 = vector.broadcast %cst_155 : f32 to vector<2x128xf32>
    %521 = arith.addf %520, %519 : vector<2x128xf32>
    %522 = arith.divf %520, %521 : vector<2x128xf32>
    %523 = math.tanh %513 : vector<2x128xf32>
    %524 = vector.extract_strided_slice %522 {offsets = [0, 0], sizes = [2, 32], strides = [1, 1]} : vector<2x128xf32> to vector<2x32xf32>
    %525 = vector.extract_strided_slice %522 {offsets = [0, 32], sizes = [2, 32], strides = [1, 1]} : vector<2x128xf32> to vector<2x32xf32>
    %526 = vector.extract_strided_slice %523 {offsets = [0, 64], sizes = [2, 32], strides = [1, 1]} : vector<2x128xf32> to vector<2x32xf32>
    %527 = vector.extract_strided_slice %522 {offsets = [0, 96], sizes = [2, 32], strides = [1, 1]} : vector<2x128xf32> to vector<2x32xf32>
    %528 = arith.mulf %525, %482 : vector<2x32xf32>
    %529 = arith.mulf %524, %526 : vector<2x32xf32>
    %530 = arith.addf %528, %529 : vector<2x32xf32>
    %531 = math.tanh %530 : vector<2x32xf32>
    %532 = arith.mulf %527, %531 : vector<2x32xf32>
    %533 = arith.negf %517 : vector<2x128xf32>
    %534 = math.exp %533 : vector<2x128xf32>
    %cst_156 = arith.constant 1.000000e+00 : f32
    %535 = vector.broadcast %cst_156 : f32 to vector<2x128xf32>
    %536 = arith.addf %535, %534 : vector<2x128xf32>
    %537 = arith.divf %535, %536 : vector<2x128xf32>
    %538 = math.tanh %517 : vector<2x128xf32>
    %539 = vector.extract_strided_slice %537 {offsets = [0, 0], sizes = [2, 32], strides = [1, 1]} : vector<2x128xf32> to vector<2x32xf32>
    %540 = vector.extract_strided_slice %537 {offsets = [0, 32], sizes = [2, 32], strides = [1, 1]} : vector<2x128xf32> to vector<2x32xf32>
    %541 = vector.extract_strided_slice %538 {offsets = [0, 64], sizes = [2, 32], strides = [1, 1]} : vector<2x128xf32> to vector<2x32xf32>
    %542 = vector.extract_strided_slice %537 {offsets = [0, 96], sizes = [2, 32], strides = [1, 1]} : vector<2x128xf32> to vector<2x32xf32>
    %543 = arith.mulf %540, %497 : vector<2x32xf32>
    %544 = arith.mulf %539, %541 : vector<2x32xf32>
    %545 = arith.addf %543, %544 : vector<2x32xf32>
    %546 = math.tanh %545 : vector<2x32xf32>
    %547 = arith.mulf %542, %546 : vector<2x32xf32>
    %548 = arith.index_cast %507 : i32 to index
    %c0_157 = arith.constant 0 : index
    %549 = vector.load %arg17[%548, %c0_157] : memref<16x64xf32, #tpu.memory_space<vmem>>, vector<2x32xf32>
    tpu.vector_store %arg17[%548, %c0_157], %532 {strides = array<i32>} : memref<16x64xf32, #tpu.memory_space<vmem>>, vector<2x32xf32>,
    %550 = arith.index_cast %509 : i32 to index
    %c32_158 = arith.constant 32 : index
    %551 = vector.load %arg17[%550, %c32_158] : memref<16x64xf32, #tpu.memory_space<vmem>>, vector<2x32xf32>
    tpu.vector_store %arg17[%550, %c32_158], %547 {strides = array<i32>} : memref<16x64xf32, #tpu.memory_space<vmem>>, vector<2x32xf32>,
    %552 = tpu.concatenate %532, %547 in 1 : vector<2x32xf32>, vector<2x32xf32> -> vector<2x64xf32>
    %c3_i32_159 = arith.constant 3 : i32
    %c0_160 = arith.constant 0 : index
    %c0_161 = arith.constant 0 : index
    %553 = vector.load %arg8[%c0_160, %c0_161] : memref<64x256xf32, #tpu.memory_space<vmem>>, vector<64x256xf32>
    %cst_162 = arith.constant dense<0.000000e+00> : vector<2x256xf32>
    %554 = tpu.matmul %552, %553, %cst_162 {dimension_numbers = #tpu.dot_dimension_numbers<[1], [0], [0], [1], [0, 0, 1, 1], [], []>} : vector<2x64xf32>, vector<64x256xf32>, vector<2x256xf32> -> vector<2x256xf32>
    %c2_i32_163 = arith.constant 2 : i32
    %555 = arith.muli %c3_i32_159, %c2_i32_163 : i32
    %c7_i32_164 = arith.constant 7 : i32
    %556 = arith.subi %c7_i32_164, %c3_i32_159 : i32
    %c2_i32_165 = arith.constant 2 : i32
    %557 = arith.muli %556, %c2_i32_165 : i32
    %558 = arith.index_cast %555 : i32 to index
    %c0_166 = arith.constant 0 : index
    %559 = vector.load %arg18[%558, %c0_166] : memref<16x256xf32, #tpu.memory_space<vmem>>, vector<2x128xf32>
    %560 = vector.extract_strided_slice %554 {offsets = [0, 0], sizes = [2, 128], strides = [1, 1]} : vector<2x256xf32> to vector<2x128xf32>
    %561 = arith.addf %559, %560 : vector<2x128xf32>
    %562 = arith.index_cast %557 : i32 to index
    %c128_167 = arith.constant 128 : index
    %563 = vector.load %arg18[%562, %c128_167] : memref<16x256xf32, #tpu.memory_space<vmem>>, vector<2x128xf32>
    %564 = vector.extract_strided_slice %554 {offsets = [0, 128], sizes = [2, 128], strides = [1, 1]} : vector<2x256xf32> to vector<2x128xf32>
    %565 = arith.addf %563, %564 : vector<2x128xf32>
    %566 = arith.negf %561 : vector<2x128xf32>
    %567 = math.exp %566 : vector<2x128xf32>
    %cst_168 = arith.constant 1.000000e+00 : f32
    %568 = vector.broadcast %cst_168 : f32 to vector<2x128xf32>
    %569 = arith.addf %568, %567 : vector<2x128xf32>
    %570 = arith.divf %568, %569 : vector<2x128xf32>
    %571 = math.tanh %561 : vector<2x128xf32>
    %572 = vector.extract_strided_slice %570 {offsets = [0, 0], sizes = [2, 32], strides = [1, 1]} : vector<2x128xf32> to vector<2x32xf32>
    %573 = vector.extract_strided_slice %570 {offsets = [0, 32], sizes = [2, 32], strides = [1, 1]} : vector<2x128xf32> to vector<2x32xf32>
    %574 = vector.extract_strided_slice %571 {offsets = [0, 64], sizes = [2, 32], strides = [1, 1]} : vector<2x128xf32> to vector<2x32xf32>
    %575 = vector.extract_strided_slice %570 {offsets = [0, 96], sizes = [2, 32], strides = [1, 1]} : vector<2x128xf32> to vector<2x32xf32>
    %576 = arith.mulf %573, %530 : vector<2x32xf32>
    %577 = arith.mulf %572, %574 : vector<2x32xf32>
    %578 = arith.addf %576, %577 : vector<2x32xf32>
    %579 = math.tanh %578 : vector<2x32xf32>
    %580 = arith.mulf %575, %579 : vector<2x32xf32>
    %581 = arith.negf %565 : vector<2x128xf32>
    %582 = math.exp %581 : vector<2x128xf32>
    %cst_169 = arith.constant 1.000000e+00 : f32
    %583 = vector.broadcast %cst_169 : f32 to vector<2x128xf32>
    %584 = arith.addf %583, %582 : vector<2x128xf32>
    %585 = arith.divf %583, %584 : vector<2x128xf32>
    %586 = math.tanh %565 : vector<2x128xf32>
    %587 = vector.extract_strided_slice %585 {offsets = [0, 0], sizes = [2, 32], strides = [1, 1]} : vector<2x128xf32> to vector<2x32xf32>
    %588 = vector.extract_strided_slice %585 {offsets = [0, 32], sizes = [2, 32], strides = [1, 1]} : vector<2x128xf32> to vector<2x32xf32>
    %589 = vector.extract_strided_slice %586 {offsets = [0, 64], sizes = [2, 32], strides = [1, 1]} : vector<2x128xf32> to vector<2x32xf32>
    %590 = vector.extract_strided_slice %585 {offsets = [0, 96], sizes = [2, 32], strides = [1, 1]} : vector<2x128xf32> to vector<2x32xf32>
    %591 = arith.mulf %588, %545 : vector<2x32xf32>
    %592 = arith.mulf %587, %589 : vector<2x32xf32>
    %593 = arith.addf %591, %592 : vector<2x32xf32>
    %594 = math.tanh %593 : vector<2x32xf32>
    %595 = arith.mulf %590, %594 : vector<2x32xf32>
    %596 = arith.index_cast %555 : i32 to index
    %c0_170 = arith.constant 0 : index
    %597 = vector.load %arg17[%596, %c0_170] : memref<16x64xf32, #tpu.memory_space<vmem>>, vector<2x32xf32>
    tpu.vector_store %arg17[%596, %c0_170], %580 {strides = array<i32>} : memref<16x64xf32, #tpu.memory_space<vmem>>, vector<2x32xf32>,
    %598 = arith.index_cast %557 : i32 to index
    %c32_171 = arith.constant 32 : index
    %599 = vector.load %arg17[%598, %c32_171] : memref<16x64xf32, #tpu.memory_space<vmem>>, vector<2x32xf32>
    tpu.vector_store %arg17[%598, %c32_171], %595 {strides = array<i32>} : memref<16x64xf32, #tpu.memory_space<vmem>>, vector<2x32xf32>,
    %600 = tpu.concatenate %580, %595 in 1 : vector<2x32xf32>, vector<2x32xf32> -> vector<2x64xf32>
    %c4_i32_172 = arith.constant 4 : i32
    %c0_173 = arith.constant 0 : index
    %c0_174 = arith.constant 0 : index
    %601 = vector.load %arg8[%c0_173, %c0_174] : memref<64x256xf32, #tpu.memory_space<vmem>>, vector<64x256xf32>
    %cst_175 = arith.constant dense<0.000000e+00> : vector<2x256xf32>
    %602 = tpu.matmul %600, %601, %cst_175 {dimension_numbers = #tpu.dot_dimension_numbers<[1], [0], [0], [1], [0, 0, 1, 1], [], []>} : vector<2x64xf32>, vector<64x256xf32>, vector<2x256xf32> -> vector<2x256xf32>
    %c2_i32_176 = arith.constant 2 : i32
    %603 = arith.muli %c4_i32_172, %c2_i32_176 : i32
    %c7_i32_177 = arith.constant 7 : i32
    %604 = arith.subi %c7_i32_177, %c4_i32_172 : i32
    %c2_i32_178 = arith.constant 2 : i32
    %605 = arith.muli %604, %c2_i32_178 : i32
    %606 = arith.index_cast %603 : i32 to index
    %c0_179 = arith.constant 0 : index
    %607 = vector.load %arg18[%606, %c0_179] : memref<16x256xf32, #tpu.memory_space<vmem>>, vector<2x128xf32>
    %608 = vector.extract_strided_slice %602 {offsets = [0, 0], sizes = [2, 128], strides = [1, 1]} : vector<2x256xf32> to vector<2x128xf32>
    %609 = arith.addf %607, %608 : vector<2x128xf32>
    %610 = arith.index_cast %605 : i32 to index
    %c128_180 = arith.constant 128 : index
    %611 = vector.load %arg18[%610, %c128_180] : memref<16x256xf32, #tpu.memory_space<vmem>>, vector<2x128xf32>
    %612 = vector.extract_strided_slice %602 {offsets = [0, 128], sizes = [2, 128], strides = [1, 1]} : vector<2x256xf32> to vector<2x128xf32>
    %613 = arith.addf %611, %612 : vector<2x128xf32>
    %614 = arith.negf %609 : vector<2x128xf32>
    %615 = math.exp %614 : vector<2x128xf32>
    %cst_181 = arith.constant 1.000000e+00 : f32
    %616 = vector.broadcast %cst_181 : f32 to vector<2x128xf32>
    %617 = arith.addf %616, %615 : vector<2x128xf32>
    %618 = arith.divf %616, %617 : vector<2x128xf32>
    %619 = math.tanh %609 : vector<2x128xf32>
    %620 = vector.extract_strided_slice %618 {offsets = [0, 0], sizes = [2, 32], strides = [1, 1]} : vector<2x128xf32> to vector<2x32xf32>
    %621 = vector.extract_strided_slice %618 {offsets = [0, 32], sizes = [2, 32], strides = [1, 1]} : vector<2x128xf32> to vector<2x32xf32>
    %622 = vector.extract_strided_slice %619 {offsets = [0, 64], sizes = [2, 32], strides = [1, 1]} : vector<2x128xf32> to vector<2x32xf32>
    %623 = vector.extract_strided_slice %618 {offsets = [0, 96], sizes = [2, 32], strides = [1, 1]} : vector<2x128xf32> to vector<2x32xf32>
    %624 = arith.mulf %621, %578 : vector<2x32xf32>
    %625 = arith.mulf %620, %622 : vector<2x32xf32>
    %626 = arith.addf %624, %625 : vector<2x32xf32>
    %627 = math.tanh %626 : vector<2x32xf32>
    %628 = arith.mulf %623, %627 : vector<2x32xf32>
    %629 = arith.negf %613 : vector<2x128xf32>
    %630 = math.exp %629 : vector<2x128xf32>
    %cst_182 = arith.constant 1.000000e+00 : f32
    %631 = vector.broadcast %cst_182 : f32 to vector<2x128xf32>
    %632 = arith.addf %631, %630 : vector<2x128xf32>
    %633 = arith.divf %631, %632 : vector<2x128xf32>
    %634 = math.tanh %613 : vector<2x128xf32>
    %635 = vector.extract_strided_slice %633 {offsets = [0, 0], sizes = [2, 32], strides = [1, 1]} : vector<2x128xf32> to vector<2x32xf32>
    %636 = vector.extract_strided_slice %633 {offsets = [0, 32], sizes = [2, 32], strides = [1, 1]} : vector<2x128xf32> to vector<2x32xf32>
    %637 = vector.extract_strided_slice %634 {offsets = [0, 64], sizes = [2, 32], strides = [1, 1]} : vector<2x128xf32> to vector<2x32xf32>
    %638 = vector.extract_strided_slice %633 {offsets = [0, 96], sizes = [2, 32], strides = [1, 1]} : vector<2x128xf32> to vector<2x32xf32>
    %639 = arith.mulf %636, %593 : vector<2x32xf32>
    %640 = arith.mulf %635, %637 : vector<2x32xf32>
    %641 = arith.addf %639, %640 : vector<2x32xf32>
    %642 = math.tanh %641 : vector<2x32xf32>
    %643 = arith.mulf %638, %642 : vector<2x32xf32>
    %644 = arith.index_cast %603 : i32 to index
    %c0_183 = arith.constant 0 : index
    %645 = vector.load %arg17[%644, %c0_183] : memref<16x64xf32, #tpu.memory_space<vmem>>, vector<2x32xf32>
    tpu.vector_store %arg17[%644, %c0_183], %628 {strides = array<i32>} : memref<16x64xf32, #tpu.memory_space<vmem>>, vector<2x32xf32>,
    %646 = arith.index_cast %605 : i32 to index
    %c32_184 = arith.constant 32 : index
    %647 = vector.load %arg17[%646, %c32_184] : memref<16x64xf32, #tpu.memory_space<vmem>>, vector<2x32xf32>
    tpu.vector_store %arg17[%646, %c32_184], %643 {strides = array<i32>} : memref<16x64xf32, #tpu.memory_space<vmem>>, vector<2x32xf32>,
    %648 = tpu.concatenate %628, %643 in 1 : vector<2x32xf32>, vector<2x32xf32> -> vector<2x64xf32>
    %c5_i32_185 = arith.constant 5 : i32
    %c0_186 = arith.constant 0 : index
    %c0_187 = arith.constant 0 : index
    %649 = vector.load %arg8[%c0_186, %c0_187] : memref<64x256xf32, #tpu.memory_space<vmem>>, vector<64x256xf32>
    %cst_188 = arith.constant dense<0.000000e+00> : vector<2x256xf32>
    %650 = tpu.matmul %648, %649, %cst_188 {dimension_numbers = #tpu.dot_dimension_numbers<[1], [0], [0], [1], [0, 0, 1, 1], [], []>} : vector<2x64xf32>, vector<64x256xf32>, vector<2x256xf32> -> vector<2x256xf32>
    %c2_i32_189 = arith.constant 2 : i32
    %651 = arith.muli %c5_i32_185, %c2_i32_189 : i32
    %c7_i32_190 = arith.constant 7 : i32
    %652 = arith.subi %c7_i32_190, %c5_i32_185 : i32
    %c2_i32_191 = arith.constant 2 : i32
    %653 = arith.muli %652, %c2_i32_191 : i32
    %654 = arith.index_cast %651 : i32 to index
    %c0_192 = arith.constant 0 : index
    %655 = vector.load %arg18[%654, %c0_192] : memref<16x256xf32, #tpu.memory_space<vmem>>, vector<2x128xf32>
    %656 = vector.extract_strided_slice %650 {offsets = [0, 0], sizes = [2, 128], strides = [1, 1]} : vector<2x256xf32> to vector<2x128xf32>
    %657 = arith.addf %655, %656 : vector<2x128xf32>
    %658 = arith.index_cast %653 : i32 to index
    %c128_193 = arith.constant 128 : index
    %659 = vector.load %arg18[%658, %c128_193] : memref<16x256xf32, #tpu.memory_space<vmem>>, vector<2x128xf32>
    %660 = vector.extract_strided_slice %650 {offsets = [0, 128], sizes = [2, 128], strides = [1, 1]} : vector<2x256xf32> to vector<2x128xf32>
    %661 = arith.addf %659, %660 : vector<2x128xf32>
    %662 = arith.negf %657 : vector<2x128xf32>
    %663 = math.exp %662 : vector<2x128xf32>
    %cst_194 = arith.constant 1.000000e+00 : f32
    %664 = vector.broadcast %cst_194 : f32 to vector<2x128xf32>
    %665 = arith.addf %664, %663 : vector<2x128xf32>
    %666 = arith.divf %664, %665 : vector<2x128xf32>
    %667 = math.tanh %657 : vector<2x128xf32>
    %668 = vector.extract_strided_slice %666 {offsets = [0, 0], sizes = [2, 32], strides = [1, 1]} : vector<2x128xf32> to vector<2x32xf32>
    %669 = vector.extract_strided_slice %666 {offsets = [0, 32], sizes = [2, 32], strides = [1, 1]} : vector<2x128xf32> to vector<2x32xf32>
    %670 = vector.extract_strided_slice %667 {offsets = [0, 64], sizes = [2, 32], strides = [1, 1]} : vector<2x128xf32> to vector<2x32xf32>
    %671 = vector.extract_strided_slice %666 {offsets = [0, 96], sizes = [2, 32], strides = [1, 1]} : vector<2x128xf32> to vector<2x32xf32>
    %672 = arith.mulf %669, %626 : vector<2x32xf32>
    %673 = arith.mulf %668, %670 : vector<2x32xf32>
    %674 = arith.addf %672, %673 : vector<2x32xf32>
    %675 = math.tanh %674 : vector<2x32xf32>
    %676 = arith.mulf %671, %675 : vector<2x32xf32>
    %677 = arith.negf %661 : vector<2x128xf32>
    %678 = math.exp %677 : vector<2x128xf32>
    %cst_195 = arith.constant 1.000000e+00 : f32
    %679 = vector.broadcast %cst_195 : f32 to vector<2x128xf32>
    %680 = arith.addf %679, %678 : vector<2x128xf32>
    %681 = arith.divf %679, %680 : vector<2x128xf32>
    %682 = math.tanh %661 : vector<2x128xf32>
    %683 = vector.extract_strided_slice %681 {offsets = [0, 0], sizes = [2, 32], strides = [1, 1]} : vector<2x128xf32> to vector<2x32xf32>
    %684 = vector.extract_strided_slice %681 {offsets = [0, 32], sizes = [2, 32], strides = [1, 1]} : vector<2x128xf32> to vector<2x32xf32>
    %685 = vector.extract_strided_slice %682 {offsets = [0, 64], sizes = [2, 32], strides = [1, 1]} : vector<2x128xf32> to vector<2x32xf32>
    %686 = vector.extract_strided_slice %681 {offsets = [0, 96], sizes = [2, 32], strides = [1, 1]} : vector<2x128xf32> to vector<2x32xf32>
    %687 = arith.mulf %684, %641 : vector<2x32xf32>
    %688 = arith.mulf %683, %685 : vector<2x32xf32>
    %689 = arith.addf %687, %688 : vector<2x32xf32>
    %690 = math.tanh %689 : vector<2x32xf32>
    %691 = arith.mulf %686, %690 : vector<2x32xf32>
    %692 = arith.index_cast %651 : i32 to index
    %c0_196 = arith.constant 0 : index
    %693 = vector.load %arg17[%692, %c0_196] : memref<16x64xf32, #tpu.memory_space<vmem>>, vector<2x32xf32>
    tpu.vector_store %arg17[%692, %c0_196], %676 {strides = array<i32>} : memref<16x64xf32, #tpu.memory_space<vmem>>, vector<2x32xf32>,
    %694 = arith.index_cast %653 : i32 to index
    %c32_197 = arith.constant 32 : index
    %695 = vector.load %arg17[%694, %c32_197] : memref<16x64xf32, #tpu.memory_space<vmem>>, vector<2x32xf32>
    tpu.vector_store %arg17[%694, %c32_197], %691 {strides = array<i32>} : memref<16x64xf32, #tpu.memory_space<vmem>>, vector<2x32xf32>,
    %696 = tpu.concatenate %676, %691 in 1 : vector<2x32xf32>, vector<2x32xf32> -> vector<2x64xf32>
    %c6_i32_198 = arith.constant 6 : i32
    %c0_199 = arith.constant 0 : index
    %c0_200 = arith.constant 0 : index
    %697 = vector.load %arg8[%c0_199, %c0_200] : memref<64x256xf32, #tpu.memory_space<vmem>>, vector<64x256xf32>
    %cst_201 = arith.constant dense<0.000000e+00> : vector<2x256xf32>
    %698 = tpu.matmul %696, %697, %cst_201 {dimension_numbers = #tpu.dot_dimension_numbers<[1], [0], [0], [1], [0, 0, 1, 1], [], []>} : vector<2x64xf32>, vector<64x256xf32>, vector<2x256xf32> -> vector<2x256xf32>
    %c2_i32_202 = arith.constant 2 : i32
    %699 = arith.muli %c6_i32_198, %c2_i32_202 : i32
    %c7_i32_203 = arith.constant 7 : i32
    %700 = arith.subi %c7_i32_203, %c6_i32_198 : i32
    %c2_i32_204 = arith.constant 2 : i32
    %701 = arith.muli %700, %c2_i32_204 : i32
    %702 = arith.index_cast %699 : i32 to index
    %c0_205 = arith.constant 0 : index
    %703 = vector.load %arg18[%702, %c0_205] : memref<16x256xf32, #tpu.memory_space<vmem>>, vector<2x128xf32>
    %704 = vector.extract_strided_slice %698 {offsets = [0, 0], sizes = [2, 128], strides = [1, 1]} : vector<2x256xf32> to vector<2x128xf32>
    %705 = arith.addf %703, %704 : vector<2x128xf32>
    %706 = arith.index_cast %701 : i32 to index
    %c128_206 = arith.constant 128 : index
    %707 = vector.load %arg18[%706, %c128_206] : memref<16x256xf32, #tpu.memory_space<vmem>>, vector<2x128xf32>
    %708 = vector.extract_strided_slice %698 {offsets = [0, 128], sizes = [2, 128], strides = [1, 1]} : vector<2x256xf32> to vector<2x128xf32>
    %709 = arith.addf %707, %708 : vector<2x128xf32>
    %710 = arith.negf %705 : vector<2x128xf32>
    %711 = math.exp %710 : vector<2x128xf32>
    %cst_207 = arith.constant 1.000000e+00 : f32
    %712 = vector.broadcast %cst_207 : f32 to vector<2x128xf32>
    %713 = arith.addf %712, %711 : vector<2x128xf32>
    %714 = arith.divf %712, %713 : vector<2x128xf32>
    %715 = math.tanh %705 : vector<2x128xf32>
    %716 = vector.extract_strided_slice %714 {offsets = [0, 0], sizes = [2, 32], strides = [1, 1]} : vector<2x128xf32> to vector<2x32xf32>
    %717 = vector.extract_strided_slice %714 {offsets = [0, 32], sizes = [2, 32], strides = [1, 1]} : vector<2x128xf32> to vector<2x32xf32>
    %718 = vector.extract_strided_slice %715 {offsets = [0, 64], sizes = [2, 32], strides = [1, 1]} : vector<2x128xf32> to vector<2x32xf32>
    %719 = vector.extract_strided_slice %714 {offsets = [0, 96], sizes = [2, 32], strides = [1, 1]} : vector<2x128xf32> to vector<2x32xf32>
    %720 = arith.mulf %717, %674 : vector<2x32xf32>
    %721 = arith.mulf %716, %718 : vector<2x32xf32>
    %722 = arith.addf %720, %721 : vector<2x32xf32>
    %723 = math.tanh %722 : vector<2x32xf32>
    %724 = arith.mulf %719, %723 : vector<2x32xf32>
    %725 = arith.negf %709 : vector<2x128xf32>
    %726 = math.exp %725 : vector<2x128xf32>
    %cst_208 = arith.constant 1.000000e+00 : f32
    %727 = vector.broadcast %cst_208 : f32 to vector<2x128xf32>
    %728 = arith.addf %727, %726 : vector<2x128xf32>
    %729 = arith.divf %727, %728 : vector<2x128xf32>
    %730 = math.tanh %709 : vector<2x128xf32>
    %731 = vector.extract_strided_slice %729 {offsets = [0, 0], sizes = [2, 32], strides = [1, 1]} : vector<2x128xf32> to vector<2x32xf32>
    %732 = vector.extract_strided_slice %729 {offsets = [0, 32], sizes = [2, 32], strides = [1, 1]} : vector<2x128xf32> to vector<2x32xf32>
    %733 = vector.extract_strided_slice %730 {offsets = [0, 64], sizes = [2, 32], strides = [1, 1]} : vector<2x128xf32> to vector<2x32xf32>
    %734 = vector.extract_strided_slice %729 {offsets = [0, 96], sizes = [2, 32], strides = [1, 1]} : vector<2x128xf32> to vector<2x32xf32>
    %735 = arith.mulf %732, %689 : vector<2x32xf32>
    %736 = arith.mulf %731, %733 : vector<2x32xf32>
    %737 = arith.addf %735, %736 : vector<2x32xf32>
    %738 = math.tanh %737 : vector<2x32xf32>
    %739 = arith.mulf %734, %738 : vector<2x32xf32>
    %740 = arith.index_cast %699 : i32 to index
    %c0_209 = arith.constant 0 : index
    %741 = vector.load %arg17[%740, %c0_209] : memref<16x64xf32, #tpu.memory_space<vmem>>, vector<2x32xf32>
    tpu.vector_store %arg17[%740, %c0_209], %724 {strides = array<i32>} : memref<16x64xf32, #tpu.memory_space<vmem>>, vector<2x32xf32>,
    %742 = arith.index_cast %701 : i32 to index
    %c32_210 = arith.constant 32 : index
    %743 = vector.load %arg17[%742, %c32_210] : memref<16x64xf32, #tpu.memory_space<vmem>>, vector<2x32xf32>
    tpu.vector_store %arg17[%742, %c32_210], %739 {strides = array<i32>} : memref<16x64xf32, #tpu.memory_space<vmem>>, vector<2x32xf32>,
    %744 = tpu.concatenate %724, %739 in 1 : vector<2x32xf32>, vector<2x32xf32> -> vector<2x64xf32>
    %c7_i32_211 = arith.constant 7 : i32
    %c0_212 = arith.constant 0 : index
    %c0_213 = arith.constant 0 : index
    %745 = vector.load %arg8[%c0_212, %c0_213] : memref<64x256xf32, #tpu.memory_space<vmem>>, vector<64x256xf32>
    %cst_214 = arith.constant dense<0.000000e+00> : vector<2x256xf32>
    %746 = tpu.matmul %744, %745, %cst_214 {dimension_numbers = #tpu.dot_dimension_numbers<[1], [0], [0], [1], [0, 0, 1, 1], [], []>} : vector<2x64xf32>, vector<64x256xf32>, vector<2x256xf32> -> vector<2x256xf32>
    %c2_i32_215 = arith.constant 2 : i32
    %747 = arith.muli %c7_i32_211, %c2_i32_215 : i32
    %c7_i32_216 = arith.constant 7 : i32
    %748 = arith.subi %c7_i32_216, %c7_i32_211 : i32
    %c2_i32_217 = arith.constant 2 : i32
    %749 = arith.muli %748, %c2_i32_217 : i32
    %750 = arith.index_cast %747 : i32 to index
    %c0_218 = arith.constant 0 : index
    %751 = vector.load %arg18[%750, %c0_218] : memref<16x256xf32, #tpu.memory_space<vmem>>, vector<2x128xf32>
    %752 = vector.extract_strided_slice %746 {offsets = [0, 0], sizes = [2, 128], strides = [1, 1]} : vector<2x256xf32> to vector<2x128xf32>
    %753 = arith.addf %751, %752 : vector<2x128xf32>
    %754 = arith.index_cast %749 : i32 to index
    %c128_219 = arith.constant 128 : index
    %755 = vector.load %arg18[%754, %c128_219] : memref<16x256xf32, #tpu.memory_space<vmem>>, vector<2x128xf32>
    %756 = vector.extract_strided_slice %746 {offsets = [0, 128], sizes = [2, 128], strides = [1, 1]} : vector<2x256xf32> to vector<2x128xf32>
    %757 = arith.addf %755, %756 : vector<2x128xf32>
    %758 = arith.negf %753 : vector<2x128xf32>
    %759 = math.exp %758 : vector<2x128xf32>
    %cst_220 = arith.constant 1.000000e+00 : f32
    %760 = vector.broadcast %cst_220 : f32 to vector<2x128xf32>
    %761 = arith.addf %760, %759 : vector<2x128xf32>
    %762 = arith.divf %760, %761 : vector<2x128xf32>
    %763 = math.tanh %753 : vector<2x128xf32>
    %764 = vector.extract_strided_slice %762 {offsets = [0, 0], sizes = [2, 32], strides = [1, 1]} : vector<2x128xf32> to vector<2x32xf32>
    %765 = vector.extract_strided_slice %762 {offsets = [0, 32], sizes = [2, 32], strides = [1, 1]} : vector<2x128xf32> to vector<2x32xf32>
    %766 = vector.extract_strided_slice %763 {offsets = [0, 64], sizes = [2, 32], strides = [1, 1]} : vector<2x128xf32> to vector<2x32xf32>
    %767 = vector.extract_strided_slice %762 {offsets = [0, 96], sizes = [2, 32], strides = [1, 1]} : vector<2x128xf32> to vector<2x32xf32>
    %768 = arith.mulf %765, %722 : vector<2x32xf32>
    %769 = arith.mulf %764, %766 : vector<2x32xf32>
    %770 = arith.addf %768, %769 : vector<2x32xf32>
    %771 = math.tanh %770 : vector<2x32xf32>
    %772 = arith.mulf %767, %771 : vector<2x32xf32>
    %773 = arith.negf %757 : vector<2x128xf32>
    %774 = math.exp %773 : vector<2x128xf32>
    %cst_221 = arith.constant 1.000000e+00 : f32
    %775 = vector.broadcast %cst_221 : f32 to vector<2x128xf32>
    %776 = arith.addf %775, %774 : vector<2x128xf32>
    %777 = arith.divf %775, %776 : vector<2x128xf32>
    %778 = math.tanh %757 : vector<2x128xf32>
    %779 = vector.extract_strided_slice %777 {offsets = [0, 0], sizes = [2, 32], strides = [1, 1]} : vector<2x128xf32> to vector<2x32xf32>
    %780 = vector.extract_strided_slice %777 {offsets = [0, 32], sizes = [2, 32], strides = [1, 1]} : vector<2x128xf32> to vector<2x32xf32>
    %781 = vector.extract_strided_slice %778 {offsets = [0, 64], sizes = [2, 32], strides = [1, 1]} : vector<2x128xf32> to vector<2x32xf32>
    %782 = vector.extract_strided_slice %777 {offsets = [0, 96], sizes = [2, 32], strides = [1, 1]} : vector<2x128xf32> to vector<2x32xf32>
    %783 = arith.mulf %780, %737 : vector<2x32xf32>
    %784 = arith.mulf %779, %781 : vector<2x32xf32>
    %785 = arith.addf %783, %784 : vector<2x32xf32>
    %786 = math.tanh %785 : vector<2x32xf32>
    %787 = arith.mulf %782, %786 : vector<2x32xf32>
    %788 = arith.index_cast %747 : i32 to index
    %c0_222 = arith.constant 0 : index
    %789 = vector.load %arg17[%788, %c0_222] : memref<16x64xf32, #tpu.memory_space<vmem>>, vector<2x32xf32>
    tpu.vector_store %arg17[%788, %c0_222], %772 {strides = array<i32>} : memref<16x64xf32, #tpu.memory_space<vmem>>, vector<2x32xf32>,
    %790 = arith.index_cast %749 : i32 to index
    %c32_223 = arith.constant 32 : index
    %791 = vector.load %arg17[%790, %c32_223] : memref<16x64xf32, #tpu.memory_space<vmem>>, vector<2x32xf32>
    tpu.vector_store %arg17[%790, %c32_223], %787 {strides = array<i32>} : memref<16x64xf32, #tpu.memory_space<vmem>>, vector<2x32xf32>,
    %792 = tpu.concatenate %772, %787 in 1 : vector<2x32xf32>, vector<2x32xf32> -> vector<2x64xf32>
    %c8_i32_224 = arith.constant 8 : i32
    %c0_225 = arith.constant 0 : index
    %c0_226 = arith.constant 0 : index
    %793 = vector.load %arg17[%c0_225, %c0_226] : memref<16x64xf32, #tpu.memory_space<vmem>>, vector<16x64xf32>
    %c0_227 = arith.constant 0 : index
    %c0_228 = arith.constant 0 : index
    %794 = vector.load %arg10[%c0_227, %c0_228] : memref<64x256xf32, #tpu.memory_space<vmem>>, vector<64x256xf32>
    %cst_229 = arith.constant dense<0.000000e+00> : vector<16x256xf32>
    %795 = tpu.matmul %793, %794, %cst_229 {dimension_numbers = #tpu.dot_dimension_numbers<[1], [0], [0], [1], [0, 0, 1, 1], [], []>} : vector<16x64xf32>, vector<64x256xf32>, vector<16x256xf32> -> vector<16x256xf32>
    %c0_230 = arith.constant 0 : index
    %c0_231 = arith.constant 0 : index
    %796 = vector.load %arg12[%c0_230, %c0_231] : memref<1x256xf32, #tpu.memory_space<vmem>>, vector<1x256xf32>
    %797 = vector.broadcast %796 : vector<1x256xf32> to vector<16x256xf32>
    %798 = arith.addf %795, %797 : vector<16x256xf32>
    %c0_232 = arith.constant 0 : index
    %c0_233 = arith.constant 0 : index
    %799 = vector.load %arg18[%c0_232, %c0_233] : memref<16x256xf32, #tpu.memory_space<vmem>>, vector<16x256xf32>
    tpu.vector_store %arg18[%c0_232, %c0_233], %798 {strides = array<i32>} : memref<16x256xf32, #tpu.memory_space<vmem>>, vector<16x256xf32>,
    %cst_234 = arith.constant 0.000000e+00 : f32
    %800 = vector.broadcast %cst_234 : f32 to vector<2x64xf32>
    %cst_235 = arith.constant 0.000000e+00 : f32
    %801 = vector.broadcast %cst_235 : f32 to vector<2x32xf32>
    %c0_i32_236 = arith.constant 0 : i32
    %c0_237 = arith.constant 0 : index
    %c0_238 = arith.constant 0 : index
    %802 = vector.load %arg11[%c0_237, %c0_238] : memref<64x256xf32, #tpu.memory_space<vmem>>, vector<64x256xf32>
    %cst_239 = arith.constant dense<0.000000e+00> : vector<2x256xf32>
    %803 = tpu.matmul %800, %802, %cst_239 {dimension_numbers = #tpu.dot_dimension_numbers<[1], [0], [0], [1], [0, 0, 1, 1], [], []>} : vector<2x64xf32>, vector<64x256xf32>, vector<2x256xf32> -> vector<2x256xf32>
    %c2_i32_240 = arith.constant 2 : i32
    %804 = arith.muli %c0_i32_236, %c2_i32_240 : i32
    %c7_i32_241 = arith.constant 7 : i32
    %805 = arith.subi %c7_i32_241, %c0_i32_236 : i32
    %c2_i32_242 = arith.constant 2 : i32
    %806 = arith.muli %805, %c2_i32_242 : i32
    %807 = arith.index_cast %804 : i32 to index
    %c0_243 = arith.constant 0 : index
    %808 = vector.load %arg18[%807, %c0_243] : memref<16x256xf32, #tpu.memory_space<vmem>>, vector<2x128xf32>
    %809 = vector.extract_strided_slice %803 {offsets = [0, 0], sizes = [2, 128], strides = [1, 1]} : vector<2x256xf32> to vector<2x128xf32>
    %810 = arith.addf %808, %809 : vector<2x128xf32>
    %811 = arith.index_cast %806 : i32 to index
    %c128_244 = arith.constant 128 : index
    %812 = vector.load %arg18[%811, %c128_244] : memref<16x256xf32, #tpu.memory_space<vmem>>, vector<2x128xf32>
    %813 = vector.extract_strided_slice %803 {offsets = [0, 128], sizes = [2, 128], strides = [1, 1]} : vector<2x256xf32> to vector<2x128xf32>
    %814 = arith.addf %812, %813 : vector<2x128xf32>
    %815 = arith.negf %810 : vector<2x128xf32>
    %816 = math.exp %815 : vector<2x128xf32>
    %cst_245 = arith.constant 1.000000e+00 : f32
    %817 = vector.broadcast %cst_245 : f32 to vector<2x128xf32>
    %818 = arith.addf %817, %816 : vector<2x128xf32>
    %819 = arith.divf %817, %818 : vector<2x128xf32>
    %820 = math.tanh %810 : vector<2x128xf32>
    %821 = vector.extract_strided_slice %819 {offsets = [0, 0], sizes = [2, 32], strides = [1, 1]} : vector<2x128xf32> to vector<2x32xf32>
    %822 = vector.extract_strided_slice %819 {offsets = [0, 32], sizes = [2, 32], strides = [1, 1]} : vector<2x128xf32> to vector<2x32xf32>
    %823 = vector.extract_strided_slice %820 {offsets = [0, 64], sizes = [2, 32], strides = [1, 1]} : vector<2x128xf32> to vector<2x32xf32>
    %824 = vector.extract_strided_slice %819 {offsets = [0, 96], sizes = [2, 32], strides = [1, 1]} : vector<2x128xf32> to vector<2x32xf32>
    %825 = arith.mulf %822, %801 : vector<2x32xf32>
    %826 = arith.mulf %821, %823 : vector<2x32xf32>
    %827 = arith.addf %825, %826 : vector<2x32xf32>
    %828 = math.tanh %827 : vector<2x32xf32>
    %829 = arith.mulf %824, %828 : vector<2x32xf32>
    %830 = arith.negf %814 : vector<2x128xf32>
    %831 = math.exp %830 : vector<2x128xf32>
    %cst_246 = arith.constant 1.000000e+00 : f32
    %832 = vector.broadcast %cst_246 : f32 to vector<2x128xf32>
    %833 = arith.addf %832, %831 : vector<2x128xf32>
    %834 = arith.divf %832, %833 : vector<2x128xf32>
    %835 = math.tanh %814 : vector<2x128xf32>
    %836 = vector.extract_strided_slice %834 {offsets = [0, 0], sizes = [2, 32], strides = [1, 1]} : vector<2x128xf32> to vector<2x32xf32>
    %837 = vector.extract_strided_slice %834 {offsets = [0, 32], sizes = [2, 32], strides = [1, 1]} : vector<2x128xf32> to vector<2x32xf32>
    %838 = vector.extract_strided_slice %835 {offsets = [0, 64], sizes = [2, 32], strides = [1, 1]} : vector<2x128xf32> to vector<2x32xf32>
    %839 = vector.extract_strided_slice %834 {offsets = [0, 96], sizes = [2, 32], strides = [1, 1]} : vector<2x128xf32> to vector<2x32xf32>
    %840 = arith.mulf %837, %801 : vector<2x32xf32>
    %841 = arith.mulf %836, %838 : vector<2x32xf32>
    %842 = arith.addf %840, %841 : vector<2x32xf32>
    %843 = math.tanh %842 : vector<2x32xf32>
    %844 = arith.mulf %839, %843 : vector<2x32xf32>
    %845 = arith.index_cast %804 : i32 to index
    %c0_247 = arith.constant 0 : index
    %846 = vector.load %arg17[%845, %c0_247] : memref<16x64xf32, #tpu.memory_space<vmem>>, vector<2x32xf32>
    tpu.vector_store %arg17[%845, %c0_247], %829 {strides = array<i32>} : memref<16x64xf32, #tpu.memory_space<vmem>>, vector<2x32xf32>,
    %847 = arith.index_cast %806 : i32 to index
    %c32_248 = arith.constant 32 : index
    %848 = vector.load %arg17[%847, %c32_248] : memref<16x64xf32, #tpu.memory_space<vmem>>, vector<2x32xf32>
    tpu.vector_store %arg17[%847, %c32_248], %844 {strides = array<i32>} : memref<16x64xf32, #tpu.memory_space<vmem>>, vector<2x32xf32>,
    %849 = tpu.concatenate %829, %844 in 1 : vector<2x32xf32>, vector<2x32xf32> -> vector<2x64xf32>
    %c1_i32_249 = arith.constant 1 : i32
    %c0_250 = arith.constant 0 : index
    %c0_251 = arith.constant 0 : index
    %850 = vector.load %arg11[%c0_250, %c0_251] : memref<64x256xf32, #tpu.memory_space<vmem>>, vector<64x256xf32>
    %cst_252 = arith.constant dense<0.000000e+00> : vector<2x256xf32>
    %851 = tpu.matmul %849, %850, %cst_252 {dimension_numbers = #tpu.dot_dimension_numbers<[1], [0], [0], [1], [0, 0, 1, 1], [], []>} : vector<2x64xf32>, vector<64x256xf32>, vector<2x256xf32> -> vector<2x256xf32>
    %c2_i32_253 = arith.constant 2 : i32
    %852 = arith.muli %c1_i32_249, %c2_i32_253 : i32
    %c7_i32_254 = arith.constant 7 : i32
    %853 = arith.subi %c7_i32_254, %c1_i32_249 : i32
    %c2_i32_255 = arith.constant 2 : i32
    %854 = arith.muli %853, %c2_i32_255 : i32
    %855 = arith.index_cast %852 : i32 to index
    %c0_256 = arith.constant 0 : index
    %856 = vector.load %arg18[%855, %c0_256] : memref<16x256xf32, #tpu.memory_space<vmem>>, vector<2x128xf32>
    %857 = vector.extract_strided_slice %851 {offsets = [0, 0], sizes = [2, 128], strides = [1, 1]} : vector<2x256xf32> to vector<2x128xf32>
    %858 = arith.addf %856, %857 : vector<2x128xf32>
    %859 = arith.index_cast %854 : i32 to index
    %c128_257 = arith.constant 128 : index
    %860 = vector.load %arg18[%859, %c128_257] : memref<16x256xf32, #tpu.memory_space<vmem>>, vector<2x128xf32>
    %861 = vector.extract_strided_slice %851 {offsets = [0, 128], sizes = [2, 128], strides = [1, 1]} : vector<2x256xf32> to vector<2x128xf32>
    %862 = arith.addf %860, %861 : vector<2x128xf32>
    %863 = arith.negf %858 : vector<2x128xf32>
    %864 = math.exp %863 : vector<2x128xf32>
    %cst_258 = arith.constant 1.000000e+00 : f32
    %865 = vector.broadcast %cst_258 : f32 to vector<2x128xf32>
    %866 = arith.addf %865, %864 : vector<2x128xf32>
    %867 = arith.divf %865, %866 : vector<2x128xf32>
    %868 = math.tanh %858 : vector<2x128xf32>
    %869 = vector.extract_strided_slice %867 {offsets = [0, 0], sizes = [2, 32], strides = [1, 1]} : vector<2x128xf32> to vector<2x32xf32>
    %870 = vector.extract_strided_slice %867 {offsets = [0, 32], sizes = [2, 32], strides = [1, 1]} : vector<2x128xf32> to vector<2x32xf32>
    %871 = vector.extract_strided_slice %868 {offsets = [0, 64], sizes = [2, 32], strides = [1, 1]} : vector<2x128xf32> to vector<2x32xf32>
    %872 = vector.extract_strided_slice %867 {offsets = [0, 96], sizes = [2, 32], strides = [1, 1]} : vector<2x128xf32> to vector<2x32xf32>
    %873 = arith.mulf %870, %827 : vector<2x32xf32>
    %874 = arith.mulf %869, %871 : vector<2x32xf32>
    %875 = arith.addf %873, %874 : vector<2x32xf32>
    %876 = math.tanh %875 : vector<2x32xf32>
    %877 = arith.mulf %872, %876 : vector<2x32xf32>
    %878 = arith.negf %862 : vector<2x128xf32>
    %879 = math.exp %878 : vector<2x128xf32>
    %cst_259 = arith.constant 1.000000e+00 : f32
    %880 = vector.broadcast %cst_259 : f32 to vector<2x128xf32>
    %881 = arith.addf %880, %879 : vector<2x128xf32>
    %882 = arith.divf %880, %881 : vector<2x128xf32>
    %883 = math.tanh %862 : vector<2x128xf32>
    %884 = vector.extract_strided_slice %882 {offsets = [0, 0], sizes = [2, 32], strides = [1, 1]} : vector<2x128xf32> to vector<2x32xf32>
    %885 = vector.extract_strided_slice %882 {offsets = [0, 32], sizes = [2, 32], strides = [1, 1]} : vector<2x128xf32> to vector<2x32xf32>
    %886 = vector.extract_strided_slice %883 {offsets = [0, 64], sizes = [2, 32], strides = [1, 1]} : vector<2x128xf32> to vector<2x32xf32>
    %887 = vector.extract_strided_slice %882 {offsets = [0, 96], sizes = [2, 32], strides = [1, 1]} : vector<2x128xf32> to vector<2x32xf32>
    %888 = arith.mulf %885, %842 : vector<2x32xf32>
    %889 = arith.mulf %884, %886 : vector<2x32xf32>
    %890 = arith.addf %888, %889 : vector<2x32xf32>
    %891 = math.tanh %890 : vector<2x32xf32>
    %892 = arith.mulf %887, %891 : vector<2x32xf32>
    %893 = arith.index_cast %852 : i32 to index
    %c0_260 = arith.constant 0 : index
    %894 = vector.load %arg17[%893, %c0_260] : memref<16x64xf32, #tpu.memory_space<vmem>>, vector<2x32xf32>
    tpu.vector_store %arg17[%893, %c0_260], %877 {strides = array<i32>} : memref<16x64xf32, #tpu.memory_space<vmem>>, vector<2x32xf32>,
    %895 = arith.index_cast %854 : i32 to index
    %c32_261 = arith.constant 32 : index
    %896 = vector.load %arg17[%895, %c32_261] : memref<16x64xf32, #tpu.memory_space<vmem>>, vector<2x32xf32>
    tpu.vector_store %arg17[%895, %c32_261], %892 {strides = array<i32>} : memref<16x64xf32, #tpu.memory_space<vmem>>, vector<2x32xf32>,
    %897 = tpu.concatenate %877, %892 in 1 : vector<2x32xf32>, vector<2x32xf32> -> vector<2x64xf32>
    %c2_i32_262 = arith.constant 2 : i32
    %c0_263 = arith.constant 0 : index
    %c0_264 = arith.constant 0 : index
    %898 = vector.load %arg11[%c0_263, %c0_264] : memref<64x256xf32, #tpu.memory_space<vmem>>, vector<64x256xf32>
    %cst_265 = arith.constant dense<0.000000e+00> : vector<2x256xf32>
    %899 = tpu.matmul %897, %898, %cst_265 {dimension_numbers = #tpu.dot_dimension_numbers<[1], [0], [0], [1], [0, 0, 1, 1], [], []>} : vector<2x64xf32>, vector<64x256xf32>, vector<2x256xf32> -> vector<2x256xf32>
    %c2_i32_266 = arith.constant 2 : i32
    %900 = arith.muli %c2_i32_262, %c2_i32_266 : i32
    %c7_i32_267 = arith.constant 7 : i32
    %901 = arith.subi %c7_i32_267, %c2_i32_262 : i32
    %c2_i32_268 = arith.constant 2 : i32
    %902 = arith.muli %901, %c2_i32_268 : i32
    %903 = arith.index_cast %900 : i32 to index
    %c0_269 = arith.constant 0 : index
    %904 = vector.load %arg18[%903, %c0_269] : memref<16x256xf32, #tpu.memory_space<vmem>>, vector<2x128xf32>
    %905 = vector.extract_strided_slice %899 {offsets = [0, 0], sizes = [2, 128], strides = [1, 1]} : vector<2x256xf32> to vector<2x128xf32>
    %906 = arith.addf %904, %905 : vector<2x128xf32>
    %907 = arith.index_cast %902 : i32 to index
    %c128_270 = arith.constant 128 : index
    %908 = vector.load %arg18[%907, %c128_270] : memref<16x256xf32, #tpu.memory_space<vmem>>, vector<2x128xf32>
    %909 = vector.extract_strided_slice %899 {offsets = [0, 128], sizes = [2, 128], strides = [1, 1]} : vector<2x256xf32> to vector<2x128xf32>
    %910 = arith.addf %908, %909 : vector<2x128xf32>
    %911 = arith.negf %906 : vector<2x128xf32>
    %912 = math.exp %911 : vector<2x128xf32>
    %cst_271 = arith.constant 1.000000e+00 : f32
    %913 = vector.broadcast %cst_271 : f32 to vector<2x128xf32>
    %914 = arith.addf %913, %912 : vector<2x128xf32>
    %915 = arith.divf %913, %914 : vector<2x128xf32>
    %916 = math.tanh %906 : vector<2x128xf32>
    %917 = vector.extract_strided_slice %915 {offsets = [0, 0], sizes = [2, 32], strides = [1, 1]} : vector<2x128xf32> to vector<2x32xf32>
    %918 = vector.extract_strided_slice %915 {offsets = [0, 32], sizes = [2, 32], strides = [1, 1]} : vector<2x128xf32> to vector<2x32xf32>
    %919 = vector.extract_strided_slice %916 {offsets = [0, 64], sizes = [2, 32], strides = [1, 1]} : vector<2x128xf32> to vector<2x32xf32>
    %920 = vector.extract_strided_slice %915 {offsets = [0, 96], sizes = [2, 32], strides = [1, 1]} : vector<2x128xf32> to vector<2x32xf32>
    %921 = arith.mulf %918, %875 : vector<2x32xf32>
    %922 = arith.mulf %917, %919 : vector<2x32xf32>
    %923 = arith.addf %921, %922 : vector<2x32xf32>
    %924 = math.tanh %923 : vector<2x32xf32>
    %925 = arith.mulf %920, %924 : vector<2x32xf32>
    %926 = arith.negf %910 : vector<2x128xf32>
    %927 = math.exp %926 : vector<2x128xf32>
    %cst_272 = arith.constant 1.000000e+00 : f32
    %928 = vector.broadcast %cst_272 : f32 to vector<2x128xf32>
    %929 = arith.addf %928, %927 : vector<2x128xf32>
    %930 = arith.divf %928, %929 : vector<2x128xf32>
    %931 = math.tanh %910 : vector<2x128xf32>
    %932 = vector.extract_strided_slice %930 {offsets = [0, 0], sizes = [2, 32], strides = [1, 1]} : vector<2x128xf32> to vector<2x32xf32>
    %933 = vector.extract_strided_slice %930 {offsets = [0, 32], sizes = [2, 32], strides = [1, 1]} : vector<2x128xf32> to vector<2x32xf32>
    %934 = vector.extract_strided_slice %931 {offsets = [0, 64], sizes = [2, 32], strides = [1, 1]} : vector<2x128xf32> to vector<2x32xf32>
    %935 = vector.extract_strided_slice %930 {offsets = [0, 96], sizes = [2, 32], strides = [1, 1]} : vector<2x128xf32> to vector<2x32xf32>
    %936 = arith.mulf %933, %890 : vector<2x32xf32>
    %937 = arith.mulf %932, %934 : vector<2x32xf32>
    %938 = arith.addf %936, %937 : vector<2x32xf32>
    %939 = math.tanh %938 : vector<2x32xf32>
    %940 = arith.mulf %935, %939 : vector<2x32xf32>
    %941 = arith.index_cast %900 : i32 to index
    %c0_273 = arith.constant 0 : index
    %942 = vector.load %arg17[%941, %c0_273] : memref<16x64xf32, #tpu.memory_space<vmem>>, vector<2x32xf32>
    tpu.vector_store %arg17[%941, %c0_273], %925 {strides = array<i32>} : memref<16x64xf32, #tpu.memory_space<vmem>>, vector<2x32xf32>,
    %943 = arith.index_cast %902 : i32 to index
    %c32_274 = arith.constant 32 : index
    %944 = vector.load %arg17[%943, %c32_274] : memref<16x64xf32, #tpu.memory_space<vmem>>, vector<2x32xf32>
    tpu.vector_store %arg17[%943, %c32_274], %940 {strides = array<i32>} : memref<16x64xf32, #tpu.memory_space<vmem>>, vector<2x32xf32>,
    %945 = tpu.concatenate %925, %940 in 1 : vector<2x32xf32>, vector<2x32xf32> -> vector<2x64xf32>
    %c3_i32_275 = arith.constant 3 : i32
    %c0_276 = arith.constant 0 : index
    %c0_277 = arith.constant 0 : index
    %946 = vector.load %arg11[%c0_276, %c0_277] : memref<64x256xf32, #tpu.memory_space<vmem>>, vector<64x256xf32>
    %cst_278 = arith.constant dense<0.000000e+00> : vector<2x256xf32>
    %947 = tpu.matmul %945, %946, %cst_278 {dimension_numbers = #tpu.dot_dimension_numbers<[1], [0], [0], [1], [0, 0, 1, 1], [], []>} : vector<2x64xf32>, vector<64x256xf32>, vector<2x256xf32> -> vector<2x256xf32>
    %c2_i32_279 = arith.constant 2 : i32
    %948 = arith.muli %c3_i32_275, %c2_i32_279 : i32
    %c7_i32_280 = arith.constant 7 : i32
    %949 = arith.subi %c7_i32_280, %c3_i32_275 : i32
    %c2_i32_281 = arith.constant 2 : i32
    %950 = arith.muli %949, %c2_i32_281 : i32
    %951 = arith.index_cast %948 : i32 to index
    %c0_282 = arith.constant 0 : index
    %952 = vector.load %arg18[%951, %c0_282] : memref<16x256xf32, #tpu.memory_space<vmem>>, vector<2x128xf32>
    %953 = vector.extract_strided_slice %947 {offsets = [0, 0], sizes = [2, 128], strides = [1, 1]} : vector<2x256xf32> to vector<2x128xf32>
    %954 = arith.addf %952, %953 : vector<2x128xf32>
    %955 = arith.index_cast %950 : i32 to index
    %c128_283 = arith.constant 128 : index
    %956 = vector.load %arg18[%955, %c128_283] : memref<16x256xf32, #tpu.memory_space<vmem>>, vector<2x128xf32>
    %957 = vector.extract_strided_slice %947 {offsets = [0, 128], sizes = [2, 128], strides = [1, 1]} : vector<2x256xf32> to vector<2x128xf32>
    %958 = arith.addf %956, %957 : vector<2x128xf32>
    %959 = arith.negf %954 : vector<2x128xf32>
    %960 = math.exp %959 : vector<2x128xf32>
    %cst_284 = arith.constant 1.000000e+00 : f32
    %961 = vector.broadcast %cst_284 : f32 to vector<2x128xf32>
    %962 = arith.addf %961, %960 : vector<2x128xf32>
    %963 = arith.divf %961, %962 : vector<2x128xf32>
    %964 = math.tanh %954 : vector<2x128xf32>
    %965 = vector.extract_strided_slice %963 {offsets = [0, 0], sizes = [2, 32], strides = [1, 1]} : vector<2x128xf32> to vector<2x32xf32>
    %966 = vector.extract_strided_slice %963 {offsets = [0, 32], sizes = [2, 32], strides = [1, 1]} : vector<2x128xf32> to vector<2x32xf32>
    %967 = vector.extract_strided_slice %964 {offsets = [0, 64], sizes = [2, 32], strides = [1, 1]} : vector<2x128xf32> to vector<2x32xf32>
    %968 = vector.extract_strided_slice %963 {offsets = [0, 96], sizes = [2, 32], strides = [1, 1]} : vector<2x128xf32> to vector<2x32xf32>
    %969 = arith.mulf %966, %923 : vector<2x32xf32>
    %970 = arith.mulf %965, %967 : vector<2x32xf32>
    %971 = arith.addf %969, %970 : vector<2x32xf32>
    %972 = math.tanh %971 : vector<2x32xf32>
    %973 = arith.mulf %968, %972 : vector<2x32xf32>
    %974 = arith.negf %958 : vector<2x128xf32>
    %975 = math.exp %974 : vector<2x128xf32>
    %cst_285 = arith.constant 1.000000e+00 : f32
    %976 = vector.broadcast %cst_285 : f32 to vector<2x128xf32>
    %977 = arith.addf %976, %975 : vector<2x128xf32>
    %978 = arith.divf %976, %977 : vector<2x128xf32>
    %979 = math.tanh %958 : vector<2x128xf32>
    %980 = vector.extract_strided_slice %978 {offsets = [0, 0], sizes = [2, 32], strides = [1, 1]} : vector<2x128xf32> to vector<2x32xf32>
    %981 = vector.extract_strided_slice %978 {offsets = [0, 32], sizes = [2, 32], strides = [1, 1]} : vector<2x128xf32> to vector<2x32xf32>
    %982 = vector.extract_strided_slice %979 {offsets = [0, 64], sizes = [2, 32], strides = [1, 1]} : vector<2x128xf32> to vector<2x32xf32>
    %983 = vector.extract_strided_slice %978 {offsets = [0, 96], sizes = [2, 32], strides = [1, 1]} : vector<2x128xf32> to vector<2x32xf32>
    %984 = arith.mulf %981, %938 : vector<2x32xf32>
    %985 = arith.mulf %980, %982 : vector<2x32xf32>
    %986 = arith.addf %984, %985 : vector<2x32xf32>
    %987 = math.tanh %986 : vector<2x32xf32>
    %988 = arith.mulf %983, %987 : vector<2x32xf32>
    %989 = arith.index_cast %948 : i32 to index
    %c0_286 = arith.constant 0 : index
    %990 = vector.load %arg17[%989, %c0_286] : memref<16x64xf32, #tpu.memory_space<vmem>>, vector<2x32xf32>
    tpu.vector_store %arg17[%989, %c0_286], %973 {strides = array<i32>} : memref<16x64xf32, #tpu.memory_space<vmem>>, vector<2x32xf32>,
    %991 = arith.index_cast %950 : i32 to index
    %c32_287 = arith.constant 32 : index
    %992 = vector.load %arg17[%991, %c32_287] : memref<16x64xf32, #tpu.memory_space<vmem>>, vector<2x32xf32>
    tpu.vector_store %arg17[%991, %c32_287], %988 {strides = array<i32>} : memref<16x64xf32, #tpu.memory_space<vmem>>, vector<2x32xf32>,
    %993 = tpu.concatenate %973, %988 in 1 : vector<2x32xf32>, vector<2x32xf32> -> vector<2x64xf32>
    %c4_i32_288 = arith.constant 4 : i32
    %c0_289 = arith.constant 0 : index
    %c0_290 = arith.constant 0 : index
    %994 = vector.load %arg11[%c0_289, %c0_290] : memref<64x256xf32, #tpu.memory_space<vmem>>, vector<64x256xf32>
    %cst_291 = arith.constant dense<0.000000e+00> : vector<2x256xf32>
    %995 = tpu.matmul %993, %994, %cst_291 {dimension_numbers = #tpu.dot_dimension_numbers<[1], [0], [0], [1], [0, 0, 1, 1], [], []>} : vector<2x64xf32>, vector<64x256xf32>, vector<2x256xf32> -> vector<2x256xf32>
    %c2_i32_292 = arith.constant 2 : i32
    %996 = arith.muli %c4_i32_288, %c2_i32_292 : i32
    %c7_i32_293 = arith.constant 7 : i32
    %997 = arith.subi %c7_i32_293, %c4_i32_288 : i32
    %c2_i32_294 = arith.constant 2 : i32
    %998 = arith.muli %997, %c2_i32_294 : i32
    %999 = arith.index_cast %996 : i32 to index
    %c0_295 = arith.constant 0 : index
    %1000 = vector.load %arg18[%999, %c0_295] : memref<16x256xf32, #tpu.memory_space<vmem>>, vector<2x128xf32>
    %1001 = vector.extract_strided_slice %995 {offsets = [0, 0], sizes = [2, 128], strides = [1, 1]} : vector<2x256xf32> to vector<2x128xf32>
    %1002 = arith.addf %1000, %1001 : vector<2x128xf32>
    %1003 = arith.index_cast %998 : i32 to index
    %c128_296 = arith.constant 128 : index
    %1004 = vector.load %arg18[%1003, %c128_296] : memref<16x256xf32, #tpu.memory_space<vmem>>, vector<2x128xf32>
    %1005 = vector.extract_strided_slice %995 {offsets = [0, 128], sizes = [2, 128], strides = [1, 1]} : vector<2x256xf32> to vector<2x128xf32>
    %1006 = arith.addf %1004, %1005 : vector<2x128xf32>
    %1007 = arith.negf %1002 : vector<2x128xf32>
    %1008 = math.exp %1007 : vector<2x128xf32>
    %cst_297 = arith.constant 1.000000e+00 : f32
    %1009 = vector.broadcast %cst_297 : f32 to vector<2x128xf32>
    %1010 = arith.addf %1009, %1008 : vector<2x128xf32>
    %1011 = arith.divf %1009, %1010 : vector<2x128xf32>
    %1012 = math.tanh %1002 : vector<2x128xf32>
    %1013 = vector.extract_strided_slice %1011 {offsets = [0, 0], sizes = [2, 32], strides = [1, 1]} : vector<2x128xf32> to vector<2x32xf32>
    %1014 = vector.extract_strided_slice %1011 {offsets = [0, 32], sizes = [2, 32], strides = [1, 1]} : vector<2x128xf32> to vector<2x32xf32>
    %1015 = vector.extract_strided_slice %1012 {offsets = [0, 64], sizes = [2, 32], strides = [1, 1]} : vector<2x128xf32> to vector<2x32xf32>
    %1016 = vector.extract_strided_slice %1011 {offsets = [0, 96], sizes = [2, 32], strides = [1, 1]} : vector<2x128xf32> to vector<2x32xf32>
    %1017 = arith.mulf %1014, %971 : vector<2x32xf32>
    %1018 = arith.mulf %1013, %1015 : vector<2x32xf32>
    %1019 = arith.addf %1017, %1018 : vector<2x32xf32>
    %1020 = math.tanh %1019 : vector<2x32xf32>
    %1021 = arith.mulf %1016, %1020 : vector<2x32xf32>
    %1022 = arith.negf %1006 : vector<2x128xf32>
    %1023 = math.exp %1022 : vector<2x128xf32>
    %cst_298 = arith.constant 1.000000e+00 : f32
    %1024 = vector.broadcast %cst_298 : f32 to vector<2x128xf32>
    %1025 = arith.addf %1024, %1023 : vector<2x128xf32>
    %1026 = arith.divf %1024, %1025 : vector<2x128xf32>
    %1027 = math.tanh %1006 : vector<2x128xf32>
    %1028 = vector.extract_strided_slice %1026 {offsets = [0, 0], sizes = [2, 32], strides = [1, 1]} : vector<2x128xf32> to vector<2x32xf32>
    %1029 = vector.extract_strided_slice %1026 {offsets = [0, 32], sizes = [2, 32], strides = [1, 1]} : vector<2x128xf32> to vector<2x32xf32>
    %1030 = vector.extract_strided_slice %1027 {offsets = [0, 64], sizes = [2, 32], strides = [1, 1]} : vector<2x128xf32> to vector<2x32xf32>
    %1031 = vector.extract_strided_slice %1026 {offsets = [0, 96], sizes = [2, 32], strides = [1, 1]} : vector<2x128xf32> to vector<2x32xf32>
    %1032 = arith.mulf %1029, %986 : vector<2x32xf32>
    %1033 = arith.mulf %1028, %1030 : vector<2x32xf32>
    %1034 = arith.addf %1032, %1033 : vector<2x32xf32>
    %1035 = math.tanh %1034 : vector<2x32xf32>
    %1036 = arith.mulf %1031, %1035 : vector<2x32xf32>
    %1037 = arith.index_cast %996 : i32 to index
    %c0_299 = arith.constant 0 : index
    %1038 = vector.load %arg17[%1037, %c0_299] : memref<16x64xf32, #tpu.memory_space<vmem>>, vector<2x32xf32>
    tpu.vector_store %arg17[%1037, %c0_299], %1021 {strides = array<i32>} : memref<16x64xf32, #tpu.memory_space<vmem>>, vector<2x32xf32>,
    %1039 = arith.index_cast %998 : i32 to index
    %c32_300 = arith.constant 32 : index
    %1040 = vector.load %arg17[%1039, %c32_300] : memref<16x64xf32, #tpu.memory_space<vmem>>, vector<2x32xf32>
    tpu.vector_store %arg17[%1039, %c32_300], %1036 {strides = array<i32>} : memref<16x64xf32, #tpu.memory_space<vmem>>, vector<2x32xf32>,
    %1041 = tpu.concatenate %1021, %1036 in 1 : vector<2x32xf32>, vector<2x32xf32> -> vector<2x64xf32>
    %c5_i32_301 = arith.constant 5 : i32
    %c0_302 = arith.constant 0 : index
    %c0_303 = arith.constant 0 : index
    %1042 = vector.load %arg11[%c0_302, %c0_303] : memref<64x256xf32, #tpu.memory_space<vmem>>, vector<64x256xf32>
    %cst_304 = arith.constant dense<0.000000e+00> : vector<2x256xf32>
    %1043 = tpu.matmul %1041, %1042, %cst_304 {dimension_numbers = #tpu.dot_dimension_numbers<[1], [0], [0], [1], [0, 0, 1, 1], [], []>} : vector<2x64xf32>, vector<64x256xf32>, vector<2x256xf32> -> vector<2x256xf32>
    %c2_i32_305 = arith.constant 2 : i32
    %1044 = arith.muli %c5_i32_301, %c2_i32_305 : i32
    %c7_i32_306 = arith.constant 7 : i32
    %1045 = arith.subi %c7_i32_306, %c5_i32_301 : i32
    %c2_i32_307 = arith.constant 2 : i32
    %1046 = arith.muli %1045, %c2_i32_307 : i32
    %1047 = arith.index_cast %1044 : i32 to index
    %c0_308 = arith.constant 0 : index
    %1048 = vector.load %arg18[%1047, %c0_308] : memref<16x256xf32, #tpu.memory_space<vmem>>, vector<2x128xf32>
    %1049 = vector.extract_strided_slice %1043 {offsets = [0, 0], sizes = [2, 128], strides = [1, 1]} : vector<2x256xf32> to vector<2x128xf32>
    %1050 = arith.addf %1048, %1049 : vector<2x128xf32>
    %1051 = arith.index_cast %1046 : i32 to index
    %c128_309 = arith.constant 128 : index
    %1052 = vector.load %arg18[%1051, %c128_309] : memref<16x256xf32, #tpu.memory_space<vmem>>, vector<2x128xf32>
    %1053 = vector.extract_strided_slice %1043 {offsets = [0, 128], sizes = [2, 128], strides = [1, 1]} : vector<2x256xf32> to vector<2x128xf32>
    %1054 = arith.addf %1052, %1053 : vector<2x128xf32>
    %1055 = arith.negf %1050 : vector<2x128xf32>
    %1056 = math.exp %1055 : vector<2x128xf32>
    %cst_310 = arith.constant 1.000000e+00 : f32
    %1057 = vector.broadcast %cst_310 : f32 to vector<2x128xf32>
    %1058 = arith.addf %1057, %1056 : vector<2x128xf32>
    %1059 = arith.divf %1057, %1058 : vector<2x128xf32>
    %1060 = math.tanh %1050 : vector<2x128xf32>
    %1061 = vector.extract_strided_slice %1059 {offsets = [0, 0], sizes = [2, 32], strides = [1, 1]} : vector<2x128xf32> to vector<2x32xf32>
    %1062 = vector.extract_strided_slice %1059 {offsets = [0, 32], sizes = [2, 32], strides = [1, 1]} : vector<2x128xf32> to vector<2x32xf32>
    %1063 = vector.extract_strided_slice %1060 {offsets = [0, 64], sizes = [2, 32], strides = [1, 1]} : vector<2x128xf32> to vector<2x32xf32>
    %1064 = vector.extract_strided_slice %1059 {offsets = [0, 96], sizes = [2, 32], strides = [1, 1]} : vector<2x128xf32> to vector<2x32xf32>
    %1065 = arith.mulf %1062, %1019 : vector<2x32xf32>
    %1066 = arith.mulf %1061, %1063 : vector<2x32xf32>
    %1067 = arith.addf %1065, %1066 : vector<2x32xf32>
    %1068 = math.tanh %1067 : vector<2x32xf32>
    %1069 = arith.mulf %1064, %1068 : vector<2x32xf32>
    %1070 = arith.negf %1054 : vector<2x128xf32>
    %1071 = math.exp %1070 : vector<2x128xf32>
    %cst_311 = arith.constant 1.000000e+00 : f32
    %1072 = vector.broadcast %cst_311 : f32 to vector<2x128xf32>
    %1073 = arith.addf %1072, %1071 : vector<2x128xf32>
    %1074 = arith.divf %1072, %1073 : vector<2x128xf32>
    %1075 = math.tanh %1054 : vector<2x128xf32>
    %1076 = vector.extract_strided_slice %1074 {offsets = [0, 0], sizes = [2, 32], strides = [1, 1]} : vector<2x128xf32> to vector<2x32xf32>
    %1077 = vector.extract_strided_slice %1074 {offsets = [0, 32], sizes = [2, 32], strides = [1, 1]} : vector<2x128xf32> to vector<2x32xf32>
    %1078 = vector.extract_strided_slice %1075 {offsets = [0, 64], sizes = [2, 32], strides = [1, 1]} : vector<2x128xf32> to vector<2x32xf32>
    %1079 = vector.extract_strided_slice %1074 {offsets = [0, 96], sizes = [2, 32], strides = [1, 1]} : vector<2x128xf32> to vector<2x32xf32>
    %1080 = arith.mulf %1077, %1034 : vector<2x32xf32>
    %1081 = arith.mulf %1076, %1078 : vector<2x32xf32>
    %1082 = arith.addf %1080, %1081 : vector<2x32xf32>
    %1083 = math.tanh %1082 : vector<2x32xf32>
    %1084 = arith.mulf %1079, %1083 : vector<2x32xf32>
    %1085 = arith.index_cast %1044 : i32 to index
    %c0_312 = arith.constant 0 : index
    %1086 = vector.load %arg17[%1085, %c0_312] : memref<16x64xf32, #tpu.memory_space<vmem>>, vector<2x32xf32>
    tpu.vector_store %arg17[%1085, %c0_312], %1069 {strides = array<i32>} : memref<16x64xf32, #tpu.memory_space<vmem>>, vector<2x32xf32>,
    %1087 = arith.index_cast %1046 : i32 to index
    %c32_313 = arith.constant 32 : index
    %1088 = vector.load %arg17[%1087, %c32_313] : memref<16x64xf32, #tpu.memory_space<vmem>>, vector<2x32xf32>
    tpu.vector_store %arg17[%1087, %c32_313], %1084 {strides = array<i32>} : memref<16x64xf32, #tpu.memory_space<vmem>>, vector<2x32xf32>,
    %1089 = tpu.concatenate %1069, %1084 in 1 : vector<2x32xf32>, vector<2x32xf32> -> vector<2x64xf32>
    %c6_i32_314 = arith.constant 6 : i32
    %c0_315 = arith.constant 0 : index
    %c0_316 = arith.constant 0 : index
    %1090 = vector.load %arg11[%c0_315, %c0_316] : memref<64x256xf32, #tpu.memory_space<vmem>>, vector<64x256xf32>
    %cst_317 = arith.constant dense<0.000000e+00> : vector<2x256xf32>
    %1091 = tpu.matmul %1089, %1090, %cst_317 {dimension_numbers = #tpu.dot_dimension_numbers<[1], [0], [0], [1], [0, 0, 1, 1], [], []>} : vector<2x64xf32>, vector<64x256xf32>, vector<2x256xf32> -> vector<2x256xf32>
    %c2_i32_318 = arith.constant 2 : i32
    %1092 = arith.muli %c6_i32_314, %c2_i32_318 : i32
    %c7_i32_319 = arith.constant 7 : i32
    %1093 = arith.subi %c7_i32_319, %c6_i32_314 : i32
    %c2_i32_320 = arith.constant 2 : i32
    %1094 = arith.muli %1093, %c2_i32_320 : i32
    %1095 = arith.index_cast %1092 : i32 to index
    %c0_321 = arith.constant 0 : index
    %1096 = vector.load %arg18[%1095, %c0_321] : memref<16x256xf32, #tpu.memory_space<vmem>>, vector<2x128xf32>
    %1097 = vector.extract_strided_slice %1091 {offsets = [0, 0], sizes = [2, 128], strides = [1, 1]} : vector<2x256xf32> to vector<2x128xf32>
    %1098 = arith.addf %1096, %1097 : vector<2x128xf32>
    %1099 = arith.index_cast %1094 : i32 to index
    %c128_322 = arith.constant 128 : index
    %1100 = vector.load %arg18[%1099, %c128_322] : memref<16x256xf32, #tpu.memory_space<vmem>>, vector<2x128xf32>
    %1101 = vector.extract_strided_slice %1091 {offsets = [0, 128], sizes = [2, 128], strides = [1, 1]} : vector<2x256xf32> to vector<2x128xf32>
    %1102 = arith.addf %1100, %1101 : vector<2x128xf32>
    %1103 = arith.negf %1098 : vector<2x128xf32>
    %1104 = math.exp %1103 : vector<2x128xf32>
    %cst_323 = arith.constant 1.000000e+00 : f32
    %1105 = vector.broadcast %cst_323 : f32 to vector<2x128xf32>
    %1106 = arith.addf %1105, %1104 : vector<2x128xf32>
    %1107 = arith.divf %1105, %1106 : vector<2x128xf32>
    %1108 = math.tanh %1098 : vector<2x128xf32>
    %1109 = vector.extract_strided_slice %1107 {offsets = [0, 0], sizes = [2, 32], strides = [1, 1]} : vector<2x128xf32> to vector<2x32xf32>
    %1110 = vector.extract_strided_slice %1107 {offsets = [0, 32], sizes = [2, 32], strides = [1, 1]} : vector<2x128xf32> to vector<2x32xf32>
    %1111 = vector.extract_strided_slice %1108 {offsets = [0, 64], sizes = [2, 32], strides = [1, 1]} : vector<2x128xf32> to vector<2x32xf32>
    %1112 = vector.extract_strided_slice %1107 {offsets = [0, 96], sizes = [2, 32], strides = [1, 1]} : vector<2x128xf32> to vector<2x32xf32>
    %1113 = arith.mulf %1110, %1067 : vector<2x32xf32>
    %1114 = arith.mulf %1109, %1111 : vector<2x32xf32>
    %1115 = arith.addf %1113, %1114 : vector<2x32xf32>
    %1116 = math.tanh %1115 : vector<2x32xf32>
    %1117 = arith.mulf %1112, %1116 : vector<2x32xf32>
    %1118 = arith.negf %1102 : vector<2x128xf32>
    %1119 = math.exp %1118 : vector<2x128xf32>
    %cst_324 = arith.constant 1.000000e+00 : f32
    %1120 = vector.broadcast %cst_324 : f32 to vector<2x128xf32>
    %1121 = arith.addf %1120, %1119 : vector<2x128xf32>
    %1122 = arith.divf %1120, %1121 : vector<2x128xf32>
    %1123 = math.tanh %1102 : vector<2x128xf32>
    %1124 = vector.extract_strided_slice %1122 {offsets = [0, 0], sizes = [2, 32], strides = [1, 1]} : vector<2x128xf32> to vector<2x32xf32>
    %1125 = vector.extract_strided_slice %1122 {offsets = [0, 32], sizes = [2, 32], strides = [1, 1]} : vector<2x128xf32> to vector<2x32xf32>
    %1126 = vector.extract_strided_slice %1123 {offsets = [0, 64], sizes = [2, 32], strides = [1, 1]} : vector<2x128xf32> to vector<2x32xf32>
    %1127 = vector.extract_strided_slice %1122 {offsets = [0, 96], sizes = [2, 32], strides = [1, 1]} : vector<2x128xf32> to vector<2x32xf32>
    %1128 = arith.mulf %1125, %1082 : vector<2x32xf32>
    %1129 = arith.mulf %1124, %1126 : vector<2x32xf32>
    %1130 = arith.addf %1128, %1129 : vector<2x32xf32>
    %1131 = math.tanh %1130 : vector<2x32xf32>
    %1132 = arith.mulf %1127, %1131 : vector<2x32xf32>
    %1133 = arith.index_cast %1092 : i32 to index
    %c0_325 = arith.constant 0 : index
    %1134 = vector.load %arg17[%1133, %c0_325] : memref<16x64xf32, #tpu.memory_space<vmem>>, vector<2x32xf32>
    tpu.vector_store %arg17[%1133, %c0_325], %1117 {strides = array<i32>} : memref<16x64xf32, #tpu.memory_space<vmem>>, vector<2x32xf32>,
    %1135 = arith.index_cast %1094 : i32 to index
    %c32_326 = arith.constant 32 : index
    %1136 = vector.load %arg17[%1135, %c32_326] : memref<16x64xf32, #tpu.memory_space<vmem>>, vector<2x32xf32>
    tpu.vector_store %arg17[%1135, %c32_326], %1132 {strides = array<i32>} : memref<16x64xf32, #tpu.memory_space<vmem>>, vector<2x32xf32>,
    %1137 = tpu.concatenate %1117, %1132 in 1 : vector<2x32xf32>, vector<2x32xf32> -> vector<2x64xf32>
    %c7_i32_327 = arith.constant 7 : i32
    %c0_328 = arith.constant 0 : index
    %c0_329 = arith.constant 0 : index
    %1138 = vector.load %arg11[%c0_328, %c0_329] : memref<64x256xf32, #tpu.memory_space<vmem>>, vector<64x256xf32>
    %cst_330 = arith.constant dense<0.000000e+00> : vector<2x256xf32>
    %1139 = tpu.matmul %1137, %1138, %cst_330 {dimension_numbers = #tpu.dot_dimension_numbers<[1], [0], [0], [1], [0, 0, 1, 1], [], []>} : vector<2x64xf32>, vector<64x256xf32>, vector<2x256xf32> -> vector<2x256xf32>
    %c2_i32_331 = arith.constant 2 : i32
    %1140 = arith.muli %c7_i32_327, %c2_i32_331 : i32
    %c7_i32_332 = arith.constant 7 : i32
    %1141 = arith.subi %c7_i32_332, %c7_i32_327 : i32
    %c2_i32_333 = arith.constant 2 : i32
    %1142 = arith.muli %1141, %c2_i32_333 : i32
    %1143 = arith.index_cast %1140 : i32 to index
    %c0_334 = arith.constant 0 : index
    %1144 = vector.load %arg18[%1143, %c0_334] : memref<16x256xf32, #tpu.memory_space<vmem>>, vector<2x128xf32>
    %1145 = vector.extract_strided_slice %1139 {offsets = [0, 0], sizes = [2, 128], strides = [1, 1]} : vector<2x256xf32> to vector<2x128xf32>
    %1146 = arith.addf %1144, %1145 : vector<2x128xf32>
    %1147 = arith.index_cast %1142 : i32 to index
    %c128_335 = arith.constant 128 : index
    %1148 = vector.load %arg18[%1147, %c128_335] : memref<16x256xf32, #tpu.memory_space<vmem>>, vector<2x128xf32>
    %1149 = vector.extract_strided_slice %1139 {offsets = [0, 128], sizes = [2, 128], strides = [1, 1]} : vector<2x256xf32> to vector<2x128xf32>
    %1150 = arith.addf %1148, %1149 : vector<2x128xf32>
    %1151 = arith.negf %1146 : vector<2x128xf32>
    %1152 = math.exp %1151 : vector<2x128xf32>
    %cst_336 = arith.constant 1.000000e+00 : f32
    %1153 = vector.broadcast %cst_336 : f32 to vector<2x128xf32>
    %1154 = arith.addf %1153, %1152 : vector<2x128xf32>
    %1155 = arith.divf %1153, %1154 : vector<2x128xf32>
    %1156 = math.tanh %1146 : vector<2x128xf32>
    %1157 = vector.extract_strided_slice %1155 {offsets = [0, 0], sizes = [2, 32], strides = [1, 1]} : vector<2x128xf32> to vector<2x32xf32>
    %1158 = vector.extract_strided_slice %1155 {offsets = [0, 32], sizes = [2, 32], strides = [1, 1]} : vector<2x128xf32> to vector<2x32xf32>
    %1159 = vector.extract_strided_slice %1156 {offsets = [0, 64], sizes = [2, 32], strides = [1, 1]} : vector<2x128xf32> to vector<2x32xf32>
    %1160 = vector.extract_strided_slice %1155 {offsets = [0, 96], sizes = [2, 32], strides = [1, 1]} : vector<2x128xf32> to vector<2x32xf32>
    %1161 = arith.mulf %1158, %1115 : vector<2x32xf32>
    %1162 = arith.mulf %1157, %1159 : vector<2x32xf32>
    %1163 = arith.addf %1161, %1162 : vector<2x32xf32>
    %1164 = math.tanh %1163 : vector<2x32xf32>
    %1165 = arith.mulf %1160, %1164 : vector<2x32xf32>
    %1166 = arith.negf %1150 : vector<2x128xf32>
    %1167 = math.exp %1166 : vector<2x128xf32>
    %cst_337 = arith.constant 1.000000e+00 : f32
    %1168 = vector.broadcast %cst_337 : f32 to vector<2x128xf32>
    %1169 = arith.addf %1168, %1167 : vector<2x128xf32>
    %1170 = arith.divf %1168, %1169 : vector<2x128xf32>
    %1171 = math.tanh %1150 : vector<2x128xf32>
    %1172 = vector.extract_strided_slice %1170 {offsets = [0, 0], sizes = [2, 32], strides = [1, 1]} : vector<2x128xf32> to vector<2x32xf32>
    %1173 = vector.extract_strided_slice %1170 {offsets = [0, 32], sizes = [2, 32], strides = [1, 1]} : vector<2x128xf32> to vector<2x32xf32>
    %1174 = vector.extract_strided_slice %1171 {offsets = [0, 64], sizes = [2, 32], strides = [1, 1]} : vector<2x128xf32> to vector<2x32xf32>
    %1175 = vector.extract_strided_slice %1170 {offsets = [0, 96], sizes = [2, 32], strides = [1, 1]} : vector<2x128xf32> to vector<2x32xf32>
    %1176 = arith.mulf %1173, %1130 : vector<2x32xf32>
    %1177 = arith.mulf %1172, %1174 : vector<2x32xf32>
    %1178 = arith.addf %1176, %1177 : vector<2x32xf32>
    %1179 = math.tanh %1178 : vector<2x32xf32>
    %1180 = arith.mulf %1175, %1179 : vector<2x32xf32>
    %1181 = arith.index_cast %1140 : i32 to index
    %c0_338 = arith.constant 0 : index
    %1182 = vector.load %arg17[%1181, %c0_338] : memref<16x64xf32, #tpu.memory_space<vmem>>, vector<2x32xf32>
    tpu.vector_store %arg17[%1181, %c0_338], %1165 {strides = array<i32>} : memref<16x64xf32, #tpu.memory_space<vmem>>, vector<2x32xf32>,
    %1183 = arith.index_cast %1142 : i32 to index
    %c32_339 = arith.constant 32 : index
    %1184 = vector.load %arg17[%1183, %c32_339] : memref<16x64xf32, #tpu.memory_space<vmem>>, vector<2x32xf32>
    tpu.vector_store %arg17[%1183, %c32_339], %1180 {strides = array<i32>} : memref<16x64xf32, #tpu.memory_space<vmem>>, vector<2x32xf32>,
    %1185 = tpu.concatenate %1165, %1180 in 1 : vector<2x32xf32>, vector<2x32xf32> -> vector<2x64xf32>
    %c8_i32_340 = arith.constant 8 : i32
    %c0_341 = arith.constant 0 : index
    %c0_342 = arith.constant 0 : index
    %1186 = vector.load %arg17[%c0_341, %c0_342] : memref<16x64xf32, #tpu.memory_space<vmem>>, vector<16x64xf32>
    %c0_343 = arith.constant 0 : index
    %c0_344 = arith.constant 0 : index
    %1187 = vector.load %arg13[%c0_343, %c0_344] : memref<64x3xf32, #tpu.memory_space<vmem>>, vector<64x3xf32>
    %cst_345 = arith.constant dense<0.000000e+00> : vector<16x3xf32>
    %1188 = tpu.matmul %1186, %1187, %cst_345 {dimension_numbers = #tpu.dot_dimension_numbers<[1], [0], [0], [1], [0, 0, 1, 1], [], []>} : vector<16x64xf32>, vector<64x3xf32>, vector<16x3xf32> -> vector<16x3xf32>
    %c0_346 = arith.constant 0 : index
    %c0_347 = arith.constant 0 : index
    %1189 = vector.load %arg14[%c0_346, %c0_347] : memref<1x3xf32, #tpu.memory_space<vmem>>, vector<1x3xf32>
    %1190 = vector.broadcast %1189 : vector<1x3xf32> to vector<16x3xf32>
    %1191 = arith.addf %1188, %1190 : vector<16x3xf32>
    %1192 = vector.extract_strided_slice %1191 {offsets = [0, 0], sizes = [16, 2], strides = [1, 1]} : vector<16x3xf32> to vector<16x2xf32>
    %1193 = arith.negf %1192 : vector<16x2xf32>
    %1194 = math.exp %1193 : vector<16x2xf32>
    %cst_348 = arith.constant 1.000000e+00 : f32
    %1195 = vector.broadcast %cst_348 : f32 to vector<16x2xf32>
    %1196 = arith.addf %1195, %1194 : vector<16x2xf32>
    %1197 = arith.divf %1195, %1196 : vector<16x2xf32>
    %c0_349 = arith.constant 0 : index
    %c0_350 = arith.constant 0 : index
    %1198 = vector.load %arg15[%c0_349, %c0_350] : memref<16x2xf32, #tpu.memory_space<vmem>>, vector<16x2xf32>
    tpu.vector_store %arg15[%c0_349, %c0_350], %1197 {strides = array<i32>} : memref<16x2xf32, #tpu.memory_space<vmem>>, vector<16x2xf32>,
    %1199 = vector.extract_strided_slice %1191 {offsets = [0, 2], sizes = [16, 1], strides = [1, 1]} : vector<16x3xf32> to vector<16x1xf32>
    %c0_351 = arith.constant 0 : index
    %c0_352 = arith.constant 0 : index
    %1200 = vector.load %arg16[%c0_351, %c0_352] : memref<16x1xf32, #tpu.memory_space<vmem>>, vector<16x1xf32>
    tpu.vector_store %arg16[%c0_351, %c0_352], %1199 {strides = array<i32>} : memref<16x1xf32, #tpu.memory_space<vmem>>, vector<16x1xf32>,
    return
  }
  func.func @transform_0(%arg0: i32) -> (i32, i32) {
    %c0_i32 = arith.constant 0 : i32
    %c0_i32_0 = arith.constant 0 : i32
    %c0_i32_1 = arith.constant 0 : i32
    return %c0_i32, %c0_i32_0 : i32, i32
  }
  func.func @transform_1(%arg0: i32) -> (i32, i32) {
    %c0_i32 = arith.constant 0 : i32
    %c0_i32_0 = arith.constant 0 : i32
    %c0_i32_1 = arith.constant 0 : i32
    return %c0_i32, %c0_i32_0 : i32, i32
  }
  func.func @transform_2(%arg0: i32) -> (i32, i32) {
    %c0_i32 = arith.constant 0 : i32
    %c0_i32_0 = arith.constant 0 : i32
    %c0_i32_1 = arith.constant 0 : i32
    return %c0_i32, %c0_i32_0 : i32, i32
  }
  func.func @transform_3(%arg0: i32) -> (i32, i32) {
    %c0_i32 = arith.constant 0 : i32
    %c0_i32_0 = arith.constant 0 : i32
    %c0_i32_1 = arith.constant 0 : i32
    return %c0_i32, %c0_i32_0 : i32, i32
  }
  func.func @transform_4(%arg0: i32) -> (i32, i32) {
    %c0_i32 = arith.constant 0 : i32
    %c0_i32_0 = arith.constant 0 : i32
    %c0_i32_1 = arith.constant 0 : i32
    return %c0_i32, %c0_i32_0 : i32, i32
  }
  func.func @transform_5(%arg0: i32) -> (i32, i32) {
    %c0_i32 = arith.constant 0 : i32
    %c0_i32_0 = arith.constant 0 : i32
    %c0_i32_1 = arith.constant 0 : i32
    return %c0_i32, %c0_i32_0 : i32, i32
  }
  func.func @transform_6(%arg0: i32) -> (i32, i32) {
    %c0_i32 = arith.constant 0 : i32
    %c0_i32_0 = arith.constant 0 : i32
    %c0_i32_1 = arith.constant 0 : i32
    return %c0_i32, %c0_i32_0 : i32, i32
  }
  func.func @transform_7(%arg0: i32) -> (i32, i32) {
    %c0_i32 = arith.constant 0 : i32
    %c0_i32_0 = arith.constant 0 : i32
    %c0_i32_1 = arith.constant 0 : i32
    return %c0_i32, %c0_i32_0 : i32, i32
  }
  func.func @transform_8(%arg0: i32) -> (i32, i32) {
    %c0_i32 = arith.constant 0 : i32
    %c0_i32_0 = arith.constant 0 : i32
    %c0_i32_1 = arith.constant 0 : i32
    return %c0_i32, %c0_i32_0 : i32, i32
  }
  func.func @transform_9(%arg0: i32) -> (i32, i32) {
    %c0_i32 = arith.constant 0 : i32
    %c0_i32_0 = arith.constant 0 : i32
    %c0_i32_1 = arith.constant 0 : i32
    return %c0_i32, %c0_i32_0 : i32, i32
  }
  func.func @transform_10(%arg0: i32) -> (i32, i32) {
    %c0_i32 = arith.constant 0 : i32
    %c0_i32_0 = arith.constant 0 : i32
    %c0_i32_1 = arith.constant 0 : i32
    return %c0_i32, %c0_i32_0 : i32, i32
  }
  func.func @transform_11(%arg0: i32) -> (i32, i32) {
    %c0_i32 = arith.constant 0 : i32
    %c0_i32_0 = arith.constant 0 : i32
    %c0_i32_1 = arith.constant 0 : i32
    return %c0_i32, %c0_i32_0 : i32, i32
  }
  func.func @transform_12(%arg0: i32) -> (i32, i32) {
    %c0_i32 = arith.constant 0 : i32
    %c0_i32_0 = arith.constant 0 : i32
    %c0_i32_1 = arith.constant 0 : i32
    return %c0_i32, %c0_i32_0 : i32, i32
  }
  func.func @transform_13(%arg0: i32) -> (i32, i32) {
    %c0_i32 = arith.constant 0 : i32
    %c0_i32_0 = arith.constant 0 : i32
    %c0_i32_1 = arith.constant 0 : i32
    return %c0_i32, %c0_i32_0 : i32, i32
  }
  func.func @transform_14(%arg0: i32) -> (i32, i32) {
    %c0_i32 = arith.constant 0 : i32
    %c0_i32_0 = arith.constant 0 : i32
    %c0_i32_1 = arith.constant 0 : i32
    return %c0_i32, %c0_i32_0 : i32, i32
  }
  func.func @transform_15(%arg0: i32) -> (i32, i32) {
    %c0_i32 = arith.constant 0 : i32
    %c0_i32_0 = arith.constant 0 : i32
    %c0_i32_1 = arith.constant 0 : i32
    return %c0_i32, %c0_i32_0 : i32, i32
  }
}

</mosaic_0001>

<bundles_post_ra>
// kernel: myrnn_forward.1
= control target key start
LH: loop header
LB: loop body
LE: loop exit
PB: predicated region body
PF: predicated region fallthrough
CT: control target
= control target key end

     0   :  { %s7029_s0 = inlined_call_operand.vmem [shape: f32[16,16], index: 0, kind: input, shape index: {}]   ;;  %s7030_s1 = inlined_call_operand.vmem [shape: f32[16,32], index: 1, kind: input, shape index: {}]   ;;  %s7031_s2 = inlined_call_operand.hbm [shape: f32[1,32], index: 2, kind: input, shape index: {}]   ;;  %s7032_s3 = inlined_call_operand.vmem [shape: f32[32,256], index: 3, kind: input, shape index: {}]   ;;  %s7033_s4 = inlined_call_operand.hbm [shape: f32[64,256], index: 4, kind: input, shape index: {}]   ;;  %s7034_s5 = inlined_call_operand.vmem [shape: f32[1,256], index: 5, kind: input, shape index: {}]   ;;  %s7035_s6 = inlined_call_operand.hbm [shape: f32[64,256], index: 6, kind: input, shape index: {}]   ;;  %s7036_s7 = inlined_call_operand.hbm [shape: f32[64,256], index: 7, kind: input, shape index: {}]   ;;  %s7037_s8 = inlined_call_operand.hbm [shape: f32[1,256], index: 8, kind: input, shape index: {}]   ;;  %s7038_s9 = inlined_call_operand.hbm [shape: f32[64,256], index: 9, kind: input, shape index: {}]   ;;  %s7039_s10 = inlined_call_operand.hbm [shape: f32[64,256], index: 10, kind: input, shape index: {}]   ;;  %s7040_s11 = inlined_call_operand.hbm [shape: f32[1,256], index: 11, kind: input, shape index: {}]   ;;  %s7041_s12 = inlined_call_operand.vmem [shape: f32[64,3], index: 12, kind: input, shape index: {}]   ;;  %s7042_s13 = inlined_call_operand.hbm [shape: f32[1,3], index: 13, kind: input, shape index: {}]   ;;  %s7043_s14 = inlined_call_operand.vmem [shape: f32[16,2], index: 14, kind: output, shape index: {0}]   ;;  %s7044_s15 = inlined_call_operand.vmem [shape: f32[16,1], index: 15, kind: output, shape index: {1}]  }
   0x1   :  { %7046 = sst [smem:[#allocation23_spill]] %s7044_s15 }
   0x2   :  { %21 = vsyncpa [#allocation5], 0 }
   0x3   :  { %22 = vsyncpa [#allocation7], 0 }
   0x4   :  { %23 = vsyncpa [#allocation10], 0 }
   0x5   :  { %24 = vsyncpa [#allocation13], 0 }
   0x6   :  { %25 = vsyncpa [#allocation16], 0  ;;  %s5924_s18 = smov [#allocation6]   ;;  %s5716_s22 = scalar_lea.hbm %s7033_s4, 2048 }
   0x7   :  { %s47_s19 = sshll.u32 %s5924_s18, 4  ;;  %p5717_p0 = scmp.ne.s32.totalorder %s7033_s4, %s5716_s22  ;;  %s48_s19 = int_to_ptr.vmem [resolvable:$true] %s47_s19 }
   0x8   :  { %p5720_p1 = scmp.lt.u32.totalorder %s5716_s22, %s7033_s4 }
   0xa   :  { %p5722_p2 = pnand %p5720_p1, %p5717_p0 }
   0xc   :  { %5725 = shalt.err (!%p5722_p2)
}
   0xd   :  { %s5726_s27 = scalar_lea.vmem %s48_s19, 2048  ;;  %p5731_p4 = scmp.lt.s32.totalorder %s48_s19, %s48_s19 }
   0xe   :  { %p5727_p3 = scmp.ne.s32.totalorder %s48_s19, %s5726_s27  ;;  %p5732_p5 = scmp.lt.s32.totalorder %s5726_s27, %s5726_s27 }
  0x10   :  { %p5733_p6 = por %p5732_p5, %p5731_p4 }
  0x12   :  { %p5734_p7 = pnand %p5733_p6, %p5727_p3 }
  0x14   :  { %5737 = shalt.err (!%p5734_p7)
}
  0x15   :  { %s5925_s28 = smov 256   ;;  %s5926_s29 = smov 16  }
  0x16   :  { %53 = dma.hbm_to_vmem [thread:$0]  %s7033_s4, 2048, %s48_s19, [#allocation7], %s5925_s28, %s5925_s28, %s5926_s29  }
  0x17   :  { %s5927_s17 = smov [#allocation9]   ;;  %s5928_s20 = smov [#allocation12]  }
  0x18   :  { %s73_s18 = sshll.u32 %s5927_s17, 4  ;;  %s95_s21 = sshll.u32 %s5928_s20, 4  ;;  %s74_s18 = int_to_ptr.vmem [resolvable:$true] %s73_s18  ;;  %s96_s21 = int_to_ptr.vmem [resolvable:$true] %s95_s21 }
  0x19   :  { %s5738_s24 = scalar_lea.hbm %s7036_s7, 2048 }
  0x1a   :  { %p5739_p8 = scmp.ne.s32.totalorder %s7036_s7, %s5738_s24  ;;  %p5742_p9 = scmp.lt.u32.totalorder %s5738_s24, %s7036_s7 }
  0x1c   :  { %p5744_p10 = pnand %p5742_p9, %p5739_p8 }
  0x1e   :  { %5747 = shalt.err (!%p5744_p10)
}
  0x1f   :  { %s5748_s4 = scalar_lea.vmem %s74_s18, 2048  ;;  %p5753_p12 = scmp.lt.s32.totalorder %s74_s18, %s74_s18 }
  0x20   :  { %p5749_p11 = scmp.ne.s32.totalorder %s74_s18, %s5748_s4  ;;  %p5754_p13 = scmp.lt.s32.totalorder %s5748_s4, %s5748_s4 }
  0x22   :  { %p5755_p0 = por %p5754_p13, %p5753_p12 }
  0x24   :  { %p5756_p1 = pnand %p5755_p0, %p5749_p11 }
  0x26   :  { %5759 = shalt.err (!%p5756_p1)
}
  0x27   :  { %79 = dma.hbm_to_vmem [thread:$0]  %s7036_s7, 2048, %s74_s18, [#allocation10], %s5925_s28, %s5925_s28, %s5926_s29  }
  0x28   :  { %s5760_s17 = scalar_lea.hbm %s7038_s9, 2048 }
  0x29   :  { %p5761_p2 = scmp.ne.s32.totalorder %s7038_s9, %s5760_s17  ;;  %p5764_p3 = scmp.lt.u32.totalorder %s5760_s17, %s7038_s9 }
  0x2b   :  { %p5766_p4 = pnand %p5764_p3, %p5761_p2 }
  0x2d   :  { %5769 = shalt.err (!%p5766_p4)
}
  0x2e   :  { %s5770_s25 = scalar_lea.vmem %s96_s21, 2048  ;;  %p5775_p6 = scmp.lt.s32.totalorder %s96_s21, %s96_s21 }
  0x2f   :  { %p5771_p5 = scmp.ne.s32.totalorder %s96_s21, %s5770_s25  ;;  %p5776_p7 = scmp.lt.s32.totalorder %s5770_s25, %s5770_s25 }
  0x31   :  { %p5777_p8 = por %p5776_p7, %p5775_p6 }
  0x33   :  { %p5778_p9 = pnand %p5777_p8, %p5771_p5 }
  0x35   :  { %5781 = shalt.err (!%p5778_p9)
}
  0x36   :  { %101 = dma.hbm_to_vmem [thread:$0]  %s7038_s9, 2048, %s96_s21, [#allocation13], %s5925_s28, %s5925_s28, %s5926_s29  }
  0x37   :  { %s5929_s26 = smov [#allocation15]   ;;  %s5930_s4 = smov [#allocation4]  }
  0x38   :  { %s120_s27 = sshll.u32 %s5929_s26, 4  ;;  %s36_s19 = sshll.u32 %s5930_s4, 4  ;;  %s121_s27 = int_to_ptr.vmem [resolvable:$true] %s120_s27  ;;  %s37_s19 = int_to_ptr.vmem [resolvable:$true] %s36_s19 }
  0x39   :  { %s5782_s15 = scalar_lea.hbm %s7040_s11, 32 }
  0x3a   :  { %p5783_p10 = scmp.ne.s32.totalorder %s7040_s11, %s5782_s15  ;;  %p5786_p11 = scmp.lt.u32.totalorder %s5782_s15, %s7040_s11 }
  0x3c   :  { %p5788_p12 = pnand %p5786_p11, %p5783_p10 }
  0x3e   :  { %5791 = shalt.err (!%p5788_p12)
}
  0x3f   :  { %s5792_s9 = scalar_lea.vmem %s121_s27, 32  ;;  %p5797_p0 = scmp.lt.s32.totalorder %s121_s27, %s121_s27 }
  0x40   :  { %p5793_p13 = scmp.ne.s32.totalorder %s121_s27, %s5792_s9  ;;  %p5798_p1 = scmp.lt.s32.totalorder %s5792_s9, %s5792_s9 }
  0x42   :  { %p5799_p2 = por %p5798_p1, %p5797_p0 }
  0x44   :  { %p5800_p3 = pnand %p5799_p2, %p5793_p13 }
  0x46   :  { %5803 = shalt.err (!%p5800_p3)
}
  0x47   :  { %123 = dma.hbm_to_vmem [thread:$0]  %s7040_s11, 32, %s121_s27, [#allocation16]  }
  0x48   :  { %s5804_s18 = scalar_lea.hbm %s7031_s2, 16 }
  0x49   :  { %p5805_p4 = scmp.ne.s32.totalorder %s7031_s2, %s5804_s18  ;;  %p5808_p5 = scmp.lt.u32.totalorder %s5804_s18, %s7031_s2 }
  0x4b   :  { %p5810_p6 = pnand %p5808_p5, %p5805_p4 }
  0x4d   :  { %5813 = shalt.err (!%p5810_p6)
}
  0x4e   :  { %s5814_s15 = scalar_lea.vmem %s37_s19, 16  ;;  %s5818_s17 = scalar_lea.vmem %s37_s19, 32 }
  0x4f   :  { %p5815_p7 = scmp.ne.s32.totalorder %s37_s19, %s5814_s15  ;;  %p5819_p8 = scmp.lt.s32.totalorder %s37_s19, %s37_s19 }
  0x50   :  { %p5820_p9 = scmp.lt.s32.totalorder %s5818_s17, %s5814_s15 }
  0x52   :  { %p5821_p10 = por %p5820_p9, %p5819_p8 }
  0x54   :  { %p5822_p11 = pnand %p5821_p10, %p5815_p7 }
  0x56   :  { %5825 = shalt.err (!%p5822_p11)
}
  0x57   :  { %39 = dma.hbm_to_vmem [thread:$0]  %s7031_s2, 16, %s37_s19, [#allocation5]  }
  0x58   :  { %s5931_s20 = smov [#allocation8]   ;;  %s5932_s23 = smov [#allocation11]  }
  0x59   :  { %s61_s22 = sshll.u32 %s5931_s20, 4  ;;  %s86_s9 = sshll.u32 %s5932_s23, 4  ;;  %s62_s22 = int_to_ptr.vmem [resolvable:$true] %s61_s22  ;;  %s87_s9 = int_to_ptr.vmem [resolvable:$true] %s86_s9 }
  0x5a   :  { %s5826_s25 = scalar_lea.hbm %s7035_s6, 2048 }
  0x5b   :  { %p5827_p12 = scmp.ne.s32.totalorder %s7035_s6, %s5826_s25  ;;  %p5830_p13 = scmp.lt.u32.totalorder %s5826_s25, %s7035_s6 }
  0x5d   :  { %p5832_p0 = pnand %p5830_p13, %p5827_p12 }
  0x5f   :  { %5835 = shalt.err (!%p5832_p0)
}
  0x60   :  { %s5836_s2 = scalar_lea.vmem %s62_s22, 2048  ;;  %p5841_p2 = scmp.lt.s32.totalorder %s62_s22, %s62_s22 }
  0x61   :  { %p5837_p1 = scmp.ne.s32.totalorder %s62_s22, %s5836_s2  ;;  %p5842_p3 = scmp.lt.s32.totalorder %s5836_s2, %s5836_s2 }
  0x63   :  { %p5843_p4 = por %p5842_p3, %p5841_p2 }
  0x65   :  { %p5844_p5 = pnand %p5843_p4, %p5837_p1 }
  0x67   :  { %5847 = shalt.err (!%p5844_p5)
}
  0x68   :  { %67 = dma.hbm_to_vmem [thread:$0]  %s7035_s6, 2048, %s62_s22, [#allocation7], %s5925_s28, %s5925_s28, %s5926_s29  }
  0x69   :  { %s5848_s17 = scalar_lea.hbm %s7037_s8, 32 }
  0x6a   :  { %p5849_p6 = scmp.ne.s32.totalorder %s7037_s8, %s5848_s17  ;;  %p5852_p7 = scmp.lt.u32.totalorder %s5848_s17, %s7037_s8 }
  0x6c   :  { %p5854_p8 = pnand %p5852_p7, %p5849_p6 }
  0x6e   :  { %5857 = shalt.err (!%p5854_p8)
}
  0x6f   :  { %s5858_s21 = scalar_lea.vmem %s87_s9, 32  ;;  %p5863_p10 = scmp.lt.s32.totalorder %s87_s9, %s87_s9 }
  0x70   :  { %p5859_p9 = scmp.ne.s32.totalorder %s87_s9, %s5858_s21  ;;  %p5864_p11 = scmp.lt.s32.totalorder %s5858_s21, %s5858_s21 }
  0x72   :  { %p5865_p12 = por %p5864_p11, %p5863_p10 }
  0x74   :  { %p5866_p13 = pnand %p5865_p12, %p5859_p9 }
  0x76   :  { %5869 = shalt.err (!%p5866_p13)
}
  0x77   :  { %89 = dma.hbm_to_vmem [thread:$0]  %s7037_s8, 32, %s87_s9, [#allocation10]  }
  0x78   :  { %s5933_s24 = smov [#allocation14]   ;;  %s5934_s7 = smov [#allocation17]  }
  0x79   :  { %s107_s25 = sshll.u32 %s5933_s24, 4  ;;  %s132_s18 = sshll.u32 %s5934_s7, 4  ;;  %s108_s25 = int_to_ptr.vmem [resolvable:$true] %s107_s25  ;;  %s133_s18 = int_to_ptr.vmem [resolvable:$true] %s132_s18 }
  0x7a   :  { %s5870_s2 = scalar_lea.hbm %s7039_s10, 2048 }
  0x7b   :  { %p5871_p0 = scmp.ne.s32.totalorder %s7039_s10, %s5870_s2  ;;  %p5874_p1 = scmp.lt.u32.totalorder %s5870_s2, %s7039_s10 }
  0x7d   :  { %p5876_p2 = pnand %p5874_p1, %p5871_p0 }
  0x7f   :  { %5879 = shalt.err (!%p5876_p2)
}
  0x80   :  { %s5880_s8 = scalar_lea.vmem %s108_s25, 2048  ;;  %p5885_p4 = scmp.lt.s32.totalorder %s108_s25, %s108_s25 }
  0x81   :  { %p5881_p3 = scmp.ne.s32.totalorder %s108_s25, %s5880_s8  ;;  %p5886_p5 = scmp.lt.s32.totalorder %s5880_s8, %s5880_s8 }
  0x83   :  { %p5887_p6 = por %p5886_p5, %p5885_p4 }
  0x85   :  { %p5888_p7 = pnand %p5887_p6, %p5881_p3 }
  0x87   :  { %5891 = shalt.err (!%p5888_p7)
}
  0x88   :  { %113 = dma.hbm_to_vmem [thread:$0]  %s7039_s10, 2048, %s108_s25, [#allocation13], %s5925_s28, %s5925_s28, %s5926_s29  }
  0x89   :  { %s5892_s20 = scalar_lea.hbm %s7042_s13, 16 }
  0x8a   :  { %p5893_p8 = scmp.ne.s32.totalorder %s7042_s13, %s5892_s20  ;;  %p5896_p9 = scmp.lt.u32.totalorder %s5892_s20, %s7042_s13 }
  0x8c   :  { %p5898_p10 = pnand %p5896_p9, %p5893_p8 }
  0x8e   :  { %5901 = shalt.err (!%p5898_p10)
}
  0x8f   :  { %s5902_s24 = scalar_lea.vmem %s133_s18, 16  ;;  %s5906_s7 = scalar_lea.vmem %s133_s18, 32 }
  0x90   :  { %p5903_p11 = scmp.ne.s32.totalorder %s133_s18, %s5902_s24  ;;  %p5907_p12 = scmp.lt.s32.totalorder %s133_s18, %s133_s18 }
  0x91   :  { %p5908_p13 = scmp.lt.s32.totalorder %s5906_s7, %s5902_s24 }
  0x93   :  { %p5909_p0 = por %p5908_p13, %p5907_p12 }
  0x95   :  { %p5910_p1 = pnand %p5909_p0, %p5903_p11 }
  0x97   :  { %5913 = shalt.err (!%p5910_p1)
}
  0x98   :  { %135 = dma.hbm_to_vmem [thread:$0]  %s7042_s13, 16, %s133_s18, [#allocation16]  }
  0x99   :  { %5914 = dma.done.wait [#allocation5], 16  }
  0x9a   :  { %5915 = vsyncadd [#allocation5], 4294967280 }
  0x9b   :  { %5916 = dma.done.wait [#allocation7], 4096  }
  0x9c   :  { %5917 = vsyncadd [#allocation7], 4294963200 }
  0x9d   :  { %5918 = dma.done.wait [#allocation10], 2080  }
  0x9e   :  { %5919 = vsyncadd [#allocation10], 4294965216 }
  0x9f   :  { %5920 = dma.done.wait [#allocation13], 4096  }
  0xa0   :  { %5921 = vsyncadd [#allocation13], 4294963200 }
  0xa1   :  { %5922 = dma.done.wait [#allocation16], 48  }
  0xa2   :  { %5923 = vsyncadd [#allocation16], 4294967248  ;;  %vm174_vm0 = vcmask 130048   ;;  %v165_v0 = vld [vmem:[%s7030_s1] sm:$0xff]  ;;  %v166_v1 = vld [vmem:[%s7030_s1 + $0x8] sm:$0xff]  ;;  %v5935_v29 = vmov 0.0   ;;  %v268_v51 = vlaneseq }
  0xa3   :  { %v163_v2 = vld [vmem:[%s7029_s0] sm:$0xff]  ;;  %v4865_v3 = vpack.c.bf16 %v166_v1, %v165_v0  ;;  %v259_v4 = vld [vmem:[%s7032_s3 + $0x8] sm:$0xff]  ;;  %v261_v5 = vld [vmem:[%s7032_s3 + $0x18] sm:$0xff]  ;;  %450 = vmatprep.mubr.f32.mxu0 %v5935_v29  ;;  %vm278_vm1 = vcmask 261120   ;;  %s5937_s10 = smov 32   ;;  %vm516_vm2 = vcmask 254976  }
  0xa4   :  { %4843 = vmatprep.mubr.msk.f32.mxu1 %vm174_vm0, %v163_v2  ;;  %v4869_v6 = vpack.c.bf16 %v261_v5, %v259_v4  ;;  %v258_v7 = vld [vmem:[%s7032_s3] sm:$0xff]  ;;  %v260_v8 = vld [vmem:[%s7032_s3 + $0x10] sm:$0xff]  ;;  %v164_v9 = vld [vmem:[%s7029_s0 + $0x8] sm:$0xff]  ;;  %v269_v52 = vshrl.u32 %v268_v51, 7  ;;  %vm382_vm3 = vcmask 523264   ;;  %vm687_vm4 = vcmask 257026  }
  0xa5   :  { %4866 = vmatprep.subr.bf16.mxu1 %v4865_v3  ;;  %v4871_v10 = vpack.c.bf16 %v260_v8, %v258_v7  ;;  %v367_v11 = vld [vmem:[#allocation6 + $0x8] sm:$0xff]  ;;  %v369_v12 = vld [vmem:[#allocation6 + $0x18] sm:$0xff]  ;;  %v366_v14 = vld [vmem:[#allocation6] sm:$0xff]  ;;  %vm859_vm5 = vcmask 259076   ;;  %vm1028_vm6 = vcmask 261126   ;;  %vm522_vm7 = vcmask 523526  }
  0xa6   :  { %4868 = vmatpush3.bf16.msra.mxu1 %v4865_v3  ;;  %v6168_v13 = vpack.c.bf16 %v369_v12, %v367_v11  ;;  %v368_v15 = vld [vmem:[#allocation6 + $0x10] sm:$0xff]  ;;  %v265_v18 = vld [vmem:[%s7032_s3 + $0x38] sm:$0xff]  ;;  %v264_v21 = vld [vmem:[%s7032_s3 + $0x30] sm:$0xff]  ;;  %v6230_v53 = vsub.s32 0, %v269_v52  ;;  %v6235_v55 = vsub.s32 1, %v269_v52  ;;  %vm693_vm8 = vcmask 521476  }
  0xa7   :  { %4870 = vmatprep.subr.bf16.mxu1 %v4869_v6  ;;  %v6170_v16 = vpack.c.bf16 %v368_v15, %v366_v14  ;;  %v263_v17 = vld [vmem:[%s7032_s3 + $0x28] sm:$0xff]  ;;  %v262_v20 = vld [vmem:[%s7032_s3 + $0x20] sm:$0xff]  ;;  %v370_v26 = vld [vmem:[#allocation6 + $0x20] sm:$0xff]  ;;  %vm865_vm9 = vcmask 519426   ;;  %vm1034_vm10 = vcmask 517376   ;;  %vm4715_vm11 = vcmask 15360  }
  0xa8   :  { %4878 = vmatprep.subr.bf16.mxu0 %v6168_v13  ;;  %v4873_v19 = vpack.c.bf16 %v265_v18, %v263_v17  ;;  %v4875_v22 = vpack.c.bf16 %v264_v21, %v262_v20  ;;  %v371_v23 = vld [vmem:[#allocation6 + $0x28] sm:$0xff]  ;;  %v373_v24 = vld [vmem:[#allocation6 + $0x38] sm:$0xff]  ;;  %v372_v27 = vld [vmem:[#allocation6 + $0x30] sm:$0xff]  ;;  %vm4726_vm12 = vcmask 7168   ;;  %s7047_s6 = sld [smem:[#allocation23_spill]] }
  0xa9   :  { %4844 = vmatmul.mubr.msk.f32.vlgmr.msra.gmra.mrb[0].mxu1 %vm174_vm0, %v164_v9  ;;  %4880 = vmatpush1.bf16.msra.mxu0 %v6170_v16  ;;  %v6186_v25 = vpack.c.bf16 %v373_v24, %v371_v23  ;;  %v6188_v28 = vpack.c.bf16 %v372_v27, %v370_v26  ;;  %v375_v30 = vld [vmem:[#allocation6 + $0x48] sm:$0xff]  ;;  %v377_v31 = vld [vmem:[#allocation6 + $0x58] sm:$0xff]  ;;  %v374_v33 = vld [vmem:[#allocation6 + $0x40] sm:$0xff] }
  0xaa   :  { %4872 = vmatpush1.bf16.msra.mxu1 %v4871_v10  ;;  %349 = vmatprep.mubr.f32.mxu1 %v5935_v29  ;;  %v6194_v32 = vpack.c.bf16 %v377_v31, %v375_v30  ;;  %v376_v34 = vld [vmem:[#allocation6 + $0x50] sm:$0xff]  ;;  %v379_v36 = vld [vmem:[#allocation6 + $0x68] sm:$0xff]  ;;  %v381_v37 = vld [vmem:[#allocation6 + $0x78] sm:$0xff] }
  0xab   :  { %4874 = vmatprep.subr.bf16.mxu1 %v4873_v19  ;;  %4882 = vmatprep.subr.bf16.mxu0 %v6186_v25  ;;  %v6197_v35 = vpack.c.bf16 %v376_v34, %v374_v33  ;;  %v6201_v38 = vpack.c.bf16 %v381_v37, %v379_v36  ;;  %v378_v39 = vld [vmem:[#allocation6 + $0x60] sm:$0xff]  ;;  %v380_v40 = vld [vmem:[#allocation6 + $0x70] sm:$0xff]  ;;  %v4742_v42 = vld [vmem:[#allocation4] ss:$0 sm:$0xff] }
  0xac   :  { %v6203_v41 = vpack.c.bf16 %v380_v40, %v378_v39  ;;  %v266_v54 = vld [vmem:[%s7034_s5] sm:$0x3]  ;;  %s5936_s5 = smov 64  }
  0xad   :  { %4884 = vmatpush1.bf16.msra.mxu0 %v6188_v28  ;;  %v271_v56 = vrot.slane %v266_v54, %v6230_v53  ;;  %v275_v57 = vrot.slane %v266_v54, %v6235_v55 }
  0xae   :  { %4876 = vmatpush1.bf16.msra.mxu1 %v4875_v22  ;;  %4886 = vmatprep.subr.bf16.mxu0 %v6194_v32 }
  0xaf   :  { %4894 = vmatprep.subr.bf16.mxu1 %v6168_v13 }
  0xb1   :  { %4888 = vmatpush1.bf16.msra.mxu0 %v6197_v35 }
  0xb2   :  { %4890 = vmatprep.subr.bf16.mxu0 %v6201_v38 }
  0xb5   :  { %4892 = vmatpush1.bf16.msra.mxu0 %v6203_v41 }
  0xb6   :  { %4910 = vmatprep.subr.bf16.mxu0 %v6168_v13 }
  0xb8   :  { %451 = vmatmul.mubr.f32.vlgmr.msra.gmra.mrb[0].mxu0 %v5935_v29 }
  0xb9   :  { %4912 = vmatpush1.bf16.msra.mxu0 %v6170_v16  ;;  %784 = vmatprep.mubr.f32.mxu0 %v5935_v29 }
  0xba   :  { %4914 = vmatprep.subr.bf16.mxu0 %v6186_v25 }
  0xbd   :  { %4916 = vmatpush1.bf16.msra.mxu0 %v6188_v28 }
  0xbe   :  { %4918 = vmatprep.subr.bf16.mxu0 %v6194_v32 }
  0xc1   :  { %4920 = vmatpush1.bf16.msra.mxu0 %v6197_v35 }
  0xc2   :  { %4922 = vmatprep.subr.bf16.mxu0 %v6201_v38 }
  0xc5   :  { %4924 = vmatpush1.bf16.msra.mxu0 %v6203_v41 }
  0xc6   :  { %4942 = vmatprep.subr.bf16.mxu0 %v6168_v13 }
 0x17c   :  { %v4845_v43 = vpop.f32.mrb[0].mxu1 }
 0x17d   :  { %v247_v44 = vpop.f32.mrb[1].mxu1  ;;  %v253_v46 = vadd.f32 %v4845_v43, %v4742_v42 }
 0x17e   :  { %v248_v45 = vadd.f32 %v4742_v42, %v247_v44 }
 0x17f   :  { %v257_v48 = vmax.f32 %v253_v46, 0.0 }
 0x180   :  { %v256_v47 = vmax.f32 %v248_v45, 0.0 }
 0x182   :  { %4745 = vmatmul.mubr.msk.f32.vlgmr.msra.gmra.mrb[2].mxu1 %vm278_vm1, %v256_v47 }
 0x183   :  { %355 = vmatprep.mubr.f32.mxu1 %v5935_v29  ;;  %4896 = vmatpush1.bf16.msra.mxu1 %v6170_v16 }
 0x184   :  { %4898 = vmatprep.subr.bf16.mxu1 %v6186_v25 }
 0x186   :  { %4746 = vmatmul.mubr.msk.f32.gmra.mrb[4].mxu1 %vm278_vm1, %v257_v48 }
 0x187   :  { %4900 = vmatpush1.bf16.msra.mxu1 %v6188_v28  ;;  %612 = vmatprep.mubr.f32.mxu1 %v5935_v29 }
 0x188   :  { %4902 = vmatprep.subr.bf16.mxu1 %v6194_v32 }
 0x18b   :  { %4904 = vmatpush1.bf16.msra.mxu1 %v6197_v35  ;;  %v452_v49 = vpop.f32.mrb[0].mxu0 }
 0x18c   :  { %4906 = vmatprep.subr.bf16.mxu1 %v6201_v38  ;;  %v454_v50 = vpop.f32.mrb[1].mxu0 }
 0x18d   :  { %v461_v2 = vrot.slane %v454_v50, 2 }
 0x18f   :  { %4908 = vmatpush1.bf16.msra.mxu1 %v6203_v41 }
 0x190   :  { %4926 = vmatprep.subr.bf16.mxu1 %v6168_v13 }
 0x255   :  { %v351_v58 = vpop.f32.mrb[2].mxu1 }
 0x256   :  { %v352_v59 = vadd.f32 %v351_v58, %v271_v56  ;;  %v353_v60 = vpop.f32.mrb[3].mxu1 }
 0x257   :  { %v354_v61 = vadd.f32 %v353_v60, %v275_v57 }
 0x258   :  { %362 = vst [vmem:[#allocation3] sm:$0xff] %v352_v59 }
 0x259   :  { %363 = vst [vmem:[#allocation3 + $0x8] sm:$0xff] %v354_v61  ;;  %v357_v62 = vpop.f32.mrb[4].mxu1 }
 0x25a   :  { %v358_v63 = vadd.f32 %v357_v62, %v271_v56  ;;  %v359_v0 = vpop.f32.mrb[5].mxu1 }
 0x25b   :  { %v360_v1 = vadd.f32 %v359_v0, %v275_v57 }
 0x25c   :  { %364 = vst [vmem:[#allocation3 + $0x10] sm:$0xff] %v358_v63 }
 0x25d   :  { %365 = vst [vmem:[#allocation3 + $0x18] sm:$0xff] %v360_v1 }
 0x25f   :  { %v457_v3 = vld [vmem:[#allocation3] sm:$0x3] }
 0x260   :  { %v458_v6 = vadd.f32 %v457_v3, %v452_v49  ;;  %v619_v49 = vld [vmem:[#allocation3] sm:$0xc] }
 0x262   :  { %v4747_v10 = vmul.f32 -1.442695, %v458_v6 }
 0x264   :  { %v459_v4 = vld [vmem:[#allocation3 + $0x18] sm:$0xc0]  ;;  %v624_v52 = vld [vmem:[#allocation3 + $0x18] sm:$0x30] }
 0x265   :  { %v463_v5 = vadd.f32 %v461_v2, %v459_v4 }
 0x267   :  { %5324 = vtanh.f32 %v463_v5  ;;  %v4748_v9 = vmul.f32 -1.442695, %v463_v5 }
 0x268   :  { %5326 = vtanh.f32 %v458_v6 }
 0x269   :  { %5328 = vpow2.f32 %v4748_v9 }
 0x26a   :  { %5330 = vpow2.f32 %v4747_v10 }
 0x271   :  { %v5325_v7 = vpop.eup %5324 }
 0x272   :  { %497 = vrot.lane.b32.xlu0 %v5325_v7, %s5936_s5  ;;  %v5327_v8 = vpop.eup %5326 }
 0x273   :  { %v5329_v11 = vpop.eup %5328 }
 0x274   :  { %v491_v12 = vadd.f32 1.0, %v5329_v11  ;;  %v5331_v14 = vpop.eup %5330 }
 0x275   :  { %v467_v15 = vadd.f32 1.0, %v5331_v14 }
 0x276   :  { %473 = vrot.lane.b32.xlu0 %v5327_v8, %s5936_s5  ;;  %5332 = vrcp.f32 %v491_v12 }
 0x277   :  { %5334 = vrcp.f32 %v467_v15 }
 0x280   :  { %v5333_v17 = vpop.eup %5332 }
 0x281   :  { %v5335_v20 = vpop.eup %5334  ;;  %v495_v23 = vmul.f32 0.0, %v5333_v17 }
 0x282   :  { %v471_v27 = vmul.f32 0.0, %v5335_v20 }
 0x2e4   :  { %v498_v18 = vpop.permute.xlu0 %497 }
 0x2e5   :  { %v500_v19 = vmul.f32 %v5333_v17, %v498_v18 }
 0x2e7   :  { %502 = vrot.lane.b32.xlu1 %v500_v19, %s5937_s10 }
 0x2e8   :  { %v474_v21 = vpop.permute.xlu0 %473 }
 0x2e9   :  { %v476_v22 = vmul.f32 %v5335_v20, %v474_v21 }
 0x2eb   :  { %478 = vrot.lane.b32.xlu1 %v476_v22, %s5937_s10 }
 0x359   :  { %v503_v24 = vpop.permute.xlu1 %502 }
 0x35a   :  { %v6243_v26 = vadd.f32 %v503_v24, %v495_v23 }
 0x35c   :  { %5336 = vtanh.f32 %v6243_v26  ;;  %v664_v6 = vrot.slane %v6243_v26, 2 }
 0x35d   :  { %v479_v30 = vpop.permute.xlu1 %478 }
 0x35e   :  { %v6246_v31 = vadd.f32 %v479_v30, %v471_v27 }
 0x360   :  { %5338 = vtanh.f32 %v6246_v31  ;;  %v637_v5 = vrot.slane %v6246_v31, 6 }
 0x366   :  { %v5337_v33 = vpop.eup %5336 }
 0x367   :  { %508 = vrot.lane.b32.xlu0 %v5337_v33, %s5936_s5  ;;  %v791_v33 = vld [vmem:[#allocation3] sm:$0x30] }
 0x36a   :  { %v5339_v34 = vpop.eup %5338 }
 0x36b   :  { %484 = vrot.lane.b32.xlu1 %v5339_v34, %s5936_s5 }
 0x3d9   :  { %v509_v36 = vpop.permute.xlu0 %508 }
 0x3da   :  { %v6251_v37 = vmul.f32 %v5333_v17, %v509_v36 }
 0x3dc   :  { %v524_v39 = vrot.slane %v6251_v37, 6 }
 0x3dd   :  { %v485_v40 = vpop.permute.xlu1 %484 }
 0x3de   :  { %v487_v42 = vmul.f32 %v5335_v20, %v485_v40  ;;  %525 = vrot.lane.b32.xlu1 %v524_v39, %s5936_s5  ;;  %v796_v39 = vld [vmem:[#allocation3 + $0x18] sm:$0xc] }
 0x3e0   :  { %513 = vrot.lane.b32.xlu0 %v487_v42, %s5937_s10 }
 0x450   :  { %v526_v43 = vpop.permute.xlu1 %525 }
 0x452   :  { %v514_v44 = vpop.permute.xlu0 %513 }
 0x453   :  { %517 = vst.msk [vmem:[#allocation2] sm:$0x3] %vm516_vm2, %v514_v44  ;;  %v528_v45 = vsel %vm278_vm1, %v514_v44, %v526_v43 }
 0x454   :  { %4749 = vmatmul.mubr.msk.f32.vlgmr.msra.gmra.mrb[6].mxu1 %vm382_vm3, %v528_v45 }
 0x455   :  { %4928 = vmatpush1.bf16.msra.mxu1 %v6170_v16  ;;  %956 = vmatprep.mubr.f32.mxu1 %v5935_v29 }
 0x456   :  { %4930 = vmatprep.subr.bf16.mxu1 %v6186_v25 }
 0x459   :  { %4932 = vmatpush1.bf16.msra.mxu1 %v6188_v28 }
 0x45a   :  { %4934 = vmatprep.subr.bf16.mxu1 %v6194_v32 }
 0x45d   :  { %4936 = vmatpush1.bf16.msra.mxu1 %v6197_v35 }
 0x45e   :  { %4938 = vmatprep.subr.bf16.mxu1 %v6201_v38 }
 0x461   :  { %4940 = vmatpush1.bf16.msra.mxu1 %v6203_v41 }
 0x462   :  { %4958 = vmatprep.subr.bf16.mxu1 %v6168_v13 }
 0x527   :  { %v614_v46 = vpop.f32.mrb[6].mxu1 }
 0x528   :  { %v621_v47 = vrot.slane %v614_v46, 6  ;;  %v616_v48 = vpop.f32.mrb[7].mxu1 }
 0x529   :  { %v626_v50 = vrot.slane %v616_v48, 4 }
 0x52a   :  { %v623_v51 = vadd.f32 %v621_v47, %v619_v49 }
 0x52b   :  { %v628_v54 = vadd.f32 %v626_v50, %v624_v52 }
 0x52c   :  { %5340 = vtanh.f32 %v623_v51  ;;  %v4750_v58 = vmul.f32 -1.442695, %v623_v51 }
 0x52d   :  { %5342 = vtanh.f32 %v628_v54  ;;  %v4751_v59 = vmul.f32 -1.442695, %v628_v54 }
 0x52e   :  { %5344 = vpow2.f32 %v4750_v58 }
 0x52f   :  { %5346 = vpow2.f32 %v4751_v59 }
 0x536   :  { %v5341_v56 = vpop.eup %5340 }
 0x537   :  { %v5343_v57 = vpop.eup %5342  ;;  %641 = vrot.lane.b32.xlu1 %v5341_v56, %s5936_s5 }
 0x538   :  { %668 = vrot.lane.b32.xlu0 %v5343_v57, %s5936_s5  ;;  %v5345_v13 = vpop.eup %5344 }
 0x539   :  { %v5347_v60 = vpop.eup %5346  ;;  %v632_v61 = vadd.f32 1.0, %v5345_v13 }
 0x53a   :  { %v659_v62 = vadd.f32 1.0, %v5347_v60 }
 0x53b   :  { %5348 = vrcp.f32 %v632_v61 }
 0x53c   :  { %5350 = vrcp.f32 %v659_v62 }
 0x545   :  { %v5349_v63 = vpop.eup %5348 }
 0x546   :  { %v5351_v1 = vpop.eup %5350  ;;  %v639_v7 = vmul.f32 %v5349_v63, %v637_v5 }
 0x547   :  { %v666_v9 = vmul.f32 %v5351_v1, %v664_v6 }
 0x5a9   :  { %v642_v0 = vpop.permute.xlu1 %641 }
 0x5aa   :  { %v644_v2 = vmul.f32 %v5349_v63, %v642_v0  ;;  %v669_v3 = vpop.permute.xlu0 %668 }
 0x5ab   :  { %v671_v4 = vmul.f32 %v5351_v1, %v669_v3 }
 0x5ac   :  { %646 = vrot.lane.b32.xlu1 %v644_v2, %s5937_s10 }
 0x5ad   :  { %673 = vrot.lane.b32.xlu0 %v671_v4, %s5937_s10 }
 0x61e   :  { %v647_v8 = vpop.permute.xlu1 %646 }
 0x61f   :  { %v6274_v10 = vadd.f32 %v647_v8, %v639_v7  ;;  %v674_v11 = vpop.permute.xlu0 %673 }
 0x620   :  { %v6276_v12 = vadd.f32 %v674_v11, %v666_v9 }
 0x621   :  { %5352 = vtanh.f32 %v6274_v10  ;;  %v809_v58 = vrot.slane %v6274_v10, 6 }
 0x622   :  { %5354 = vtanh.f32 %v6276_v12  ;;  %v836_v59 = vrot.slane %v6276_v12, 2 }
 0x62b   :  { %v5353_v14 = vpop.eup %5352 }
 0x62c   :  { %v5355_v15 = vpop.eup %5354  ;;  %652 = vrot.lane.b32.xlu1 %v5353_v14, %s5936_s5 }
 0x62d   :  { %679 = vrot.lane.b32.xlu0 %v5355_v15, %s5936_s5 }
 0x69e   :  { %v653_v17 = vpop.permute.xlu1 %652 }
 0x69f   :  { %v655_v18 = vmul.f32 %v5349_v63, %v653_v17  ;;  %v680_v19 = vpop.permute.xlu0 %679  ;;  %v968_v17 = vld [vmem:[#allocation3 + $0x18] sm:$0x3] }
 0x6a0   :  { %v6282_v20 = vmul.f32 %v5351_v1, %v680_v19 }
 0x6a1   :  { %684 = vrot.lane.b32.xlu0 %v655_v18, %s5937_s10  ;;  %v963_v18 = vld [vmem:[#allocation3] sm:$0xc0] }
 0x6a2   :  { %v695_v21 = vrot.slane %v6282_v20, 2 }
 0x6a4   :  { %696 = vrot.lane.b32.xlu1 %v695_v21, %s5936_s5 }
 0x713   :  { %v685_v22 = vpop.permute.xlu0 %684 }
 0x714   :  { %688 = vst.msk [vmem:[#allocation2] sm:$0xc] %vm687_vm4, %v685_v22 }
 0x716   :  { %v697_v23 = vpop.permute.xlu1 %696 }
 0x717   :  { %v699_v24 = vsel %vm278_vm1, %v685_v22, %v697_v23 }
 0x718   :  { %v717_v26 = vrot.slane %v699_v24, 2 }
 0x71a   :  { %4752 = vmatmul.mubr.msk.f32.vlgmr.msra.gmra.mrb[2].mxu0 %vm382_vm3, %v717_v26 }
 0x71b   :  { %4944 = vmatpush1.bf16.msra.mxu0 %v6170_v16  ;;  %1125 = vmatprep.mubr.f32.mxu0 %v5935_v29 }
 0x71c   :  { %4946 = vmatprep.subr.bf16.mxu0 %v6186_v25 }
 0x71f   :  { %4948 = vmatpush1.bf16.msra.mxu0 %v6188_v28 }
 0x720   :  { %4950 = vmatprep.subr.bf16.mxu0 %v6194_v32 }
 0x723   :  { %4952 = vmatpush1.bf16.msra.mxu0 %v6197_v35 }
 0x724   :  { %4954 = vmatprep.subr.bf16.mxu0 %v6201_v38 }
 0x727   :  { %4956 = vmatpush1.bf16.msra.mxu0 %v6203_v41 }
 0x7ed   :  { %v786_v27 = vpop.f32.mrb[2].mxu0 }
 0x7ee   :  { %v793_v30 = vrot.slane %v786_v27, 4  ;;  %v788_v31 = vpop.f32.mrb[3].mxu0 }
 0x7ef   :  { %v798_v34 = vrot.slane %v788_v31, 6 }
 0x7f0   :  { %v795_v36 = vadd.f32 %v793_v30, %v791_v33 }
 0x7f1   :  { %v800_v40 = vadd.f32 %v798_v34, %v796_v39 }
 0x7f2   :  { %5356 = vtanh.f32 %v795_v36  ;;  %v4753_v44 = vmul.f32 -1.442695, %v795_v36 }
 0x7f3   :  { %5358 = vtanh.f32 %v800_v40  ;;  %v4754_v45 = vmul.f32 -1.442695, %v800_v40 }
 0x7f4   :  { %5360 = vpow2.f32 %v4753_v44 }
 0x7f5   :  { %5362 = vpow2.f32 %v4754_v45 }
 0x7fc   :  { %v5357_v42 = vpop.eup %5356 }
 0x7fd   :  { %v5359_v43 = vpop.eup %5358  ;;  %813 = vrot.lane.b32.xlu1 %v5357_v42, %s5936_s5 }
 0x7fe   :  { %840 = vrot.lane.b32.xlu0 %v5359_v43, %s5936_s5  ;;  %v5361_v46 = vpop.eup %5360 }
 0x7ff   :  { %v5363_v47 = vpop.eup %5362  ;;  %v804_v48 = vadd.f32 1.0, %v5361_v46 }
 0x800   :  { %v831_v49 = vadd.f32 1.0, %v5363_v47 }
 0x801   :  { %5364 = vrcp.f32 %v804_v48 }
 0x802   :  { %5366 = vrcp.f32 %v831_v49 }
 0x80b   :  { %v5365_v50 = vpop.eup %5364 }
 0x80c   :  { %v5367_v52 = vpop.eup %5366  ;;  %v811_v13 = vmul.f32 %v5365_v50, %v809_v58 }
 0x80d   :  { %v838_v61 = vmul.f32 %v5367_v52, %v836_v59  ;;  %v1132_v59 = vld [vmem:[#allocation3 + $0x10] sm:$0x3] }
 0x86f   :  { %v814_v51 = vpop.permute.xlu1 %813 }
 0x870   :  { %v816_v54 = vmul.f32 %v5365_v50, %v814_v51  ;;  %v841_v56 = vpop.permute.xlu0 %840 }
 0x871   :  { %v843_v57 = vmul.f32 %v5367_v52, %v841_v56 }
 0x872   :  { %818 = vrot.lane.b32.xlu1 %v816_v54, %s5937_s10 }
 0x873   :  { %845 = vrot.lane.b32.xlu0 %v843_v57, %s5937_s10 }
 0x8e4   :  { %v819_v60 = vpop.permute.xlu1 %818 }
 0x8e5   :  { %v6304_v62 = vadd.f32 %v819_v60, %v811_v13  ;;  %v846_v63 = vpop.permute.xlu0 %845 }
 0x8e6   :  { %v6306_v0 = vadd.f32 %v846_v63, %v838_v61 }
 0x8e7   :  { %5368 = vtanh.f32 %v6304_v62  ;;  %v978_v34 = vrot.slane %v6304_v62, 6  ;;  %v1134_v62 = vld [vmem:[#allocation3 + $0x8] sm:$0xc0] }
 0x8e8   :  { %5370 = vtanh.f32 %v6306_v0  ;;  %v1005_v33 = vrot.slane %v6306_v0, 2 }
 0x8f1   :  { %v5369_v1 = vpop.eup %5368 }
 0x8f2   :  { %v5371_v2 = vpop.eup %5370  ;;  %824 = vrot.lane.b32.xlu1 %v5369_v1, %s5936_s5 }
 0x8f3   :  { %851 = vrot.lane.b32.xlu0 %v5371_v2, %s5936_s5 }
 0x964   :  { %v825_v3 = vpop.permute.xlu1 %824 }
 0x965   :  { %v827_v4 = vmul.f32 %v5365_v50, %v825_v3  ;;  %v852_v5 = vpop.permute.xlu0 %851 }
 0x966   :  { %v6312_v6 = vmul.f32 %v5367_v52, %v852_v5 }
 0x967   :  { %856 = vrot.lane.b32.xlu0 %v827_v4, %s5937_s10 }
 0x968   :  { %v867_v7 = vrot.slane %v6312_v6, 6 }
 0x96a   :  { %868 = vrot.lane.b32.xlu1 %v867_v7, %s5936_s5 }
 0x9d9   :  { %v857_v8 = vpop.permute.xlu0 %856 }
 0x9da   :  { %860 = vst.msk [vmem:[#allocation2] sm:$0x30] %vm859_vm5, %v857_v8 }
 0x9dc   :  { %v869_v9 = vpop.permute.xlu1 %868 }
 0x9dd   :  { %v871_v10 = vsel %vm278_vm1, %v857_v8, %v869_v9 }
 0x9de   :  { %v889_v11 = vrot.slane %v871_v10, 4 }
 0x9e0   :  { %4755 = vmatmul.mubr.msk.f32.vlgmr.msra.gmra.mrb[8].mxu1 %vm382_vm3, %v889_v11 }
 0x9e1   :  { %4960 = vmatpush1.bf16.msra.mxu1 %v6170_v16  ;;  %1291 = vmatprep.mubr.f32.mxu1 %v5935_v29 }
 0x9e2   :  { %4962 = vmatprep.subr.bf16.mxu1 %v6186_v25 }
 0x9e5   :  { %4964 = vmatpush1.bf16.msra.mxu1 %v6188_v28 }
 0x9e6   :  { %4966 = vmatprep.subr.bf16.mxu1 %v6194_v32 }
 0x9e9   :  { %4968 = vmatpush1.bf16.msra.mxu1 %v6197_v35 }
 0x9ea   :  { %4970 = vmatprep.subr.bf16.mxu1 %v6201_v38 }
 0x9ed   :  { %4972 = vmatpush1.bf16.msra.mxu1 %v6203_v41 }
 0xab3   :  { %v958_v12 = vpop.f32.mrb[8].mxu1 }
 0xab4   :  { %v965_v14 = vrot.slane %v958_v12, 2  ;;  %v960_v15 = vpop.f32.mrb[9].mxu1 }
 0xab5   :  { %v969_v16 = vadd.f32 %v968_v17, %v960_v15 }
 0xab6   :  { %v967_v19 = vadd.f32 %v965_v14, %v963_v18 }
 0xab7   :  { %5372 = vtanh.f32 %v969_v16  ;;  %v4757_v28 = vmul.f32 -1.442695, %v969_v16 }
 0xab8   :  { %5374 = vtanh.f32 %v967_v19  ;;  %v4756_v32 = vmul.f32 -1.442695, %v967_v19 }
 0xab9   :  { %5376 = vpow2.f32 %v4757_v28 }
 0xaba   :  { %5378 = vpow2.f32 %v4756_v32 }
 0xac1   :  { %v5373_v25 = vpop.eup %5372 }
 0xac2   :  { %v5375_v21 = vpop.eup %5374  ;;  %1009 = vrot.lane.b32.xlu0 %v5373_v25, %s5936_s5 }
 0xac3   :  { %982 = vrot.lane.b32.xlu1 %v5375_v21, %s5936_s5  ;;  %v5377_v35 = vpop.eup %5376 }
 0xac4   :  { %v5379_v38 = vpop.eup %5378  ;;  %v1000_v41 = vadd.f32 1.0, %v5377_v35 }
 0xac5   :  { %v973_v22 = vadd.f32 1.0, %v5379_v38 }
 0xac6   :  { %5380 = vrcp.f32 %v1000_v41 }
 0xac7   :  { %5382 = vrcp.f32 %v973_v22 }
 0xad0   :  { %v5381_v23 = vpop.eup %5380 }
 0xad1   :  { %v5383_v26 = vpop.eup %5382  ;;  %v1007_v36 = vmul.f32 %v5381_v23, %v1005_v33 }
 0xad2   :  { %v980_v40 = vmul.f32 %v5383_v26, %v978_v34 }
 0xb34   :  { %v1010_v24 = vpop.permute.xlu0 %1009 }
 0xb35   :  { %v1012_v27 = vmul.f32 %v5381_v23, %v1010_v24  ;;  %v983_v30 = vpop.permute.xlu1 %982 }
 0xb36   :  { %v985_v31 = vmul.f32 %v5383_v26, %v983_v30 }
 0xb37   :  { %1014 = vrot.lane.b32.xlu0 %v1012_v27, %s5937_s10 }
 0xb38   :  { %987 = vrot.lane.b32.xlu1 %v985_v31, %s5937_s10 }
 0xba9   :  { %v1015_v39 = vpop.permute.xlu0 %1014 }
 0xbaa   :  { %v1017_v42 = vadd.f32 %v1015_v39, %v1007_v36  ;;  %v988_v43 = vpop.permute.xlu1 %987  ;;  %v1298_v39 = vld [vmem:[#allocation3 + $0x10] sm:$0xc] }
 0xbab   :  { %v990_v44 = vadd.f32 %v988_v43, %v980_v40  ;;  %v1303_v43 = vld [vmem:[#allocation3 + $0x8] sm:$0x30] }
 0xbac   :  { %5384 = vtanh.f32 %v1017_v42  ;;  %v1174_v16 = vrot.slane %v1017_v42, 2 }
 0xbad   :  { %5386 = vtanh.f32 %v990_v44  ;;  %v1147_v17 = vrot.slane %v990_v44, 6 }
 0xbb6   :  { %v5385_v45 = vpop.eup %5384 }
 0xbb7   :  { %v5387_v46 = vpop.eup %5386  ;;  %1020 = vrot.lane.b32.xlu0 %v5385_v45, %s5936_s5 }
 0xbb8   :  { %993 = vrot.lane.b32.xlu1 %v5387_v46, %s5936_s5 }
 0xc29   :  { %v1021_v47 = vpop.permute.xlu0 %1020 }
 0xc2a   :  { %v6336_v48 = vmul.f32 %v5381_v23, %v1021_v47  ;;  %v994_v49 = vpop.permute.xlu1 %993 }
 0xc2b   :  { %v996_v50 = vmul.f32 %v5383_v26, %v994_v49 }
 0xc2c   :  { %v1036_v51 = vrot.slane %v6336_v48, 2 }
 0xc2d   :  { %1025 = vrot.lane.b32.xlu0 %v996_v50, %s5937_s10 }
 0xc2e   :  { %1037 = vrot.lane.b32.xlu1 %v1036_v51, %s5936_s5 }
 0xc9f   :  { %v1026_v52 = vpop.permute.xlu0 %1025 }
 0xca0   :  { %1029 = vst.msk [vmem:[#allocation2] sm:$0xc0] %vm1028_vm6, %v1026_v52  ;;  %v1038_v54 = vpop.permute.xlu1 %1037 }
 0xca1   :  { %v1040_v56 = vsel %vm278_vm1, %v1026_v52, %v1038_v54 }
 0xca2   :  { %v1058_v57 = vrot.slane %v1040_v56, 6 }
 0xca4   :  { %4758 = vmatmul.mubr.msk.f32.vlgmr.msra.gmra.mrb[4].mxu0 %vm382_vm3, %v1058_v57 }
 0xca5   :  { %1461 = vmatprep.mubr.f32.mxu0 %v5935_v29 }
 0xd77   :  { %v1127_v58 = vpop.f32.mrb[4].mxu0 }
 0xd78   :  { %v1133_v13 = vadd.f32 %v1132_v59, %v1127_v58  ;;  %v1129_v60 = vpop.f32.mrb[5].mxu0 }
 0xd79   :  { %v1136_v61 = vrot.slane %v1129_v60, 2 }
 0xd7a   :  { %5388 = vtanh.f32 %v1133_v13  ;;  %v4759_v2 = vmul.f32 -1.442695, %v1133_v13 }
 0xd7b   :  { %v1138_v63 = vadd.f32 %v1136_v61, %v1134_v62 }
 0xd7d   :  { %5390 = vtanh.f32 %v1138_v63  ;;  %v4760_v3 = vmul.f32 -1.442695, %v1138_v63 }
 0xd7e   :  { %5392 = vpow2.f32 %v4759_v2 }
 0xd7f   :  { %5394 = vpow2.f32 %v4760_v3 }
 0xd84   :  { %v5389_v0 = vpop.eup %5388 }
 0xd85   :  { %1151 = vrot.lane.b32.xlu1 %v5389_v0, %s5936_s5 }
 0xd87   :  { %v5391_v1 = vpop.eup %5390 }
 0xd88   :  { %1178 = vrot.lane.b32.xlu0 %v5391_v1, %s5936_s5  ;;  %v5393_v4 = vpop.eup %5392 }
 0xd89   :  { %v5395_v5 = vpop.eup %5394  ;;  %v1142_v7 = vadd.f32 1.0, %v5393_v4 }
 0xd8a   :  { %v1169_v8 = vadd.f32 1.0, %v5395_v5  ;;  %v1378_v5 = vld [vmem:[#allocation6 + $0x8] sm:$0xff] }
 0xd8b   :  { %5396 = vrcp.f32 %v1142_v7  ;;  %v1380_v7 = vld [vmem:[#allocation6 + $0x18] sm:$0xff] }
 0xd8c   :  { %5398 = vrcp.f32 %v1169_v8  ;;  %v1377_v8 = vld [vmem:[#allocation6] sm:$0xff] }
 0xd95   :  { %v5397_v9 = vpop.eup %5396 }
 0xd96   :  { %v5399_v12 = vpop.eup %5398  ;;  %v1149_v18 = vmul.f32 %v5397_v9, %v1147_v17  ;;  %v1381_v17 = vld [vmem:[#allocation6 + $0x20] sm:$0xff] }
 0xd97   :  { %v1176_v21 = vmul.f32 %v5399_v12, %v1174_v16  ;;  %v1386_v16 = vld [vmem:[#allocation6 + $0x48] sm:$0xff] }
 0xdf7   :  { %v1152_v10 = vpop.permute.xlu1 %1151 }
 0xdf8   :  { %v1154_v11 = vmul.f32 %v5397_v9, %v1152_v10  ;;  %v1379_v10 = vld [vmem:[#allocation6 + $0x10] sm:$0xff] }
 0xdfa   :  { %1156 = vrot.lane.b32.xlu1 %v1154_v11, %s5937_s10  ;;  %v1179_v14 = vpop.permute.xlu0 %1178  ;;  %v1382_v11 = vld [vmem:[#allocation6 + $0x28] sm:$0xff] }
 0xdfb   :  { %v1181_v15 = vmul.f32 %v5399_v12, %v1179_v14  ;;  %v4975_v14 = vpack.c.bf16 %v1379_v10, %v1377_v8 }
 0xdfd   :  { %1183 = vrot.lane.b32.xlu0 %v1181_v15, %s5937_s10 }
 0xe6c   :  { %v1157_v19 = vpop.permute.xlu1 %1156 }
 0xe6d   :  { %v1159_v25 = vadd.f32 %v1157_v19, %v1149_v18  ;;  %v1383_v18 = vld [vmem:[#allocation6 + $0x30] sm:$0xff]  ;;  %v1388_v19 = vld [vmem:[#allocation6 + $0x58] sm:$0xff] }
 0xe6f   :  { %5400 = vtanh.f32 %v1159_v25  ;;  %v1184_v28 = vpop.permute.xlu0 %1183  ;;  %v1316_v61 = vrot.slane %v1159_v25, 6  ;;  %v4979_v25 = vpack.c.bf16 %v1383_v18, %v1381_v17 }
 0xe70   :  { %v1186_v32 = vadd.f32 %v1184_v28, %v1176_v21  ;;  %v4981_v21 = vpack.c.bf16 %v1388_v19, %v1386_v16  ;;  %v1385_v28 = vld [vmem:[#allocation6 + $0x40] sm:$0xff] }
 0xe72   :  { %5402 = vtanh.f32 %v1186_v32  ;;  %v1343_v62 = vrot.slane %v1186_v32, 2  ;;  %v1387_v32 = vld [vmem:[#allocation6 + $0x50] sm:$0xff] }
 0xe79   :  { %v5401_v35 = vpop.eup %5400 }
 0xe7a   :  { %1162 = vrot.lane.b32.xlu1 %v5401_v35, %s5936_s5 }
 0xe7c   :  { %v5403_v38 = vpop.eup %5402 }
 0xe7d   :  { %1189 = vrot.lane.b32.xlu0 %v5403_v38, %s5936_s5 }
 0xeec   :  { %v1163_v41 = vpop.permute.xlu1 %1162 }
 0xeed   :  { %v1165_v22 = vmul.f32 %v5397_v9, %v1163_v41  ;;  %v4973_v9 = vpack.c.bf16 %v1380_v7, %v1378_v5  ;;  %v4983_v41 = vpack.c.bf16 %v1387_v32, %v1385_v28 }
 0xeef   :  { %1194 = vrot.lane.b32.xlu0 %v1165_v22, %s5937_s10  ;;  %v1190_v23 = vpop.permute.xlu0 %1189  ;;  %4974 = vmatprep.subr.bf16.mxu0 %v4973_v9  ;;  %v1390_v22 = vld [vmem:[#allocation6 + $0x68] sm:$0xff] }
 0xef0   :  { %v6352_v24 = vmul.f32 %v5399_v12, %v1190_v23  ;;  %v1384_v12 = vld [vmem:[#allocation6 + $0x38] sm:$0xff]  ;;  %4990 = vmatprep.subr.bf16.mxu1 %v4973_v9  ;;  %4976 = vmatpush1.bf16.msra.mxu0 %v4975_v14 }
 0xef1   :  { %v4977_v15 = vpack.c.bf16 %v1384_v12, %v1382_v11  ;;  %v1392_v23 = vld [vmem:[#allocation6 + $0x78] sm:$0xff] }
 0xef2   :  { %v1203_v26 = vrot.slane %v6352_v24, 6 }
 0xef3   :  { %4978 = vmatprep.subr.bf16.mxu0 %v4977_v15 }
 0xef4   :  { %1204 = vrot.lane.b32.xlu1 %v1203_v26, %s5936_s5  ;;  %4980 = vmatpush1.bf16.msra.mxu0 %v4979_v25  ;;  %v4985_v26 = vpack.c.bf16 %v1392_v23, %v1390_v22 }
 0xef5   :  { %4982 = vmatprep.subr.bf16.mxu0 %v4981_v21 }
 0xef8   :  { %4984 = vmatpush1.bf16.msra.mxu0 %v4983_v41 }
 0xef9   :  { %4986 = vmatprep.subr.bf16.mxu0 %v4985_v26 }
 0xf61   :  { %v6356_v27 = vpop.permute.xlu0 %1194 }
 0xf66   :  { %v1205_v30 = vpop.permute.xlu1 %1204 }
 0xf67   :  { %v1207_v31 = vsel %vm278_vm1, %v6356_v27, %v1205_v30  ;;  %v1389_v30 = vld [vmem:[#allocation6 + $0x60] sm:$0xff] }
 0xf68   :  { %4761 = vmatmul.mubr.msk.f32.vlgmr.msra.gmra.mrb[10].mxu1 %vm382_vm3, %v1207_v31  ;;  %v1391_v31 = vld [vmem:[#allocation6 + $0x70] sm:$0xff] }
 0xf69   :  { %1631 = vmatprep.mubr.f32.mxu1 %v5935_v29  ;;  %4992 = vmatpush1.bf16.msra.mxu1 %v4975_v14 }
 0xf6a   :  { %4994 = vmatprep.subr.bf16.mxu1 %v4977_v15 }
 0xf6d   :  { %4996 = vmatpush1.bf16.msra.mxu1 %v4979_v25 }
 0xf6e   :  { %4998 = vmatprep.subr.bf16.mxu1 %v4981_v21 }
 0xf71   :  { %5000 = vmatpush1.bf16.msra.mxu1 %v4983_v41 }
 0xf72   :  { %5002 = vmatprep.subr.bf16.mxu1 %v4985_v26 }
0x103b   :  { %v1293_v33 = vpop.f32.mrb[10].mxu1 }
0x103c   :  { %v1300_v34 = vrot.slane %v1293_v33, 6  ;;  %v1295_v36 = vpop.f32.mrb[11].mxu1  ;;  %v4987_v33 = vpack.c.bf16 %v1391_v31, %v1389_v30  ;;  %v1643_v31 = vld [vmem:[#allocation3 + $0x8] sm:$0x3] }
0x103d   :  { %v1305_v40 = vrot.slane %v1295_v36, 4 }
0x103e   :  { %v1302_v42 = vadd.f32 %v1300_v34, %v1298_v39  ;;  %4988 = vmatpush1.bf16.msra.mxu0 %v4987_v33  ;;  %5004 = vmatpush1.bf16.msra.mxu1 %v4987_v33  ;;  %v1638_v33 = vld [vmem:[#allocation3 + $0x10] sm:$0xc0] }
0x103f   :  { %v1307_v44 = vadd.f32 %v1305_v40, %v1303_v43 }
0x1040   :  { %5404 = vtanh.f32 %v1302_v42  ;;  %v4762_v47 = vmul.f32 -1.442695, %v1302_v42 }
0x1041   :  { %5406 = vtanh.f32 %v1307_v44  ;;  %v4763_v49 = vmul.f32 -1.442695, %v1307_v44 }
0x1042   :  { %5408 = vpow2.f32 %v4762_v47 }
0x1043   :  { %5410 = vpow2.f32 %v4763_v49 }
0x104a   :  { %v5405_v45 = vpop.eup %5404 }
0x104b   :  { %v5407_v46 = vpop.eup %5406  ;;  %1320 = vrot.lane.b32.xlu1 %v5405_v45, %s5936_s5 }
0x104c   :  { %1347 = vrot.lane.b32.xlu0 %v5407_v46, %s5936_s5  ;;  %v5409_v50 = vpop.eup %5408 }
0x104d   :  { %v5411_v51 = vpop.eup %5410  ;;  %v1311_v52 = vadd.f32 1.0, %v5409_v50 }
0x104e   :  { %v1338_v54 = vadd.f32 1.0, %v5411_v51  ;;  %v1468_v51 = vld [vmem:[#allocation3 + $0x10] sm:$0x30] }
0x104f   :  { %5412 = vrcp.f32 %v1311_v52 }
0x1050   :  { %5414 = vrcp.f32 %v1338_v54 }
0x1059   :  { %v6364_v56 = vpop.eup %5412 }
0x105a   :  { %v6366_v58 = vpop.eup %5414  ;;  %v1318_v63 = vmul.f32 %v6364_v56, %v1316_v61 }
0x105b   :  { %v1345_v1 = vmul.f32 %v6366_v58, %v1343_v62 }
0x10bd   :  { %v1321_v57 = vpop.permute.xlu1 %1320 }
0x10be   :  { %v1323_v59 = vmul.f32 %v6364_v56, %v1321_v57  ;;  %v1348_v13 = vpop.permute.xlu0 %1347 }
0x10bf   :  { %v1350_v60 = vmul.f32 %v6366_v58, %v1348_v13 }
0x10c0   :  { %1325 = vrot.lane.b32.xlu1 %v1323_v59, %s5937_s10 }
0x10c1   :  { %1352 = vrot.lane.b32.xlu0 %v1350_v60, %s5937_s10 }
0x1132   :  { %v1326_v0 = vpop.permute.xlu1 %1325 }
0x1133   :  { %v6374_v2 = vadd.f32 %v1326_v0, %v1318_v63  ;;  %v1353_v3 = vpop.permute.xlu0 %1352 }
0x1134   :  { %v6376_v4 = vadd.f32 %v1353_v3, %v1345_v1 }
0x1135   :  { %5416 = vtanh.f32 %v6374_v2  ;;  %v1486_v10 = vrot.slane %v6374_v2, 6 }
0x1136   :  { %5418 = vtanh.f32 %v6376_v4  ;;  %v1513_v11 = vrot.slane %v6376_v4, 2 }
0x113f   :  { %v5417_v35 = vpop.eup %5416 }
0x1140   :  { %v5419_v38 = vpop.eup %5418  ;;  %1331 = vrot.lane.b32.xlu1 %v5417_v35, %s5936_s5 }
0x1141   :  { %1358 = vrot.lane.b32.xlu0 %v5419_v38, %s5936_s5 }
0x11b2   :  { %v1332_v34 = vpop.permute.xlu1 %1331 }
0x11b3   :  { %v1334_v36 = vmul.f32 %v6364_v56, %v1332_v34  ;;  %v1359_v39 = vpop.permute.xlu0 %1358  ;;  %v1473_v56 = vld [vmem:[#allocation3 + $0x8] sm:$0xc] }
0x11b4   :  { %v6384_v40 = vmul.f32 %v6366_v58, %v1359_v39 }
0x11b5   :  { %1363 = vrot.lane.b32.xlu0 %v1334_v36, %s5937_s10 }
0x11b6   :  { %v1372_v42 = vrot.slane %v6384_v40, 2 }
0x11b8   :  { %1373 = vrot.lane.b32.xlu1 %v1372_v42, %s5936_s5 }
0x1227   :  { %v6389_v43 = vpop.permute.xlu0 %1363 }
0x122a   :  { %v1374_v44 = vpop.permute.xlu1 %1373 }
0x122b   :  { %v1376_v45 = vsel %vm278_vm1, %v6389_v43, %v1374_v44 }
0x122c   :  { %v1394_v46 = vrot.slane %v1376_v45, 2 }
0x122e   :  { %4764 = vmatmul.mubr.msk.f32.vlgmr.msra.gmra.mrb[6].mxu0 %vm382_vm3, %v1394_v46 }
0x122f   :  { %1809 = vmatprep.mubr.f32.mxu0 %v5935_v29 }
0x1301   :  { %v1463_v47 = vpop.f32.mrb[6].mxu0 }
0x1302   :  { %v1470_v49 = vrot.slane %v1463_v47, 4  ;;  %v1465_v50 = vpop.f32.mrb[7].mxu0 }
0x1303   :  { %v1475_v52 = vrot.slane %v1465_v50, 6 }
0x1304   :  { %v1472_v54 = vadd.f32 %v1470_v49, %v1468_v51 }
0x1305   :  { %v1477_v57 = vadd.f32 %v1475_v52, %v1473_v56 }
0x1306   :  { %5420 = vtanh.f32 %v1472_v54  ;;  %v4765_v13 = vmul.f32 -1.442695, %v1472_v54 }
0x1307   :  { %5422 = vtanh.f32 %v1477_v57  ;;  %v4766_v60 = vmul.f32 -1.442695, %v1477_v57 }
0x1308   :  { %5424 = vpow2.f32 %v4765_v13 }
0x1309   :  { %5426 = vpow2.f32 %v4766_v60 }
0x1310   :  { %v5421_v58 = vpop.eup %5420 }
0x1311   :  { %v5423_v59 = vpop.eup %5422  ;;  %1490 = vrot.lane.b32.xlu1 %v5421_v58, %s5936_s5 }
0x1312   :  { %1517 = vrot.lane.b32.xlu0 %v5423_v59, %s5936_s5  ;;  %v5425_v61 = vpop.eup %5424 }
0x1313   :  { %v5427_v62 = vpop.eup %5426  ;;  %v1481_v63 = vadd.f32 1.0, %v5425_v61 }
0x1314   :  { %v1508_v0 = vadd.f32 1.0, %v5427_v62 }
0x1315   :  { %5428 = vrcp.f32 %v1481_v63 }
0x1316   :  { %5430 = vrcp.f32 %v1508_v0 }
0x131f   :  { %v5429_v1 = vpop.eup %5428 }
0x1320   :  { %v5431_v5 = vpop.eup %5430  ;;  %v1488_v12 = vmul.f32 %v5429_v1, %v1486_v10 }
0x1321   :  { %v1515_v15 = vmul.f32 %v5431_v5, %v1513_v11  ;;  %v1713_v11 = vld [vmem:[#allocation8 + $0x10] sm:$0xff] }
0x1383   :  { %v1491_v3 = vpop.permute.xlu1 %1490 }
0x1384   :  { %v1493_v7 = vmul.f32 %v5429_v1, %v1491_v3  ;;  %v1518_v8 = vpop.permute.xlu0 %1517 }
0x1385   :  { %v1520_v9 = vmul.f32 %v5431_v5, %v1518_v8  ;;  %v1714_v8 = vld [vmem:[#allocation8 + $0x18] sm:$0xff] }
0x1386   :  { %1495 = vrot.lane.b32.xlu1 %v1493_v7, %s5937_s10  ;;  %v1712_v7 = vld [vmem:[#allocation8 + $0x8] sm:$0xff] }
0x1387   :  { %1522 = vrot.lane.b32.xlu0 %v1520_v9, %s5937_s10  ;;  %v1711_v9 = vld [vmem:[#allocation8] sm:$0xff]  ;;  %v5005_v10 = vpack.c.bf16 %v1714_v8, %v1712_v7 }
0x1389   :  { %5006 = vmatprep.subr.bf16.mxu0 %v5005_v10 }
0x13f8   :  { %v1496_v14 = vpop.permute.xlu1 %1495 }
0x13f9   :  { %v1498_v17 = vadd.f32 %v1496_v14, %v1488_v12  ;;  %v1523_v18 = vpop.permute.xlu0 %1522  ;;  %v1716_v12 = vld [vmem:[#allocation8 + $0x28] sm:$0xff]  ;;  %v1718_v14 = vld [vmem:[#allocation8 + $0x38] sm:$0xff] }
0x13fa   :  { %v1525_v16 = vadd.f32 %v1523_v18, %v1515_v15  ;;  %v5007_v15 = vpack.c.bf16 %v1713_v11, %v1711_v9  ;;  %v1715_v18 = vld [vmem:[#allocation8 + $0x20] sm:$0xff] }
0x13fb   :  { %5432 = vtanh.f32 %v1498_v17  ;;  %v1653_v13 = vrot.slane %v1498_v17, 6  ;;  %v5009_v17 = vpack.c.bf16 %v1718_v14, %v1716_v12  ;;  %v1727_v11 = vld [vmem:[#allocation11] sm:$0x3] }
0x13fc   :  { %5434 = vtanh.f32 %v1525_v16  ;;  %v1680_v59 = vrot.slane %v1525_v16, 2  ;;  %v1717_v16 = vld [vmem:[#allocation8 + $0x30] sm:$0xff]  ;;  %5008 = vmatpush1.bf16.msra.mxu0 %v5007_v15  ;;  %v1732_v12 = vrot.slane %v1727_v11, %v6230_v53  ;;  %v1736_v14 = vrot.slane %v1727_v11, %v6235_v55 }
0x13fd   :  { %5010 = vmatprep.subr.bf16.mxu0 %v5009_v17 }
0x1405   :  { %v5433_v19 = vpop.eup %5432 }
0x1406   :  { %v5435_v25 = vpop.eup %5434  ;;  %1501 = vrot.lane.b32.xlu1 %v5433_v19, %s5936_s5  ;;  %v1722_v19 = vld [vmem:[#allocation8 + $0x58] sm:$0xff] }
0x1407   :  { %1528 = vrot.lane.b32.xlu0 %v5435_v25, %s5936_s5 }
0x1478   :  { %v1502_v21 = vpop.permute.xlu1 %1501 }
0x1479   :  { %v1504_v28 = vmul.f32 %v5429_v1, %v1502_v21  ;;  %v1529_v32 = vpop.permute.xlu0 %1528  ;;  %v1719_v21 = vld [vmem:[#allocation8 + $0x40] sm:$0xff] }
0x147a   :  { %v6403_v2 = vmul.f32 %v5431_v5, %v1529_v32 }
0x147b   :  { %1533 = vrot.lane.b32.xlu0 %v1504_v28, %s5937_s10  ;;  %v1721_v28 = vld [vmem:[#allocation8 + $0x50] sm:$0xff] }
0x147c   :  { %v1542_v4 = vrot.slane %v6403_v2, 6  ;;  %v5015_v32 = vpack.c.bf16 %v1721_v28, %v1719_v21 }
0x147e   :  { %1543 = vrot.lane.b32.xlu1 %v1542_v4, %s5936_s5  ;;  %v1829_v4 = vld [vmem:[#allocation9 + $0x18] sm:$0xff] }
0x14ed   :  { %v6408_v35 = vpop.permute.xlu0 %1533 }
0x14f0   :  { %v1544_v38 = vpop.permute.xlu1 %1543 }
0x14f1   :  { %v1546_v41 = vsel %vm278_vm1, %v6408_v35, %v1544_v38 }
0x14f2   :  { %v1564_v22 = vrot.slane %v1546_v41, 4  ;;  %v1828_v41 = vld [vmem:[#allocation9 + $0x10] sm:$0xff] }
0x14f4   :  { %4767 = vmatmul.mubr.msk.f32.vlgmr.msra.gmra.mrb[12].mxu1 %vm382_vm3, %v1564_v22 }
0x14f5   :  { %1906 = vmatprep.mubr.f32.mxu1 %v5935_v29 }
0x15c7   :  { %v1633_v23 = vpop.f32.mrb[12].mxu1 }
0x15c8   :  { %v1640_v26 = vrot.slane %v1633_v23, 2  ;;  %v1635_v30 = vpop.f32.mrb[13].mxu1  ;;  %v1726_v23 = vld [vmem:[#allocation8 + $0x78] sm:$0xff] }
0x15c9   :  { %v1644_v34 = vadd.f32 %v1643_v31, %v1635_v30  ;;  %v1725_v30 = vld [vmem:[#allocation8 + $0x70] sm:$0xff] }
0x15ca   :  { %v1642_v36 = vadd.f32 %v1640_v26, %v1638_v33  ;;  %v1723_v26 = vld [vmem:[#allocation8 + $0x60] sm:$0xff]  ;;  %v1831_v33 = vld [vmem:[#allocation9 + $0x28] sm:$0xff] }
0x15cb   :  { %5436 = vtanh.f32 %v1644_v34  ;;  %v4769_v44 = vmul.f32 -1.442695, %v1644_v34  ;;  %v5019_v31 = vpack.c.bf16 %v1725_v30, %v1723_v26  ;;  %v1833_v34 = vld [vmem:[#allocation9 + $0x38] sm:$0xff] }
0x15cc   :  { %5438 = vtanh.f32 %v1642_v36  ;;  %v4768_v45 = vmul.f32 -1.442695, %v1642_v36  ;;  %v6446_v36 = vpack.c.bf16 %v1833_v34, %v1831_v33 }
0x15cd   :  { %5440 = vpow2.f32 %v4769_v44 }
0x15ce   :  { %5442 = vpow2.f32 %v4768_v45  ;;  %v1835_v45 = vld [vmem:[#allocation9 + $0x48] sm:$0xff] }
0x15d5   :  { %v5437_v39 = vpop.eup %5436 }
0x15d6   :  { %v5439_v42 = vpop.eup %5438  ;;  %1684 = vrot.lane.b32.xlu0 %v5437_v39, %s5936_s5  ;;  %v1830_v39 = vld [vmem:[#allocation9 + $0x20] sm:$0xff] }
0x15d7   :  { %1657 = vrot.lane.b32.xlu1 %v5439_v42, %s5936_s5  ;;  %v5441_v46 = vpop.eup %5440  ;;  %v1832_v42 = vld [vmem:[#allocation9 + $0x30] sm:$0xff] }
0x15d8   :  { %v5443_v47 = vpop.eup %5442  ;;  %v1675_v49 = vadd.f32 1.0, %v5441_v46  ;;  %v6448_v44 = vpack.c.bf16 %v1832_v42, %v1830_v39  ;;  %v1837_v46 = vld [vmem:[#allocation9 + $0x58] sm:$0xff] }
0x15d9   :  { %v1648_v50 = vadd.f32 1.0, %v5443_v47 }
0x15da   :  { %5444 = vrcp.f32 %v1675_v49  ;;  %v6453_v49 = vpack.c.bf16 %v1837_v46, %v1835_v45 }
0x15db   :  { %5446 = vrcp.f32 %v1648_v50  ;;  %v1834_v50 = vld [vmem:[#allocation9 + $0x40] sm:$0xff] }
0x15e4   :  { %v6416_v51 = vpop.eup %5444 }
0x15e5   :  { %v6418_v54 = vpop.eup %5446  ;;  %v1682_v60 = vmul.f32 %v6416_v51, %v1680_v59 }
0x15e6   :  { %v1655_v62 = vmul.f32 %v6418_v54, %v1653_v13  ;;  %v1839_v13 = vld [vmem:[#allocation9 + $0x68] sm:$0xff] }
0x1648   :  { %v1685_v52 = vpop.permute.xlu0 %1684 }
0x1649   :  { %v1687_v56 = vmul.f32 %v6416_v51, %v1685_v52  ;;  %v1658_v57 = vpop.permute.xlu1 %1657  ;;  %v1836_v52 = vld [vmem:[#allocation9 + $0x50] sm:$0xff] }
0x164a   :  { %v1660_v58 = vmul.f32 %v6418_v54, %v1658_v57 }
0x164b   :  { %1689 = vrot.lane.b32.xlu0 %v1687_v56, %s5937_s10 }
0x164c   :  { %1662 = vrot.lane.b32.xlu1 %v1660_v58, %s5937_s10  ;;  %v6456_v58 = vpack.c.bf16 %v1836_v52, %v1834_v50 }
0x16bd   :  { %v1690_v61 = vpop.permute.xlu0 %1689 }
0x16be   :  { %v1692_v63 = vadd.f32 %v1690_v61, %v1682_v60  ;;  %v1663_v0 = vpop.permute.xlu1 %1662  ;;  %v1841_v60 = vld [vmem:[#allocation9 + $0x78] sm:$0xff]  ;;  %v1838_v61 = vld [vmem:[#allocation9 + $0x60] sm:$0xff] }
0x16bf   :  { %v1665_v1 = vadd.f32 %v1663_v0, %v1655_v62 }
0x16c0   :  { %5448 = vtanh.f32 %v1692_v63  ;;  %v1840_v63 = vld [vmem:[#allocation9 + $0x70] sm:$0xff] }
0x16c1   :  { %5450 = vtanh.f32 %v1665_v1  ;;  %v6466_v0 = vpack.c.bf16 %v1840_v63, %v1838_v61 }
0x16ca   :  { %v5449_v3 = vpop.eup %5448 }
0x16cb   :  { %v5451_v5 = vpop.eup %5450  ;;  %1695 = vrot.lane.b32.xlu0 %v5449_v3, %s5936_s5 }
0x16cc   :  { %1668 = vrot.lane.b32.xlu1 %v5451_v5, %s5936_s5 }
0x16cf   :  { %1199 = vrot.lane.b32.xlu0 %v6352_v24, %s5936_s5  ;;  %v5011_v24 = vpack.c.bf16 %v1717_v16, %v1715_v18 }
0x16d0   :  { %1368 = vrot.lane.b32.xlu1 %v6384_v40, %s5936_s5  ;;  %v1720_v40 = vld [vmem:[#allocation8 + $0x48] sm:$0xff] }
0x16d1   :  { %5012 = vmatpush1.bf16.msra.mxu0 %v5011_v24  ;;  %v5013_v25 = vpack.c.bf16 %v1722_v19, %v1720_v40 }
0x16d3   :  { %1538 = vrot.lane.b32.xlu0 %v6403_v2, %s5936_s5  ;;  %v1827_v2 = vld [vmem:[#allocation9 + $0x8] sm:$0xff]  ;;  %5014 = vmatprep.subr.bf16.mxu0 %v5013_v25 }
0x16d4   :  { %690 = vrot.lane.b32.xlu1 %v6282_v20, %s5936_s5  ;;  %v6440_v38 = vpack.c.bf16 %v1829_v4, %v1827_v2  ;;  %v1826_v20 = vld [vmem:[#allocation9] sm:$0xff] }
0x16d5   :  { %5016 = vmatpush1.bf16.msra.mxu0 %v5015_v32  ;;  %v6442_v22 = vpack.c.bf16 %v1828_v41, %v1826_v20 }
0x16d6   :  { %5022 = vmatprep.subr.bf16.mxu1 %v6440_v38 }
0x16d7   :  { %519 = vrot.lane.b32.xlu0 %v6251_v37, %s5936_s5  ;;  %v1724_v37 = vld [vmem:[#allocation8 + $0x68] sm:$0xff]  ;;  %5024 = vmatpush1.bf16.msra.mxu1 %v6442_v22 }
0x16d8   :  { %5026 = vmatprep.subr.bf16.mxu1 %v6446_v36 }
0x16db   :  { %862 = vrot.lane.b32.xlu0 %v6312_v6, %s5936_s5  ;;  %v5017_v6 = vpack.c.bf16 %v1726_v23, %v1724_v37  ;;  %5028 = vmatpush1.bf16.msra.mxu1 %v6448_v44 }
0x16dc   :  { %5030 = vmatprep.subr.bf16.mxu1 %v6453_v49 }
0x16dd   :  { %5018 = vmatprep.subr.bf16.mxu0 %v5017_v6 }
0x16de   :  { %5020 = vmatpush1.bf16.msra.mxu0 %v5019_v31 }
0x16df   :  { %5038 = vmatprep.subr.bf16.mxu0 %v6440_v38  ;;  %5032 = vmatpush1.bf16.msra.mxu1 %v6456_v58 }
0x173d   :  { %v1696_v47 = vpop.permute.xlu0 %1695 }
0x173e   :  { %v1698_v56 = vmul.f32 %v6416_v51, %v1696_v47  ;;  %v1669_v57 = vpop.permute.xlu1 %1668  ;;  %v6463_v51 = vpack.c.bf16 %v1841_v60, %v1839_v13 }
0x173f   :  { %v1671_v59 = vmul.f32 %v6418_v54, %v1669_v57 }
0x1740   :  { %1705 = vrot.lane.b32.xlu1 %v1698_v56, %s5936_s5  ;;  %5034 = vmatprep.subr.bf16.mxu1 %v6463_v51 }
0x1741   :  { %1700 = vrot.lane.b32.xlu0 %v1671_v59, %s5937_s10  ;;  %v1200_v62 = vpop.permute.xlu0 %1199  ;;  %5036 = vmatpush1.bf16.msra.mxu1 %v6466_v0 }
0x1742   :  { %1202 = vst.msk [vmem:[#allocation2] sm:$0xc0] %vm522_vm7, %v1200_v62  ;;  %v1369_v54 = vpop.permute.xlu1 %1368  ;;  %5054 = vmatprep.subr.bf16.mxu1 %v6440_v38 }
0x1743   :  { %1371 = vst.msk [vmem:[#allocation2] sm:$0x30] %vm693_vm8, %v1369_v54 }
0x1744   :  { %1031 = vrot.lane.b32.xlu1 %v6336_v48, %s5936_s5  ;;  %1907 = vmatmul.mubr.f32.vlgmr.msra.gmra.mrb[14].mxu1 %v5935_v29 }
0x1745   :  { %v1539_v1 = vpop.permute.xlu0 %1538  ;;  %5056 = vmatpush1.bf16.msra.mxu1 %v6442_v22  ;;  %2236 = vmatprep.mubr.f32.mxu1 %v5935_v29 }
0x1746   :  { %1541 = vst.msk [vmem:[#allocation2] sm:$0xc] %vm865_vm9, %v1539_v1  ;;  %v691_v3 = vpop.permute.xlu1 %690  ;;  %5058 = vmatprep.subr.bf16.mxu1 %v6446_v36 }
0x1747   :  { %694 = vst.msk [vmem:[#allocation2 + $0x8] sm:$0x30] %vm693_vm8, %v691_v3 }
0x1748   :  { %1536 = vst.msk [vmem:[#allocation2 + $0x8] sm:$0x30] %vm859_vm5, %v6408_v35 }
0x1749   :  { %v520_v48 = vpop.permute.xlu0 %519  ;;  %5060 = vmatpush1.bf16.msra.mxu1 %v6448_v44 }
0x174a   :  { %523 = vst.msk [vmem:[#allocation2 + $0x8] sm:$0xc0] %vm522_vm7, %v520_v48  ;;  %5062 = vmatprep.subr.bf16.mxu1 %v6453_v49 }
0x174d   :  { %v863_v5 = vpop.permute.xlu0 %862  ;;  %5064 = vmatpush1.bf16.msra.mxu1 %v6456_v58 }
0x174e   :  { %866 = vst.msk [vmem:[#allocation2 + $0x8] sm:$0xc] %vm865_vm9, %v863_v5  ;;  %5066 = vmatprep.subr.bf16.mxu1 %v6463_v51 }
0x174f   :  { %1366 = vst.msk [vmem:[#allocation2 + $0x8] sm:$0xc] %vm687_vm4, %v6389_v43 }
0x1751   :  { %5068 = vmatpush1.bf16.msra.mxu1 %v6466_v0 }
0x1752   :  { %5086 = vmatprep.subr.bf16.mxu1 %v6440_v38 }
0x17b2   :  { %v1706_v35 = vpop.permute.xlu1 %1705 }
0x17b3   :  { %1708 = vst.msk [vmem:[#allocation2] sm:$0x3] %vm1034_vm10, %v1706_v35  ;;  %v1701_v7 = vpop.permute.xlu0 %1700 }
0x17b4   :  { %1703 = vst.msk [vmem:[#allocation2 + $0x8] sm:$0xc0] %vm1028_vm6, %v1701_v7 }
0x17b6   :  { %v1032_v8 = vpop.permute.xlu1 %1031 }
0x17b7   :  { %1035 = vst.msk [vmem:[#allocation2 + $0x8] sm:$0x3] %vm1034_vm10, %v1032_v8 }
0x17b8   :  { %1197 = vst.msk [vmem:[#allocation2 + $0x8] sm:$0x3] %vm516_vm2, %v6356_v27 }
0x17ba   :  { %v1709_v43 = vld [vmem:[#allocation2] sm:$0xff] }
0x17bb   :  { %4770 = vmatmul.mubr.msk.f32.vlgmr.msra.gmra.mrb[8].mxu0 %vm382_vm3, %v1709_v43 }
0x17bc   :  { %1815 = vmatprep.mubr.f32.mxu0 %v5935_v29  ;;  %5040 = vmatpush1.bf16.msra.mxu0 %v6442_v22 }
0x17bd   :  { %5042 = vmatprep.subr.bf16.mxu0 %v6446_v36 }
0x17bf   :  { %v1710_v9 = vld [vmem:[#allocation2 + $0x8] sm:$0xff] }
0x17c0   :  { %4771 = vmatmul.mubr.msk.f32.gmra.mrb[10].mxu0 %vm382_vm3, %v1710_v9 }
0x17c1   :  { %5044 = vmatpush1.bf16.msra.mxu0 %v6448_v44  ;;  %2066 = vmatprep.mubr.f32.mxu0 %v5935_v29 }
0x17c2   :  { %5046 = vmatprep.subr.bf16.mxu0 %v6453_v49 }
0x17c5   :  { %5048 = vmatpush1.bf16.msra.mxu0 %v6456_v58 }
0x17c6   :  { %5050 = vmatprep.subr.bf16.mxu0 %v6463_v51 }
0x17c9   :  { %5052 = vmatpush1.bf16.msra.mxu0 %v6466_v0 }
0x17ca   :  { %5070 = vmatprep.subr.bf16.mxu0 %v6440_v38 }
0x1817   :  { %v1908_v27 = vpop.f32.mrb[14].mxu1 }
0x1818   :  { %v1910_v10 = vpop.f32.mrb[15].mxu1 }
0x1819   :  { %v1917_v32 = vrot.slane %v1910_v10, 2 }
0x188e   :  { %v1811_v15 = vpop.f32.mrb[8].mxu0 }
0x188f   :  { %v1812_v17 = vadd.f32 %v1811_v15, %v1732_v12  ;;  %v1813_v18 = vpop.f32.mrb[9].mxu0 }
0x1890   :  { %v1814_v16 = vadd.f32 %v1813_v18, %v1736_v14 }
0x1891   :  { %1822 = vst [vmem:[#allocation3] sm:$0xff] %v1812_v17 }
0x1892   :  { %1823 = vst [vmem:[#allocation3 + $0x8] sm:$0xff] %v1814_v16 }
0x1893   :  { %v1817_v24 = vpop.f32.mrb[10].mxu0 }
0x1894   :  { %v1818_v40 = vadd.f32 %v1817_v24, %v1732_v12  ;;  %v1819_v19 = vpop.f32.mrb[11].mxu0 }
0x1895   :  { %v1820_v25 = vadd.f32 %v1819_v19, %v1736_v14 }
0x1896   :  { %1824 = vst [vmem:[#allocation3 + $0x10] sm:$0xff] %v1818_v40 }
0x1897   :  { %1825 = vst [vmem:[#allocation3 + $0x18] sm:$0xff] %v1820_v25 }
0x1898   :  { %v1913_v21 = vld [vmem:[#allocation3] sm:$0x3]  ;;  %v2073_v43 = vld [vmem:[#allocation3] sm:$0xc] }
0x1899   :  { %v1914_v28 = vadd.f32 %v1913_v21, %v1908_v27 }
0x189b   :  { %5452 = vtanh.f32 %v1914_v28  ;;  %v4772_v37 = vmul.f32 -1.442695, %v1914_v28 }
0x189e   :  { %v1915_v2 = vld [vmem:[#allocation3 + $0x18] sm:$0xc0]  ;;  %v2078_v10 = vld [vmem:[#allocation3 + $0x18] sm:$0x30] }
0x189f   :  { %v1919_v4 = vadd.f32 %v1917_v32, %v1915_v2 }
0x18a1   :  { %5454 = vtanh.f32 %v1919_v4  ;;  %v4773_v23 = vmul.f32 -1.442695, %v1919_v4 }
0x18a2   :  { %5456 = vpow2.f32 %v4772_v37 }
0x18a3   :  { %5458 = vpow2.f32 %v4773_v23 }
0x18a5   :  { %v5453_v20 = vpop.eup %5452 }
0x18a6   :  { %1929 = vrot.lane.b32.xlu0 %v5453_v20, %s5936_s5 }
0x18ab   :  { %v5455_v41 = vpop.eup %5454 }
0x18ac   :  { %1953 = vrot.lane.b32.xlu1 %v5455_v41, %s5936_s5  ;;  %v5457_v6 = vpop.eup %5456 }
0x18ad   :  { %v1923_v26 = vadd.f32 1.0, %v5457_v6  ;;  %v5459_v30 = vpop.eup %5458 }
0x18ae   :  { %v1947_v31 = vadd.f32 1.0, %v5459_v30 }
0x18af   :  { %5460 = vrcp.f32 %v1923_v26 }
0x18b0   :  { %5462 = vrcp.f32 %v1947_v31 }
0x18b9   :  { %v5461_v33 = vpop.eup %5460 }
0x18ba   :  { %v5463_v42 = vpop.eup %5462  ;;  %v1927_v47 = vmul.f32 0.0, %v5461_v33 }
0x18bb   :  { %v1951_v56 = vmul.f32 0.0, %v5463_v42 }
0x1918   :  { %v1930_v34 = vpop.permute.xlu0 %1929 }
0x1919   :  { %v1932_v39 = vmul.f32 %v5461_v33, %v1930_v34 }
0x191b   :  { %1934 = vrot.lane.b32.xlu0 %v1932_v39, %s5937_s10 }
0x191e   :  { %v1954_v45 = vpop.permute.xlu1 %1953 }
0x191f   :  { %v1956_v46 = vmul.f32 %v5463_v42, %v1954_v45 }
0x1921   :  { %1958 = vrot.lane.b32.xlu1 %v1956_v46, %s5937_s10 }
0x198d   :  { %v1935_v50 = vpop.permute.xlu0 %1934 }
0x198e   :  { %v6515_v52 = vadd.f32 %v1935_v50, %v1927_v47 }
0x1990   :  { %5464 = vtanh.f32 %v6515_v52  ;;  %v2091_v2 = vrot.slane %v6515_v52, 6 }
0x1993   :  { %v1959_v57 = vpop.permute.xlu1 %1958 }
0x1994   :  { %v6518_v59 = vadd.f32 %v1959_v57, %v1951_v56 }
0x1996   :  { %5466 = vtanh.f32 %v6518_v59  ;;  %v2118_v4 = vrot.slane %v6518_v59, 2 }
0x199a   :  { %v5465_v13 = vpop.eup %5464 }
0x199b   :  { %1940 = vrot.lane.b32.xlu0 %v5465_v13, %s5936_s5  ;;  %v2243_v13 = vld [vmem:[#allocation3] sm:$0x30] }
0x19a0   :  { %v5467_v60 = vpop.eup %5466 }
0x19a1   :  { %1964 = vrot.lane.b32.xlu1 %v5467_v60, %s5936_s5 }
0x1a0d   :  { %v1941_v61 = vpop.permute.xlu0 %1940 }
0x1a0e   :  { %v1943_v62 = vmul.f32 %v5461_v33, %v1941_v61 }
0x1a10   :  { %1969 = vrot.lane.b32.xlu1 %v1943_v62, %s5937_s10  ;;  %v2248_v62 = vld [vmem:[#allocation3 + $0x18] sm:$0xc] }
0x1a13   :  { %v1965_v63 = vpop.permute.xlu1 %1964 }
0x1a14   :  { %v6524_v54 = vmul.f32 %v5463_v42, %v1965_v63 }
0x1a16   :  { %v1978_v1 = vrot.slane %v6524_v54, 6 }
0x1a18   :  { %1979 = vrot.lane.b32.xlu0 %v1978_v1, %s5936_s5 }
0x1a82   :  { %v1970_v3 = vpop.permute.xlu1 %1969 }
0x1a83   :  { %1972 = vst.msk [vmem:[#allocation2] sm:$0x3] %vm516_vm2, %v1970_v3 }
0x1a8a   :  { %v1980_v48 = vpop.permute.xlu0 %1979 }
0x1a8b   :  { %v1982_v5 = vsel %vm278_vm1, %v1970_v3, %v1980_v48 }
0x1a8c   :  { %4774 = vmatmul.mubr.msk.f32.vlgmr.msra.gmra.mrb[12].mxu0 %vm382_vm3, %v1982_v5 }
0x1a8d   :  { %5072 = vmatpush1.bf16.msra.mxu0 %v6442_v22  ;;  %2406 = vmatprep.mubr.f32.mxu0 %v5935_v29 }
0x1a8e   :  { %5074 = vmatprep.subr.bf16.mxu0 %v6446_v36 }
0x1a91   :  { %5076 = vmatpush1.bf16.msra.mxu0 %v6448_v44 }
0x1a92   :  { %5078 = vmatprep.subr.bf16.mxu0 %v6453_v49 }
0x1a95   :  { %5080 = vmatpush1.bf16.msra.mxu0 %v6456_v58 }
0x1a96   :  { %5082 = vmatprep.subr.bf16.mxu0 %v6463_v51 }
0x1a99   :  { %5084 = vmatpush1.bf16.msra.mxu0 %v6466_v0 }
0x1a9a   :  { %5102 = vmatprep.subr.bf16.mxu0 %v6440_v38 }
0x1b5f   :  { %v2068_v35 = vpop.f32.mrb[12].mxu0 }
0x1b60   :  { %v2075_v7 = vrot.slane %v2068_v35, 6  ;;  %v2070_v8 = vpop.f32.mrb[13].mxu0 }
0x1b61   :  { %v2080_v9 = vrot.slane %v2070_v8, 4 }
0x1b62   :  { %v2077_v27 = vadd.f32 %v2075_v7, %v2073_v43 }
0x1b63   :  { %v2082_v11 = vadd.f32 %v2080_v9, %v2078_v10 }
0x1b64   :  { %5468 = vtanh.f32 %v2077_v27  ;;  %v4775_v15 = vmul.f32 -1.442695, %v2077_v27 }
0x1b65   :  { %5470 = vtanh.f32 %v2082_v11  ;;  %v4776_v17 = vmul.f32 -1.442695, %v2082_v11 }
0x1b66   :  { %5472 = vpow2.f32 %v4775_v15 }
0x1b67   :  { %5474 = vpow2.f32 %v4776_v17 }
0x1b6e   :  { %v5469_v12 = vpop.eup %5468 }
0x1b6f   :  { %v5471_v14 = vpop.eup %5470  ;;  %2095 = vrot.lane.b32.xlu0 %v5469_v12, %s5936_s5 }
0x1b70   :  { %2122 = vrot.lane.b32.xlu1 %v5471_v14, %s5936_s5  ;;  %v5473_v38 = vpop.eup %5472 }
0x1b71   :  { %v5475_v18 = vpop.eup %5474  ;;  %v2086_v16 = vadd.f32 1.0, %v5473_v38 }
0x1b72   :  { %v2113_v24 = vadd.f32 1.0, %v5475_v18 }
0x1b73   :  { %5476 = vrcp.f32 %v2086_v16 }
0x1b74   :  { %5478 = vrcp.f32 %v2113_v24 }
0x1b7d   :  { %v5477_v40 = vpop.eup %5476 }
0x1b7e   :  { %v5479_v25 = vpop.eup %5478  ;;  %v2093_v20 = vmul.f32 %v5477_v40, %v2091_v2 }
0x1b7f   :  { %v2120_v37 = vmul.f32 %v5479_v25, %v2118_v4 }
0x1be1   :  { %v2096_v19 = vpop.permute.xlu0 %2095 }
0x1be2   :  { %v2098_v21 = vmul.f32 %v5477_v40, %v2096_v19  ;;  %v2123_v28 = vpop.permute.xlu1 %2122 }
0x1be3   :  { %v2125_v32 = vmul.f32 %v5479_v25, %v2123_v28 }
0x1be4   :  { %2100 = vrot.lane.b32.xlu0 %v2098_v21, %s5937_s10 }
0x1be5   :  { %2127 = vrot.lane.b32.xlu1 %v2125_v32, %s5937_s10 }
0x1c56   :  { %v2101_v41 = vpop.permute.xlu0 %2100 }
0x1c57   :  { %v6546_v23 = vadd.f32 %v2101_v41, %v2093_v20  ;;  %v2128_v6 = vpop.permute.xlu1 %2127 }
0x1c58   :  { %v6548_v26 = vadd.f32 %v2128_v6, %v2120_v37 }
0x1c59   :  { %5480 = vtanh.f32 %v6546_v23  ;;  %v2261_v15 = vrot.slane %v6546_v23, 6 }
0x1c5a   :  { %5482 = vtanh.f32 %v6548_v26  ;;  %v2288_v17 = vrot.slane %v6548_v26, 2 }
0x1c63   :  { %v5481_v30 = vpop.eup %5480 }
0x1c64   :  { %v5483_v31 = vpop.eup %5482  ;;  %2106 = vrot.lane.b32.xlu0 %v5481_v30, %s5936_s5 }
0x1c65   :  { %2133 = vrot.lane.b32.xlu1 %v5483_v31, %s5936_s5 }
0x1cd6   :  { %v2107_v33 = vpop.permute.xlu0 %2106 }
0x1cd7   :  { %v2109_v34 = vmul.f32 %v5477_v40, %v2107_v33  ;;  %v2134_v39 = vpop.permute.xlu1 %2133  ;;  %v2418_v33 = vld [vmem:[#allocation3 + $0x18] sm:$0x3] }
0x1cd8   :  { %v6554_v42 = vmul.f32 %v5479_v25, %v2134_v39 }
0x1cd9   :  { %2138 = vrot.lane.b32.xlu1 %v2109_v34, %s5937_s10  ;;  %v2413_v34 = vld [vmem:[#allocation3] sm:$0xc0] }
0x1cda   :  { %v2147_v45 = vrot.slane %v6554_v42, 2 }
0x1cdc   :  { %2148 = vrot.lane.b32.xlu0 %v2147_v45, %s5936_s5 }
0x1d4b   :  { %v2139_v46 = vpop.permute.xlu1 %2138 }
0x1d4c   :  { %2141 = vst.msk [vmem:[#allocation2] sm:$0xc] %vm687_vm4, %v2139_v46 }
0x1d4e   :  { %v2149_v47 = vpop.permute.xlu0 %2148 }
0x1d4f   :  { %v2151_v50 = vsel %vm278_vm1, %v2139_v46, %v2149_v47 }
0x1d50   :  { %v2169_v52 = vrot.slane %v2151_v50, 2 }
0x1d52   :  { %4777 = vmatmul.mubr.msk.f32.vlgmr.msra.gmra.mrb[16].mxu1 %vm382_vm3, %v2169_v52 }
0x1d53   :  { %5088 = vmatpush1.bf16.msra.mxu1 %v6442_v22  ;;  %2573 = vmatprep.mubr.f32.mxu1 %v5935_v29 }
0x1d54   :  { %5090 = vmatprep.subr.bf16.mxu1 %v6446_v36 }
0x1d57   :  { %5092 = vmatpush1.bf16.msra.mxu1 %v6448_v44 }
0x1d58   :  { %5094 = vmatprep.subr.bf16.mxu1 %v6453_v49 }
0x1d5b   :  { %5096 = vmatpush1.bf16.msra.mxu1 %v6456_v58 }
0x1d5c   :  { %5098 = vmatprep.subr.bf16.mxu1 %v6463_v51 }
0x1d5f   :  { %5100 = vmatpush1.bf16.msra.mxu1 %v6466_v0 }
0x1e25   :  { %v2238_v56 = vpop.f32.mrb[16].mxu1 }
0x1e26   :  { %v2245_v57 = vrot.slane %v2238_v56, 4  ;;  %v2240_v59 = vpop.f32.mrb[17].mxu1 }
0x1e27   :  { %v2250_v60 = vrot.slane %v2240_v59, 6 }
0x1e28   :  { %v2247_v61 = vadd.f32 %v2245_v57, %v2243_v13 }
0x1e29   :  { %v2252_v63 = vadd.f32 %v2250_v60, %v2248_v62 }
0x1e2a   :  { %5484 = vtanh.f32 %v2247_v61  ;;  %v4778_v48 = vmul.f32 -1.442695, %v2247_v61 }
0x1e2b   :  { %5486 = vtanh.f32 %v2252_v63  ;;  %v4779_v5 = vmul.f32 -1.442695, %v2252_v63 }
0x1e2c   :  { %5488 = vpow2.f32 %v4778_v48 }
0x1e2d   :  { %5490 = vpow2.f32 %v4779_v5 }
0x1e34   :  { %v5485_v1 = vpop.eup %5484 }
0x1e35   :  { %v5487_v3 = vpop.eup %5486  ;;  %2265 = vrot.lane.b32.xlu0 %v5485_v1, %s5936_s5 }
0x1e36   :  { %2292 = vrot.lane.b32.xlu1 %v5487_v3, %s5936_s5  ;;  %v5489_v35 = vpop.eup %5488 }
0x1e37   :  { %v5491_v7 = vpop.eup %5490  ;;  %v2256_v8 = vadd.f32 1.0, %v5489_v35 }
0x1e38   :  { %v2283_v43 = vadd.f32 1.0, %v5491_v7 }
0x1e39   :  { %5492 = vrcp.f32 %v2256_v8 }
0x1e3a   :  { %5494 = vrcp.f32 %v2283_v43 }
0x1e43   :  { %v5493_v9 = vpop.eup %5492 }
0x1e44   :  { %v5495_v10 = vpop.eup %5494  ;;  %v2263_v38 = vmul.f32 %v5493_v9, %v2261_v15 }
0x1e45   :  { %v2290_v16 = vmul.f32 %v5495_v10, %v2288_v17 }
0x1ea7   :  { %v2266_v27 = vpop.permute.xlu0 %2265 }
0x1ea8   :  { %v2268_v11 = vmul.f32 %v5493_v9, %v2266_v27  ;;  %v2293_v12 = vpop.permute.xlu1 %2292 }
0x1ea9   :  { %v2295_v14 = vmul.f32 %v5495_v10, %v2293_v12 }
0x1eaa   :  { %2270 = vrot.lane.b32.xlu0 %v2268_v11, %s5937_s10 }
0x1eab   :  { %2297 = vrot.lane.b32.xlu1 %v2295_v14, %s5937_s10 }
0x1f1c   :  { %v2271_v18 = vpop.permute.xlu0 %2270 }
0x1f1d   :  { %v6576_v24 = vadd.f32 %v2271_v18, %v2263_v38  ;;  %v2298_v40 = vpop.permute.xlu1 %2297 }
0x1f1e   :  { %v2300_v19 = vadd.f32 %v2298_v40, %v2290_v16 }
0x1f1f   :  { %5496 = vtanh.f32 %v6576_v24  ;;  %v2428_v48 = vrot.slane %v6576_v24, 6 }
0x1f20   :  { %5498 = vtanh.f32 %v2300_v19  ;;  %v2455_v3 = vrot.slane %v2300_v19, 2  ;;  %v2580_v19 = vld [vmem:[#allocation3 + $0x10] sm:$0x3] }
0x1f29   :  { %v5497_v25 = vpop.eup %5496 }
0x1f2a   :  { %v5499_v21 = vpop.eup %5498  ;;  %2276 = vrot.lane.b32.xlu0 %v5497_v25, %s5936_s5 }
0x1f2b   :  { %2303 = vrot.lane.b32.xlu1 %v5499_v21, %s5936_s5 }
0x1f9c   :  { %v2277_v28 = vpop.permute.xlu0 %2276 }
0x1f9d   :  { %v2279_v32 = vmul.f32 %v5493_v9, %v2277_v28  ;;  %v2304_v2 = vpop.permute.xlu1 %2303 }
0x1f9e   :  { %v6581_v4 = vmul.f32 %v5495_v10, %v2304_v2 }
0x1f9f   :  { %2308 = vrot.lane.b32.xlu1 %v2279_v32, %s5937_s10  ;;  %v2582_v32 = vld [vmem:[#allocation3 + $0x8] sm:$0xc0] }
0x1fa0   :  { %v2317_v20 = vrot.slane %v6581_v4, 6 }
0x1fa2   :  { %2318 = vrot.lane.b32.xlu0 %v2317_v20, %s5936_s5 }
0x2011   :  { %v2309_v41 = vpop.permute.xlu1 %2308 }
0x2012   :  { %2311 = vst.msk [vmem:[#allocation2] sm:$0x30] %vm859_vm5, %v2309_v41 }
0x2014   :  { %v2319_v37 = vpop.permute.xlu0 %2318 }
0x2015   :  { %v2321_v23 = vsel %vm278_vm1, %v2309_v41, %v2319_v37 }
0x2016   :  { %v2339_v6 = vrot.slane %v2321_v23, 4 }
0x2018   :  { %4780 = vmatmul.mubr.msk.f32.vlgmr.msra.gmra.mrb[14].mxu0 %vm382_vm3, %v2339_v6 }
0x2019   :  { %5104 = vmatpush1.bf16.msra.mxu0 %v6442_v22  ;;  %2739 = vmatprep.mubr.f32.mxu0 %v5935_v29 }
0x201a   :  { %5106 = vmatprep.subr.bf16.mxu0 %v6446_v36 }
0x201d   :  { %5108 = vmatpush1.bf16.msra.mxu0 %v6448_v44 }
0x201e   :  { %5110 = vmatprep.subr.bf16.mxu0 %v6453_v49 }
0x2021   :  { %5112 = vmatpush1.bf16.msra.mxu0 %v6456_v58 }
0x2022   :  { %5114 = vmatprep.subr.bf16.mxu0 %v6463_v51 }
0x2025   :  { %5116 = vmatpush1.bf16.msra.mxu0 %v6466_v0 }
0x20eb   :  { %v2408_v26 = vpop.f32.mrb[14].mxu0 }
0x20ec   :  { %v2415_v30 = vrot.slane %v2408_v26, 2  ;;  %v2410_v31 = vpop.f32.mrb[15].mxu0 }
0x20ed   :  { %v2419_v22 = vadd.f32 %v2418_v33, %v2410_v31 }
0x20ee   :  { %v2417_v39 = vadd.f32 %v2415_v30, %v2413_v34 }
0x20ef   :  { %5500 = vtanh.f32 %v2419_v22  ;;  %v4782_v47 = vmul.f32 -1.442695, %v2419_v22 }
0x20f0   :  { %5502 = vtanh.f32 %v2417_v39  ;;  %v4781_v50 = vmul.f32 -1.442695, %v2417_v39 }
0x20f1   :  { %5504 = vpow2.f32 %v4782_v47 }
0x20f2   :  { %5506 = vpow2.f32 %v4781_v50 }
0x20f9   :  { %v5501_v45 = vpop.eup %5500 }
0x20fa   :  { %v5503_v46 = vpop.eup %5502  ;;  %2459 = vrot.lane.b32.xlu1 %v5501_v45, %s5936_s5 }
0x20fb   :  { %2432 = vrot.lane.b32.xlu0 %v5503_v46, %s5936_s5  ;;  %v5505_v52 = vpop.eup %5504 }
0x20fc   :  { %v5507_v56 = vpop.eup %5506  ;;  %v2450_v57 = vadd.f32 1.0, %v5505_v52 }
0x20fd   :  { %v2423_v59 = vadd.f32 1.0, %v5507_v56 }
0x20fe   :  { %5508 = vrcp.f32 %v2450_v57 }
0x20ff   :  { %5510 = vrcp.f32 %v2423_v59 }
0x2108   :  { %v5509_v13 = vpop.eup %5508 }
0x2109   :  { %v5511_v61 = vpop.eup %5510  ;;  %v2457_v5 = vmul.f32 %v5509_v13, %v2455_v3 }
0x210a   :  { %v2430_v7 = vmul.f32 %v5511_v61, %v2428_v48 }
0x216c   :  { %v2460_v60 = vpop.permute.xlu1 %2459 }
0x216d   :  { %v2462_v62 = vmul.f32 %v5509_v13, %v2460_v60  ;;  %v2433_v63 = vpop.permute.xlu0 %2432 }
0x216e   :  { %v2435_v1 = vmul.f32 %v5511_v61, %v2433_v63 }
0x216f   :  { %2464 = vrot.lane.b32.xlu1 %v2462_v62, %s5937_s10 }
0x2170   :  { %2437 = vrot.lane.b32.xlu0 %v2435_v1, %s5937_s10 }
0x21e1   :  { %v2465_v35 = vpop.permute.xlu1 %2464 }
0x21e2   :  { %v2467_v8 = vadd.f32 %v2465_v35, %v2457_v5  ;;  %v2438_v43 = vpop.permute.xlu0 %2437 }
0x21e3   :  { %v2440_v9 = vadd.f32 %v2438_v43, %v2430_v7 }
0x21e4   :  { %5512 = vtanh.f32 %v2467_v8  ;;  %v2622_v52 = vrot.slane %v2467_v8, 2 }
0x21e5   :  { %5514 = vtanh.f32 %v2440_v9  ;;  %v2595_v47 = vrot.slane %v2440_v9, 6 }
0x21ee   :  { %v5513_v27 = vpop.eup %5512 }
0x21ef   :  { %v5515_v10 = vpop.eup %5514  ;;  %2470 = vrot.lane.b32.xlu1 %v5513_v27, %s5936_s5 }
0x21f0   :  { %2443 = vrot.lane.b32.xlu0 %v5515_v10, %s5936_s5  ;;  %v2746_v10 = vld [vmem:[#allocation3 + $0x10] sm:$0xc] }
0x2261   :  { %v2471_v11 = vpop.permute.xlu1 %2470 }
0x2262   :  { %v6604_v12 = vmul.f32 %v5509_v13, %v2471_v11  ;;  %v2444_v14 = vpop.permute.xlu0 %2443 }
0x2263   :  { %v2446_v15 = vmul.f32 %v5511_v61, %v2444_v14 }
0x2264   :  { %v2484_v17 = vrot.slane %v6604_v12, 2 }
0x2265   :  { %2475 = vrot.lane.b32.xlu1 %v2446_v15, %s5937_s10  ;;  %v2751_v15 = vld [vmem:[#allocation3 + $0x8] sm:$0x30] }
0x2266   :  { %2485 = vrot.lane.b32.xlu0 %v2484_v17, %s5936_s5 }
0x22d7   :  { %v2476_v38 = vpop.permute.xlu1 %2475 }
0x22d8   :  { %2478 = vst.msk [vmem:[#allocation2] sm:$0xc0] %vm1028_vm6, %v2476_v38  ;;  %v2486_v18 = vpop.permute.xlu0 %2485 }
0x22d9   :  { %v2488_v16 = vsel %vm278_vm1, %v2476_v38, %v2486_v18 }
0x22da   :  { %v2506_v24 = vrot.slane %v2488_v16, 6 }
0x22dc   :  { %4783 = vmatmul.mubr.msk.f32.vlgmr.msra.gmra.mrb[18].mxu1 %vm382_vm3, %v2506_v24 }
0x22dd   :  { %2909 = vmatprep.mubr.f32.mxu1 %v5935_v29 }
0x23af   :  { %v2575_v40 = vpop.f32.mrb[18].mxu1 }
0x23b0   :  { %v2581_v25 = vadd.f32 %v2580_v19, %v2575_v40  ;;  %v2577_v21 = vpop.f32.mrb[19].mxu1 }
0x23b1   :  { %v2584_v28 = vrot.slane %v2577_v21, 2 }
0x23b2   :  { %5516 = vtanh.f32 %v2581_v25  ;;  %v4784_v37 = vmul.f32 -1.442695, %v2581_v25 }
0x23b3   :  { %v2586_v2 = vadd.f32 %v2584_v28, %v2582_v32 }
0x23b5   :  { %5518 = vtanh.f32 %v2586_v2  ;;  %v4785_v23 = vmul.f32 -1.442695, %v2586_v2 }
0x23b6   :  { %5520 = vpow2.f32 %v4784_v37 }
0x23b7   :  { %5522 = vpow2.f32 %v4785_v23 }
0x23bc   :  { %v5517_v20 = vpop.eup %5516 }
0x23bd   :  { %2599 = vrot.lane.b32.xlu0 %v5517_v20, %s5936_s5 }
0x23bf   :  { %v5519_v41 = vpop.eup %5518 }
0x23c0   :  { %2626 = vrot.lane.b32.xlu1 %v5519_v41, %s5936_s5  ;;  %v5521_v6 = vpop.eup %5520 }
0x23c1   :  { %v5523_v26 = vpop.eup %5522  ;;  %v2590_v30 = vadd.f32 1.0, %v5521_v6 }
0x23c2   :  { %v2617_v31 = vadd.f32 1.0, %v5523_v26 }
0x23c3   :  { %5524 = vrcp.f32 %v2590_v30 }
0x23c4   :  { %5526 = vrcp.f32 %v2617_v31 }
0x23cd   :  { %v5525_v33 = vpop.eup %5524 }
0x23ce   :  { %v5527_v39 = vpop.eup %5526  ;;  %v2597_v50 = vmul.f32 %v5525_v33, %v2595_v47 }
0x23cf   :  { %v2624_v59 = vmul.f32 %v5527_v39, %v2622_v52 }
0x242f   :  { %v2600_v34 = vpop.permute.xlu0 %2599 }
0x2430   :  { %v2602_v22 = vmul.f32 %v5525_v33, %v2600_v34 }
0x2432   :  { %2604 = vrot.lane.b32.xlu0 %v2602_v22, %s5937_s10  ;;  %v2627_v45 = vpop.permute.xlu1 %2626 }
0x2433   :  { %v2629_v46 = vmul.f32 %v5527_v39, %v2627_v45  ;;  %v2828_v45 = vld [vmem:[#allocation9 + $0x18] sm:$0xff] }
0x2435   :  { %2631 = vrot.lane.b32.xlu1 %v2629_v46, %s5937_s10  ;;  %v2825_v46 = vld [vmem:[#allocation9] sm:$0xff] }
0x24a4   :  { %v2605_v56 = vpop.permute.xlu0 %2604 }
0x24a5   :  { %v2607_v57 = vadd.f32 %v2605_v56, %v2597_v50  ;;  %v2827_v50 = vld [vmem:[#allocation9 + $0x10] sm:$0xff] }
0x24a6   :  { %v5119_v52 = vpack.c.bf16 %v2827_v50, %v2825_v46  ;;  %v3005_v46 = vld [vmem:[#allocation9 + $0x50] sm:$0xff] }
0x24a7   :  { %5528 = vtanh.f32 %v2607_v57  ;;  %v2632_v13 = vpop.permute.xlu1 %2631  ;;  %v2764_v23 = vrot.slane %v2607_v57, 6 }
0x24a8   :  { %v2634_v60 = vadd.f32 %v2632_v13, %v2624_v59 }
0x24aa   :  { %5530 = vtanh.f32 %v2634_v60  ;;  %v2791_v6 = vrot.slane %v2634_v60, 2 }
0x24b1   :  { %v5529_v61 = vpop.eup %5528 }
0x24b2   :  { %2610 = vrot.lane.b32.xlu0 %v5529_v61, %s5936_s5 }
0x24b4   :  { %v5531_v62 = vpop.eup %5530 }
0x24b5   :  { %2637 = vrot.lane.b32.xlu1 %v5531_v62, %s5936_s5 }
0x2524   :  { %v2611_v63 = vpop.permute.xlu0 %2610 }
0x2525   :  { %v2613_v1 = vmul.f32 %v5525_v33, %v2611_v63 }
0x2527   :  { %2642 = vrot.lane.b32.xlu1 %v2613_v1, %s5937_s10  ;;  %v2638_v3 = vpop.permute.xlu1 %2637  ;;  %v2916_v1 = vld [vmem:[#allocation3 + $0x10] sm:$0x30] }
0x2528   :  { %v6620_v48 = vmul.f32 %v5527_v39, %v2638_v3  ;;  %v2826_v39 = vld [vmem:[#allocation9 + $0x8] sm:$0xff] }
0x2529   :  { %v5117_v47 = vpack.c.bf16 %v2828_v45, %v2826_v39  ;;  %v3003_v45 = vld [vmem:[#allocation9 + $0x40] sm:$0xff] }
0x252a   :  { %v2651_v5 = vrot.slane %v6620_v48, 6 }
0x252b   :  { %5118 = vmatprep.subr.bf16.mxu1 %v5117_v47  ;;  %5134 = vmatprep.subr.bf16.mxu0 %v5117_v47  ;;  %v5143_v47 = vpack.c.bf16 %v3005_v46, %v3003_v45  ;;  %v3159_v45 = vld [vmem:[#allocation12] sm:$0xff] }
0x252c   :  { %2652 = vrot.lane.b32.xlu0 %v2651_v5, %s5936_s5  ;;  %5120 = vmatpush1.bf16.msra.mxu1 %v5119_v52 }
0x252d   :  { %5122 = vmatprep.subr.bf16.mxu1 %v6446_v36 }
0x2530   :  { %5124 = vmatpush1.bf16.msra.mxu1 %v6448_v44 }
0x2531   :  { %5126 = vmatprep.subr.bf16.mxu1 %v6453_v49 }
0x2534   :  { %5128 = vmatpush1.bf16.msra.mxu1 %v6456_v58 }
0x2535   :  { %5130 = vmatprep.subr.bf16.mxu1 %v6463_v51 }
0x2538   :  { %5132 = vmatpush1.bf16.msra.mxu1 %v6466_v0 }
0x2599   :  { %v6624_v35 = vpop.permute.xlu1 %2642 }
0x259e   :  { %v2653_v7 = vpop.permute.xlu0 %2652 }
0x259f   :  { %v2655_v8 = vsel %vm278_vm1, %v6624_v35, %v2653_v7  ;;  %v2921_v7 = vld [vmem:[#allocation3 + $0x8] sm:$0xc] }
0x25a0   :  { %4786 = vmatmul.mubr.msk.f32.vlgmr.msra.gmra.mrb[16].mxu0 %vm382_vm3, %v2655_v8 }
0x25a1   :  { %3079 = vmatprep.mubr.f32.mxu0 %v5935_v29  ;;  %5136 = vmatpush1.bf16.msra.mxu0 %v5119_v52 }
0x2673   :  { %v2741_v43 = vpop.f32.mrb[16].mxu0 }
0x2674   :  { %v2748_v9 = vrot.slane %v2741_v43, 6  ;;  %v2743_v27 = vpop.f32.mrb[17].mxu0 }
0x2675   :  { %v2753_v11 = vrot.slane %v2743_v27, 4 }
0x2676   :  { %v2750_v14 = vadd.f32 %v2748_v9, %v2746_v10 }
0x2677   :  { %v2755_v17 = vadd.f32 %v2753_v11, %v2751_v15 }
0x2678   :  { %5532 = vtanh.f32 %v2750_v14  ;;  %v4787_v16 = vmul.f32 -1.442695, %v2750_v14 }
0x2679   :  { %5534 = vtanh.f32 %v2755_v17  ;;  %v4788_v24 = vmul.f32 -1.442695, %v2755_v17 }
0x267a   :  { %5536 = vpow2.f32 %v4787_v16 }
0x267b   :  { %5538 = vpow2.f32 %v4788_v24 }
0x2682   :  { %v5533_v38 = vpop.eup %5532 }
0x2683   :  { %v5535_v18 = vpop.eup %5534  ;;  %2768 = vrot.lane.b32.xlu0 %v5533_v38, %s5936_s5 }
0x2684   :  { %2795 = vrot.lane.b32.xlu1 %v5535_v18, %s5936_s5  ;;  %v5537_v40 = vpop.eup %5536 }
0x2685   :  { %v5539_v19 = vpop.eup %5538  ;;  %v2759_v25 = vadd.f32 1.0, %v5537_v40 }
0x2686   :  { %v2786_v21 = vadd.f32 1.0, %v5539_v19 }
0x2687   :  { %5540 = vrcp.f32 %v2759_v25 }
0x2688   :  { %5542 = vrcp.f32 %v2786_v21 }
0x2691   :  { %v5541_v28 = vpop.eup %5540 }
0x2692   :  { %v5543_v2 = vpop.eup %5542  ;;  %v2766_v26 = vmul.f32 %v5541_v28, %v2764_v23  ;;  %v3000_v23 = vld [vmem:[#allocation9 + $0x28] sm:$0xff] }
0x2693   :  { %v2793_v31 = vmul.f32 %v5543_v2, %v2791_v6  ;;  %v3002_v6 = vld [vmem:[#allocation9 + $0x38] sm:$0xff] }
0x26f5   :  { %v2769_v32 = vpop.permute.xlu0 %2768 }
0x26f6   :  { %v2771_v20 = vmul.f32 %v5541_v28, %v2769_v32  ;;  %v2796_v41 = vpop.permute.xlu1 %2795 }
0x26f7   :  { %v2798_v37 = vmul.f32 %v5543_v2, %v2796_v41 }
0x26f8   :  { %2773 = vrot.lane.b32.xlu0 %v2771_v20, %s5937_s10 }
0x26f9   :  { %2800 = vrot.lane.b32.xlu1 %v2798_v37, %s5937_s10 }
0x276a   :  { %v2774_v30 = vpop.permute.xlu0 %2773 }
0x276b   :  { %v6634_v33 = vadd.f32 %v2774_v30, %v2766_v26  ;;  %v2801_v34 = vpop.permute.xlu1 %2800  ;;  %v2999_v26 = vld [vmem:[#allocation9 + $0x20] sm:$0xff]  ;;  %v5137_v30 = vpack.c.bf16 %v3002_v6, %v3000_v23 }
0x276c   :  { %v6636_v22 = vadd.f32 %v2801_v34, %v2793_v31  ;;  %v3001_v31 = vld [vmem:[#allocation9 + $0x30] sm:$0xff]  ;;  %v3006_v34 = vld [vmem:[#allocation9 + $0x58] sm:$0xff] }
0x276d   :  { %5544 = vtanh.f32 %v6634_v33  ;;  %v2934_v25 = vrot.slane %v6634_v33, 6  ;;  %v3004_v33 = vld [vmem:[#allocation9 + $0x48] sm:$0xff]  ;;  %5138 = vmatprep.subr.bf16.mxu0 %v5137_v30 }
0x276e   :  { %5546 = vtanh.f32 %v6636_v22  ;;  %v2961_v21 = vrot.slane %v6636_v22, 2  ;;  %v5139_v22 = vpack.c.bf16 %v3001_v31, %v2999_v26  ;;  %v5141_v39 = vpack.c.bf16 %v3006_v34, %v3004_v33 }
0x2770   :  { %5140 = vmatpush1.bf16.msra.mxu0 %v5139_v22 }
0x2771   :  { %5142 = vmatprep.subr.bf16.mxu0 %v5141_v39 }
0x2774   :  { %5144 = vmatpush1.bf16.msra.mxu0 %v5143_v47  ;;  %v3161_v47 = vld [vmem:[#allocation12 + $0x10] sm:$0xff] }
0x2777   :  { %v5545_v56 = vpop.eup %5544 }
0x2778   :  { %v5547_v57 = vpop.eup %5546  ;;  %2779 = vrot.lane.b32.xlu0 %v5545_v56, %s5936_s5  ;;  %v3008_v56 = vld [vmem:[#allocation9 + $0x68] sm:$0xff] }
0x2779   :  { %2806 = vrot.lane.b32.xlu1 %v5547_v57, %s5936_s5  ;;  %v3010_v57 = vld [vmem:[#allocation9 + $0x78] sm:$0xff] }
0x27ea   :  { %v2780_v59 = vpop.permute.xlu0 %2779 }
0x27eb   :  { %v2782_v13 = vmul.f32 %v5541_v28, %v2780_v59  ;;  %v2807_v60 = vpop.permute.xlu1 %2806  ;;  %v5145_v59 = vpack.c.bf16 %v3010_v57, %v3008_v56  ;;  %v5151_v56 = vpack.c.bf16 %v3161_v47, %v3159_v45  ;;  %v3175_v47 = vld [vmem:[#allocation15] sm:$0x3] }
0x27ec   :  { %v6648_v36 = vmul.f32 %v5543_v2, %v2807_v60  ;;  %v3009_v60 = vld [vmem:[#allocation9 + $0x70] sm:$0xff] }
0x27ed   :  { %2811 = vrot.lane.b32.xlu1 %v2782_v13, %s5937_s10  ;;  %5146 = vmatprep.subr.bf16.mxu0 %v5145_v59  ;;  %v3007_v13 = vld [vmem:[#allocation9 + $0x60] sm:$0xff] }
0x27ee   :  { %v2820_v61 = vrot.slane %v6648_v36, 2  ;;  %v3163_v59 = vld [vmem:[#allocation12 + $0x20] sm:$0xff] }
0x27f0   :  { %2821 = vrot.lane.b32.xlu0 %v2820_v61, %s5936_s5  ;;  %v5147_v61 = vpack.c.bf16 %v3009_v60, %v3007_v13  ;;  %v3165_v13 = vld [vmem:[#allocation12 + $0x30] sm:$0xff]  ;;  %v3170_v60 = vld [vmem:[#allocation12 + $0x58] sm:$0xff] }
0x27f2   :  { %5148 = vmatpush1.bf16.msra.mxu0 %v5147_v61 }
0x285f   :  { %v6653_v44 = vpop.permute.xlu1 %2811 }
0x2862   :  { %v2822_v49 = vpop.permute.xlu0 %2821 }
0x2863   :  { %v2824_v58 = vsel %vm278_vm1, %v6653_v44, %v2822_v49 }
0x2864   :  { %v2842_v51 = vrot.slane %v2824_v58, 2 }
0x2866   :  { %4789 = vmatmul.mubr.msk.f32.vlgmr.msra.gmra.mrb[20].mxu1 %vm382_vm3, %v2842_v51 }
0x2867   :  { %3257 = vmatprep.mubr.f32.mxu1 %v5935_v29 }
0x2939   :  { %v2911_v0 = vpop.f32.mrb[20].mxu1 }
0x293a   :  { %v2918_v62 = vrot.slane %v2911_v0, 4  ;;  %v2913_v63 = vpop.f32.mrb[21].mxu1 }
0x293b   :  { %v2923_v3 = vrot.slane %v2913_v63, 6 }
0x293c   :  { %v2920_v5 = vadd.f32 %v2918_v62, %v2916_v1 }
0x293d   :  { %v2925_v8 = vadd.f32 %v2923_v3, %v2921_v7 }
0x293e   :  { %5548 = vtanh.f32 %v2920_v5  ;;  %v4790_v27 = vmul.f32 -1.442695, %v2920_v5 }
0x293f   :  { %5550 = vtanh.f32 %v2925_v8  ;;  %v4791_v10 = vmul.f32 -1.442695, %v2925_v8 }
0x2940   :  { %5552 = vpow2.f32 %v4790_v27  ;;  %v3086_v27 = vld [vmem:[#allocation3 + $0x10] sm:$0xc0] }
0x2941   :  { %5554 = vpow2.f32 %v4791_v10 }
0x2948   :  { %v5549_v43 = vpop.eup %5548 }
0x2949   :  { %v5551_v9 = vpop.eup %5550  ;;  %2938 = vrot.lane.b32.xlu0 %v5549_v43, %s5936_s5 }
0x294a   :  { %2965 = vrot.lane.b32.xlu1 %v5551_v9, %s5936_s5  ;;  %v5553_v11 = vpop.eup %5552  ;;  %v3091_v9 = vld [vmem:[#allocation3 + $0x8] sm:$0x3] }
0x294b   :  { %v5555_v14 = vpop.eup %5554  ;;  %v2929_v15 = vadd.f32 1.0, %v5553_v11 }
0x294c   :  { %v2956_v17 = vadd.f32 1.0, %v5555_v14 }
0x294d   :  { %5556 = vrcp.f32 %v2929_v15 }
0x294e   :  { %5558 = vrcp.f32 %v2956_v17 }
0x2957   :  { %v5557_v38 = vpop.eup %5556 }
0x2958   :  { %v5559_v16 = vpop.eup %5558  ;;  %v2936_v28 = vmul.f32 %v5557_v38, %v2934_v25 }
0x2959   :  { %v2963_v2 = vmul.f32 %v5559_v16, %v2961_v21 }
0x29bb   :  { %v2939_v18 = vpop.permute.xlu0 %2938 }
0x29bc   :  { %v2941_v24 = vmul.f32 %v5557_v38, %v2939_v18  ;;  %v2966_v40 = vpop.permute.xlu1 %2965 }
0x29bd   :  { %v2968_v19 = vmul.f32 %v5559_v16, %v2966_v40 }
0x29be   :  { %2943 = vrot.lane.b32.xlu0 %v2941_v24, %s5937_s10 }
0x29bf   :  { %2970 = vrot.lane.b32.xlu1 %v2968_v19, %s5937_s10 }
0x2a30   :  { %v2944_v32 = vpop.permute.xlu0 %2943 }
0x2a31   :  { %v6665_v20 = vadd.f32 %v2944_v32, %v2936_v28  ;;  %v2971_v41 = vpop.permute.xlu1 %2970 }
0x2a32   :  { %v6667_v37 = vadd.f32 %v2971_v41, %v2963_v2 }
0x2a33   :  { %5560 = vtanh.f32 %v6665_v20  ;;  %v3101_v23 = vrot.slane %v6665_v20, 6  ;;  %v3160_v20 = vld [vmem:[#allocation12 + $0x8] sm:$0xff] }
0x2a34   :  { %5562 = vtanh.f32 %v6667_v37  ;;  %v3128_v41 = vrot.slane %v6667_v37, 2  ;;  %v3162_v37 = vld [vmem:[#allocation12 + $0x18] sm:$0xff] }
0x2a35   :  { %v5149_v46 = vpack.c.bf16 %v3162_v37, %v3160_v20 }
0x2a37   :  { %5150 = vmatprep.subr.bf16.mxu1 %v5149_v46 }
0x2a38   :  { %5152 = vmatpush1.bf16.msra.mxu1 %v5151_v56 }
0x2a3d   :  { %v5561_v50 = vpop.eup %5560 }
0x2a3e   :  { %v5563_v52 = vpop.eup %5562  ;;  %2949 = vrot.lane.b32.xlu0 %v5561_v50, %s5936_s5  ;;  %v3164_v50 = vld [vmem:[#allocation12 + $0x28] sm:$0xff] }
0x2a3f   :  { %2976 = vrot.lane.b32.xlu1 %v5563_v52, %s5936_s5  ;;  %v3166_v52 = vld [vmem:[#allocation12 + $0x38] sm:$0xff] }
0x2a40   :  { %v5153_v57 = vpack.c.bf16 %v3166_v52, %v3164_v50  ;;  %v3180_v50 = vrot.slane %v3175_v47, %v6230_v53  ;;  %v3184_v52 = vrot.slane %v3175_v47, %v6235_v55 }
0x2a42   :  { %5154 = vmatprep.subr.bf16.mxu1 %v5153_v57 }
0x2ab0   :  { %v2950_v49 = vpop.permute.xlu0 %2949 }
0x2ab1   :  { %v2952_v58 = vmul.f32 %v5557_v38, %v2950_v49  ;;  %v2977_v51 = vpop.permute.xlu1 %2976  ;;  %v3167_v49 = vld [vmem:[#allocation12 + $0x40] sm:$0xff] }
0x2ab2   :  { %v6673_v0 = vmul.f32 %v5559_v16, %v2977_v51 }
0x2ab3   :  { %2981 = vrot.lane.b32.xlu1 %v2952_v58, %s5937_s10  ;;  %v3169_v58 = vld [vmem:[#allocation12 + $0x50] sm:$0xff] }
0x2ab4   :  { %v2990_v62 = vrot.slane %v6673_v0, 6  ;;  %v5159_v51 = vpack.c.bf16 %v3169_v58, %v3167_v49 }
0x2ab6   :  { %2991 = vrot.lane.b32.xlu0 %v2990_v62, %s5936_s5  ;;  %v3277_v62 = vld [vmem:[#allocation14 + $0x18] sm:$0xff] }
0x2b25   :  { %v6678_v63 = vpop.permute.xlu1 %2981 }
0x2b28   :  { %v2992_v1 = vpop.permute.xlu0 %2991 }
0x2b29   :  { %v2994_v3 = vsel %vm278_vm1, %v6678_v63, %v2992_v1  ;;  %v3274_v1 = vld [vmem:[#allocation14] sm:$0xff] }
0x2b2a   :  { %v3012_v5 = vrot.slane %v2994_v3, 4 }
0x2b2c   :  { %4792 = vmatmul.mubr.msk.f32.vlgmr.msra.gmra.mrb[18].mxu0 %vm382_vm3, %v3012_v5 }
0x2b2d   :  { %3354 = vmatprep.mubr.f32.mxu0 %v5935_v29 }
0x2bff   :  { %v3081_v7 = vpop.f32.mrb[18].mxu0 }
0x2c00   :  { %v3088_v8 = vrot.slane %v3081_v7, 2  ;;  %v3083_v43 = vpop.f32.mrb[19].mxu0  ;;  %v3174_v7 = vld [vmem:[#allocation12 + $0x78] sm:$0xff] }
0x2c01   :  { %v3092_v10 = vadd.f32 %v3091_v9, %v3083_v43  ;;  %v3173_v43 = vld [vmem:[#allocation12 + $0x70] sm:$0xff] }
0x2c02   :  { %v3090_v11 = vadd.f32 %v3088_v8, %v3086_v27  ;;  %v3171_v8 = vld [vmem:[#allocation12 + $0x60] sm:$0xff]  ;;  %v3279_v27 = vld [vmem:[#allocation14 + $0x28] sm:$0xff] }
0x2c03   :  { %5564 = vtanh.f32 %v3092_v10  ;;  %v4794_v17 = vmul.f32 -1.442695, %v3092_v10  ;;  %v5163_v9 = vpack.c.bf16 %v3173_v43, %v3171_v8  ;;  %v3281_v10 = vld [vmem:[#allocation14 + $0x38] sm:$0xff] }
0x2c04   :  { %5566 = vtanh.f32 %v3090_v11  ;;  %v4793_v38 = vmul.f32 -1.442695, %v3090_v11  ;;  %v3278_v11 = vld [vmem:[#allocation14 + $0x20] sm:$0xff] }
0x2c05   :  { %5568 = vpow2.f32 %v4794_v17 }
0x2c06   :  { %5570 = vpow2.f32 %v4793_v38  ;;  %v3283_v38 = vld [vmem:[#allocation14 + $0x48] sm:$0xff] }
0x2c0d   :  { %v5565_v14 = vpop.eup %5564 }
0x2c0e   :  { %v5567_v15 = vpop.eup %5566  ;;  %3132 = vrot.lane.b32.xlu1 %v5565_v14, %s5936_s5  ;;  %v6718_v14 = vpack.c.bf16 %v3281_v10, %v3279_v27 }
0x2c0f   :  { %3105 = vrot.lane.b32.xlu0 %v5567_v15, %s5936_s5  ;;  %v5569_v18 = vpop.eup %5568  ;;  %v3280_v15 = vld [vmem:[#allocation14 + $0x30] sm:$0xff] }
0x2c10   :  { %v5571_v16 = vpop.eup %5570  ;;  %v3123_v24 = vadd.f32 1.0, %v5569_v18  ;;  %v6720_v17 = vpack.c.bf16 %v3280_v15, %v3278_v11  ;;  %v3285_v18 = vld [vmem:[#allocation14 + $0x58] sm:$0xff] }
0x2c11   :  { %v3096_v40 = vadd.f32 1.0, %v5571_v16  ;;  %v3282_v16 = vld [vmem:[#allocation14 + $0x40] sm:$0xff] }
0x2c12   :  { %5572 = vrcp.f32 %v3123_v24  ;;  %v6725_v24 = vpack.c.bf16 %v3285_v18, %v3283_v38 }
0x2c13   :  { %5574 = vrcp.f32 %v3096_v40  ;;  %v3284_v40 = vld [vmem:[#allocation14 + $0x50] sm:$0xff] }
0x2c1c   :  { %v6686_v19 = vpop.eup %5572 }
0x2c1d   :  { %v6688_v21 = vpop.eup %5574  ;;  %v3130_v6 = vmul.f32 %v6686_v19, %v3128_v41 }
0x2c1e   :  { %v3103_v30 = vmul.f32 %v6688_v21, %v3101_v23  ;;  %v3287_v23 = vld [vmem:[#allocation14 + $0x68] sm:$0xff] }
0x2c80   :  { %v3133_v25 = vpop.permute.xlu1 %3132 }
0x2c81   :  { %v3135_v28 = vmul.f32 %v6686_v19, %v3133_v25  ;;  %v3106_v32 = vpop.permute.xlu0 %3105 }
0x2c82   :  { %v3108_v2 = vmul.f32 %v6688_v21, %v3106_v32 }
0x2c83   :  { %3137 = vrot.lane.b32.xlu1 %v3135_v28, %s5937_s10  ;;  %v6727_v28 = vpack.c.bf16 %v3284_v40, %v3282_v16 }
0x2c84   :  { %3110 = vrot.lane.b32.xlu0 %v3108_v2, %s5937_s10 }
0x2cf5   :  { %v3138_v26 = vpop.permute.xlu1 %3137 }
0x2cf6   :  { %v3140_v31 = vadd.f32 %v3138_v26, %v3130_v6  ;;  %v3111_v33 = vpop.permute.xlu0 %3110  ;;  %v3289_v6 = vld [vmem:[#allocation14 + $0x78] sm:$0xff]  ;;  %v3286_v26 = vld [vmem:[#allocation14 + $0x60] sm:$0xff] }
0x2cf7   :  { %v3113_v34 = vadd.f32 %v3111_v33, %v3103_v30  ;;  %v3288_v33 = vld [vmem:[#allocation14 + $0x70] sm:$0xff] }
0x2cf8   :  { %5576 = vtanh.f32 %v3140_v31  ;;  %v6735_v31 = vpack.c.bf16 %v3289_v6, %v3287_v23 }
0x2cf9   :  { %5578 = vtanh.f32 %v3113_v34  ;;  %v6738_v34 = vpack.c.bf16 %v3288_v33, %v3286_v26 }
0x2d02   :  { %v5577_v22 = vpop.eup %5576 }
0x2d03   :  { %v5579_v39 = vpop.eup %5578  ;;  %3143 = vrot.lane.b32.xlu1 %v5577_v22, %s5936_s5 }
0x2d04   :  { %3116 = vrot.lane.b32.xlu0 %v5579_v39, %s5936_s5 }
0x2d07   :  { %2647 = vrot.lane.b32.xlu1 %v6620_v48, %s5936_s5  ;;  %v5155_v48 = vpack.c.bf16 %v3165_v13, %v3163_v59 }
0x2d08   :  { %2816 = vrot.lane.b32.xlu0 %v6648_v36, %s5936_s5  ;;  %v3168_v36 = vld [vmem:[#allocation12 + $0x48] sm:$0xff] }
0x2d09   :  { %5156 = vmatpush1.bf16.msra.mxu1 %v5155_v48  ;;  %v5157_v61 = vpack.c.bf16 %v3170_v60, %v3168_v36 }
0x2d0b   :  { %2986 = vrot.lane.b32.xlu1 %v6673_v0, %s5936_s5  ;;  %v3275_v0 = vld [vmem:[#allocation14 + $0x8] sm:$0xff]  ;;  %5158 = vmatprep.subr.bf16.mxu1 %v5157_v61 }
0x2d0c   :  { %2143 = vrot.lane.b32.xlu0 %v6554_v42, %s5936_s5  ;;  %v6712_v3 = vpack.c.bf16 %v3277_v62, %v3275_v0  ;;  %v3276_v42 = vld [vmem:[#allocation14 + $0x10] sm:$0xff] }
0x2d0d   :  { %5160 = vmatpush1.bf16.msra.mxu1 %v5159_v51  ;;  %v6714_v5 = vpack.c.bf16 %v3276_v42, %v3274_v1 }
0x2d0e   :  { %5166 = vmatprep.subr.bf16.mxu0 %v6712_v3 }
0x2d0f   :  { %1974 = vrot.lane.b32.xlu1 %v6524_v54, %s5936_s5  ;;  %v3172_v54 = vld [vmem:[#allocation12 + $0x68] sm:$0xff]  ;;  %5168 = vmatpush1.bf16.msra.mxu0 %v6714_v5 }
0x2d10   :  { %5170 = vmatprep.subr.bf16.mxu0 %v6718_v14 }
0x2d13   :  { %2313 = vrot.lane.b32.xlu1 %v6581_v4, %s5936_s5  ;;  %v5161_v4 = vpack.c.bf16 %v3174_v7, %v3172_v54  ;;  %5172 = vmatpush1.bf16.msra.mxu0 %v6720_v17 }
0x2d14   :  { %5174 = vmatprep.subr.bf16.mxu0 %v6725_v24 }
0x2d15   :  { %5162 = vmatprep.subr.bf16.mxu1 %v5161_v4 }
0x2d16   :  { %5164 = vmatpush1.bf16.msra.mxu1 %v5163_v9 }
0x2d17   :  { %5182 = vmatprep.subr.bf16.mxu1 %v6712_v3  ;;  %5176 = vmatpush1.bf16.msra.mxu0 %v6727_v28 }
0x2d18   :  { %5178 = vmatprep.subr.bf16.mxu0 %v6735_v31 }
0x2d1b   :  { %5180 = vmatpush1.bf16.msra.mxu0 %v6738_v34 }
0x2d1c   :  { %5198 = vmatprep.subr.bf16.mxu0 %v6712_v3 }
0x2d1e   :  { %3355 = vmatmul.mubr.f32.vlgmr.msra.gmra.mrb[20].mxu0 %v5935_v29 }
0x2d1f   :  { %5200 = vmatpush1.bf16.msra.mxu0 %v6714_v5  ;;  %3684 = vmatprep.mubr.f32.mxu0 %v5935_v29 }
0x2d20   :  { %5202 = vmatprep.subr.bf16.mxu0 %v6718_v14 }
0x2d23   :  { %5204 = vmatpush1.bf16.msra.mxu0 %v6720_v17 }
0x2d24   :  { %5206 = vmatprep.subr.bf16.mxu0 %v6725_v24 }
0x2d27   :  { %5208 = vmatpush1.bf16.msra.mxu0 %v6727_v28 }
0x2d28   :  { %5210 = vmatprep.subr.bf16.mxu0 %v6735_v31 }
0x2d2b   :  { %5212 = vmatpush1.bf16.msra.mxu0 %v6738_v34 }
0x2d2c   :  { %5230 = vmatprep.subr.bf16.mxu0 %v6712_v3 }
0x2d75   :  { %v3144_v25 = vpop.permute.xlu1 %3143 }
0x2d76   :  { %v3146_v32 = vmul.f32 %v6686_v19, %v3144_v25  ;;  %v3117_v2 = vpop.permute.xlu0 %3116 }
0x2d77   :  { %v3119_v41 = vmul.f32 %v6688_v21, %v3117_v2 }
0x2d78   :  { %3153 = vrot.lane.b32.xlu0 %v3146_v32, %s5936_s5 }
0x2d79   :  { %3148 = vrot.lane.b32.xlu1 %v3119_v41, %s5937_s10  ;;  %v2648_v30 = vpop.permute.xlu1 %2647 }
0x2d7a   :  { %2650 = vst.msk [vmem:[#allocation2] sm:$0xc0] %vm522_vm7, %v2648_v30  ;;  %v2817_v19 = vpop.permute.xlu0 %2816 }
0x2d7b   :  { %2819 = vst.msk [vmem:[#allocation2] sm:$0x30] %vm693_vm8, %v2817_v19 }
0x2d7c   :  { %2480 = vrot.lane.b32.xlu0 %v6604_v12, %s5936_s5 }
0x2d7d   :  { %v2987_v21 = vpop.permute.xlu1 %2986 }
0x2d7e   :  { %2989 = vst.msk [vmem:[#allocation2] sm:$0xc] %vm865_vm9, %v2987_v21  ;;  %v2144_v22 = vpop.permute.xlu0 %2143 }
0x2d7f   :  { %2146 = vst.msk [vmem:[#allocation2 + $0x8] sm:$0x30] %vm693_vm8, %v2144_v22 }
0x2d80   :  { %2984 = vst.msk [vmem:[#allocation2 + $0x8] sm:$0x30] %vm859_vm5, %v6678_v63 }
0x2d81   :  { %v1975_v12 = vpop.permute.xlu1 %1974 }
0x2d82   :  { %1977 = vst.msk [vmem:[#allocation2 + $0x8] sm:$0xc0] %vm522_vm7, %v1975_v12 }
0x2d85   :  { %v2314_v39 = vpop.permute.xlu1 %2313 }
0x2d86   :  { %2316 = vst.msk [vmem:[#allocation2 + $0x8] sm:$0xc] %vm865_vm9, %v2314_v39 }
0x2d87   :  { %2814 = vst.msk [vmem:[#allocation2 + $0x8] sm:$0xc] %vm687_vm4, %v6653_v44 }
0x2dea   :  { %v3154_v63 = vpop.permute.xlu0 %3153 }
0x2deb   :  { %3156 = vst.msk [vmem:[#allocation2] sm:$0x3] %vm1034_vm10, %v3154_v63  ;;  %v3149_v20 = vpop.permute.xlu1 %3148 }
0x2dec   :  { %3151 = vst.msk [vmem:[#allocation2 + $0x8] sm:$0xc0] %vm1028_vm6, %v3149_v20 }
0x2dee   :  { %v2481_v37 = vpop.permute.xlu0 %2480 }
0x2def   :  { %2483 = vst.msk [vmem:[#allocation2 + $0x8] sm:$0x3] %vm1034_vm10, %v2481_v37 }
0x2df0   :  { %2645 = vst.msk [vmem:[#allocation2 + $0x8] sm:$0x3] %vm516_vm2, %v6624_v35 }
0x2df1   :  { %v3356_v35 = vpop.f32.mrb[20].mxu0 }
0x2df2   :  { %v3157_v44 = vld [vmem:[#allocation2] sm:$0xff]  ;;  %v3358_v46 = vpop.f32.mrb[21].mxu0 }
0x2df3   :  { %4795 = vmatmul.mubr.msk.f32.vlgmr.msra.gmra.mrb[22].mxu1 %vm382_vm3, %v3157_v44  ;;  %v3365_v51 = vrot.slane %v3358_v46, 2 }
0x2df4   :  { %3263 = vmatprep.mubr.f32.mxu1 %v5935_v29  ;;  %5184 = vmatpush1.bf16.msra.mxu1 %v6714_v5 }
0x2df5   :  { %5186 = vmatprep.subr.bf16.mxu1 %v6718_v14 }
0x2df7   :  { %v3158_v45 = vld [vmem:[#allocation2 + $0x8] sm:$0xff] }
0x2df8   :  { %4796 = vmatmul.mubr.msk.f32.gmra.mrb[24].mxu1 %vm382_vm3, %v3158_v45 }
0x2df9   :  { %5188 = vmatpush1.bf16.msra.mxu1 %v6720_v17  ;;  %3514 = vmatprep.mubr.f32.mxu1 %v5935_v29 }
0x2dfa   :  { %5190 = vmatprep.subr.bf16.mxu1 %v6725_v24 }
0x2dfd   :  { %5192 = vmatpush1.bf16.msra.mxu1 %v6727_v28 }
0x2dfe   :  { %5194 = vmatprep.subr.bf16.mxu1 %v6735_v31 }
0x2e01   :  { %5196 = vmatpush1.bf16.msra.mxu1 %v6738_v34 }
0x2e02   :  { %5214 = vmatprep.subr.bf16.mxu1 %v6712_v3 }
0x2ec6   :  { %v3259_v56 = vpop.f32.mrb[22].mxu1 }
0x2ec7   :  { %v3260_v57 = vadd.f32 %v3259_v56, %v3180_v50  ;;  %v3261_v59 = vpop.f32.mrb[23].mxu1 }
0x2ec8   :  { %v3262_v13 = vadd.f32 %v3261_v59, %v3184_v52 }
0x2ec9   :  { %3270 = vst [vmem:[#allocation3] sm:$0xff] %v3260_v57 }
0x2eca   :  { %3271 = vst [vmem:[#allocation3 + $0x8] sm:$0xff] %v3262_v13 }
0x2ecb   :  { %v3265_v48 = vpop.f32.mrb[24].mxu1 }
0x2ecc   :  { %v3266_v36 = vadd.f32 %v3265_v48, %v3180_v50  ;;  %v3267_v60 = vpop.f32.mrb[25].mxu1 }
0x2ecd   :  { %v3268_v61 = vadd.f32 %v3267_v60, %v3184_v52 }
0x2ece   :  { %3272 = vst [vmem:[#allocation3 + $0x10] sm:$0xff] %v3266_v36 }
0x2ecf   :  { %3273 = vst [vmem:[#allocation3 + $0x18] sm:$0xff] %v3268_v61 }
0x2ed0   :  { %v3361_v49 = vld [vmem:[#allocation3] sm:$0x3]  ;;  %v3521_v20 = vld [vmem:[#allocation3] sm:$0xc] }
0x2ed1   :  { %v3362_v58 = vadd.f32 %v3361_v49, %v3356_v35 }
0x2ed3   :  { %5580 = vtanh.f32 %v3362_v58  ;;  %v4797_v1 = vmul.f32 -1.442695, %v3362_v58 }
0x2ed6   :  { %v3363_v0 = vld [vmem:[#allocation3 + $0x18] sm:$0xc0]  ;;  %v3526_v45 = vld [vmem:[#allocation3 + $0x18] sm:$0x30] }
0x2ed7   :  { %v3367_v53 = vadd.f32 %v3365_v51, %v3363_v0 }
0x2ed9   :  { %5582 = vtanh.f32 %v3367_v53  ;;  %v4798_v42 = vmul.f32 -1.442695, %v3367_v53 }
0x2eda   :  { %5584 = vpow2.f32 %v4797_v1 }
0x2edb   :  { %5586 = vpow2.f32 %v4798_v42 }
0x2edd   :  { %v5581_v55 = vpop.eup %5580 }
0x2ede   :  { %3377 = vrot.lane.b32.xlu1 %v5581_v55, %s5936_s5 }
0x2ee3   :  { %v5583_v62 = vpop.eup %5582 }
0x2ee4   :  { %3401 = vrot.lane.b32.xlu0 %v5583_v62, %s5936_s5  ;;  %v5585_v54 = vpop.eup %5584 }
0x2ee5   :  { %v3371_v7 = vadd.f32 1.0, %v5585_v54  ;;  %v5587_v4 = vpop.eup %5586 }
0x2ee6   :  { %v3395_v8 = vadd.f32 1.0, %v5587_v4 }
0x2ee7   :  { %5588 = vrcp.f32 %v3371_v7 }
0x2ee8   :  { %5590 = vrcp.f32 %v3395_v8 }
0x2ef1   :  { %v5589_v43 = vpop.eup %5588 }
0x2ef2   :  { %v5591_v10 = vpop.eup %5590  ;;  %v3375_v38 = vmul.f32 0.0, %v5589_v43 }
0x2ef3   :  { %v3399_v40 = vmul.f32 0.0, %v5591_v10 }
0x2f50   :  { %v3378_v9 = vpop.permute.xlu1 %3377 }
0x2f51   :  { %v3380_v27 = vmul.f32 %v5589_v43, %v3378_v9 }
0x2f53   :  { %3382 = vrot.lane.b32.xlu1 %v3380_v27, %s5937_s10 }
0x2f56   :  { %v3402_v11 = vpop.permute.xlu0 %3401 }
0x2f57   :  { %v3404_v15 = vmul.f32 %v5591_v10, %v3402_v11 }
0x2f59   :  { %3406 = vrot.lane.b32.xlu0 %v3404_v15, %s5937_s10 }
0x2fc5   :  { %v3383_v18 = vpop.permute.xlu1 %3382 }
0x2fc6   :  { %v6787_v16 = vadd.f32 %v3383_v18, %v3375_v38 }
0x2fc8   :  { %5592 = vtanh.f32 %v6787_v16  ;;  %v3539_v58 = vrot.slane %v6787_v16, 6 }
0x2fcb   :  { %v3407_v25 = vpop.permute.xlu0 %3406 }
0x2fcc   :  { %v6790_v32 = vadd.f32 %v3407_v25, %v3399_v40  ;;  %v3691_v25 = vld [vmem:[#allocation3] sm:$0x30] }
0x2fce   :  { %5594 = vtanh.f32 %v6790_v32  ;;  %v3566_v51 = vrot.slane %v6790_v32, 2 }
0x2fd2   :  { %v5593_v2 = vpop.eup %5592 }
0x2fd3   :  { %3388 = vrot.lane.b32.xlu1 %v5593_v2, %s5936_s5 }
0x2fd8   :  { %v5595_v41 = vpop.eup %5594 }
0x2fd9   :  { %3412 = vrot.lane.b32.xlu0 %v5595_v41, %s5936_s5  ;;  %v3696_v41 = vld [vmem:[#allocation3 + $0x18] sm:$0xc] }
0x3045   :  { %v3389_v23 = vpop.permute.xlu1 %3388 }
0x3046   :  { %v3391_v6 = vmul.f32 %v5589_v43, %v3389_v23 }
0x3048   :  { %3417 = vrot.lane.b32.xlu0 %v3391_v6, %s5937_s10 }
0x304b   :  { %v3413_v26 = vpop.permute.xlu0 %3412 }
0x304c   :  { %v6796_v30 = vmul.f32 %v5591_v10, %v3413_v26 }
0x304e   :  { %v3426_v33 = vrot.slane %v6796_v30, 6 }
0x3050   :  { %3427 = vrot.lane.b32.xlu1 %v3426_v33, %s5936_s5 }
0x30ba   :  { %v3418_v19 = vpop.permute.xlu0 %3417 }
0x30bb   :  { %3420 = vst.msk [vmem:[#allocation2] sm:$0x3] %vm516_vm2, %v3418_v19 }
0x30c2   :  { %v3428_v21 = vpop.permute.xlu1 %3427 }
0x30c3   :  { %v3430_v22 = vsel %vm278_vm1, %v3418_v19, %v3428_v21 }
0x30c4   :  { %4799 = vmatmul.mubr.msk.f32.vlgmr.msra.gmra.mrb[26].mxu1 %vm382_vm3, %v3430_v22 }
0x30c5   :  { %5216 = vmatpush1.bf16.msra.mxu1 %v6714_v5  ;;  %3854 = vmatprep.mubr.f32.mxu1 %v5935_v29 }
0x30c6   :  { %5218 = vmatprep.subr.bf16.mxu1 %v6718_v14 }
0x30c9   :  { %5220 = vmatpush1.bf16.msra.mxu1 %v6720_v17 }
0x30ca   :  { %5222 = vmatprep.subr.bf16.mxu1 %v6725_v24 }
0x30cd   :  { %5224 = vmatpush1.bf16.msra.mxu1 %v6727_v28 }
0x30ce   :  { %5226 = vmatprep.subr.bf16.mxu1 %v6735_v31 }
0x30d1   :  { %5228 = vmatpush1.bf16.msra.mxu1 %v6738_v34 }
0x30d2   :  { %5246 = vmatprep.subr.bf16.mxu1 %v6712_v3 }
0x3197   :  { %v3516_v12 = vpop.f32.mrb[26].mxu1 }
0x3198   :  { %v3523_v39 = vrot.slane %v3516_v12, 6  ;;  %v3518_v63 = vpop.f32.mrb[27].mxu1 }
0x3199   :  { %v3528_v37 = vrot.slane %v3518_v63, 4 }
0x319a   :  { %v3525_v44 = vadd.f32 %v3523_v39, %v3521_v20 }
0x319b   :  { %v3530_v35 = vadd.f32 %v3528_v37, %v3526_v45 }
0x319c   :  { %5596 = vtanh.f32 %v3525_v44  ;;  %v4800_v50 = vmul.f32 -1.442695, %v3525_v44 }
0x319d   :  { %5598 = vtanh.f32 %v3530_v35  ;;  %v4801_v52 = vmul.f32 -1.442695, %v3530_v35 }
0x319e   :  { %5600 = vpow2.f32 %v4800_v50 }
0x319f   :  { %5602 = vpow2.f32 %v4801_v52 }
0x31a6   :  { %v5597_v46 = vpop.eup %5596 }
0x31a7   :  { %v5599_v47 = vpop.eup %5598  ;;  %3543 = vrot.lane.b32.xlu1 %v5597_v46, %s5936_s5 }
0x31a8   :  { %3570 = vrot.lane.b32.xlu0 %v5599_v47, %s5936_s5  ;;  %v5601_v3 = vpop.eup %5600 }
0x31a9   :  { %v5603_v56 = vpop.eup %5602  ;;  %v3534_v57 = vadd.f32 1.0, %v5601_v3 }
0x31aa   :  { %v3561_v59 = vadd.f32 1.0, %v5603_v56 }
0x31ab   :  { %5604 = vrcp.f32 %v3534_v57 }
0x31ac   :  { %5606 = vrcp.f32 %v3561_v59 }
0x31b5   :  { %v5605_v13 = vpop.eup %5604 }
0x31b6   :  { %v5607_v36 = vpop.eup %5606  ;;  %v3541_v0 = vmul.f32 %v5605_v13, %v3539_v58 }
0x31b7   :  { %v3568_v55 = vmul.f32 %v5607_v36, %v3566_v51 }
0x3219   :  { %v3544_v48 = vpop.permute.xlu1 %3543 }
0x321a   :  { %v3546_v60 = vmul.f32 %v5605_v13, %v3544_v48  ;;  %v3571_v61 = vpop.permute.xlu0 %3570 }
0x321b   :  { %v3573_v49 = vmul.f32 %v5607_v36, %v3571_v61 }
0x321c   :  { %3548 = vrot.lane.b32.xlu1 %v3546_v60, %s5937_s10 }
0x321d   :  { %3575 = vrot.lane.b32.xlu0 %v3573_v49, %s5937_s10 }
0x328e   :  { %v3549_v53 = vpop.permute.xlu1 %3548 }
0x328f   :  { %v6818_v62 = vadd.f32 %v3549_v53, %v3541_v0  ;;  %v3576_v1 = vpop.permute.xlu0 %3575 }
0x3290   :  { %v6820_v42 = vadd.f32 %v3576_v1, %v3568_v55 }
0x3291   :  { %5608 = vtanh.f32 %v6818_v62  ;;  %v3709_v46 = vrot.slane %v6818_v62, 6 }
0x3292   :  { %5610 = vtanh.f32 %v6820_v42  ;;  %v3736_v47 = vrot.slane %v6820_v42, 2 }
0x329b   :  { %v5609_v54 = vpop.eup %5608 }
0x329c   :  { %v5611_v7 = vpop.eup %5610  ;;  %3554 = vrot.lane.b32.xlu1 %v5609_v54, %s5936_s5  ;;  %v3866_v54 = vld [vmem:[#allocation3 + $0x18] sm:$0x3] }
0x329d   :  { %3581 = vrot.lane.b32.xlu0 %v5611_v7, %s5936_s5  ;;  %v3861_v7 = vld [vmem:[#allocation3] sm:$0xc0] }
0x330e   :  { %v3555_v4 = vpop.permute.xlu1 %3554 }
0x330f   :  { %v3557_v8 = vmul.f32 %v5605_v13, %v3555_v4  ;;  %v3582_v43 = vpop.permute.xlu0 %3581 }
0x3310   :  { %v6826_v9 = vmul.f32 %v5607_v36, %v3582_v43 }
0x3311   :  { %3586 = vrot.lane.b32.xlu0 %v3557_v8, %s5937_s10 }
0x3312   :  { %v3595_v27 = vrot.slane %v6826_v9, 2 }
0x3314   :  { %3596 = vrot.lane.b32.xlu1 %v3595_v27, %s5936_s5 }
0x3383   :  { %v3587_v10 = vpop.permute.xlu0 %3586 }
0x3384   :  { %3589 = vst.msk [vmem:[#allocation2] sm:$0xc] %vm687_vm4, %v3587_v10 }
0x3386   :  { %v3597_v11 = vpop.permute.xlu1 %3596 }
0x3387   :  { %v3599_v15 = vsel %vm278_vm1, %v3587_v10, %v3597_v11 }
0x3388   :  { %v3617_v38 = vrot.slane %v3599_v15, 2 }
0x338a   :  { %4802 = vmatmul.mubr.msk.f32.vlgmr.msra.gmra.mrb[22].mxu0 %vm382_vm3, %v3617_v38 }
0x338b   :  { %5232 = vmatpush1.bf16.msra.mxu0 %v6714_v5  ;;  %4021 = vmatprep.mubr.f32.mxu0 %v5935_v29 }
0x338c   :  { %5234 = vmatprep.subr.bf16.mxu0 %v6718_v14 }
0x338f   :  { %5236 = vmatpush1.bf16.msra.mxu0 %v6720_v17 }
0x3390   :  { %5238 = vmatprep.subr.bf16.mxu0 %v6725_v24 }
0x3393   :  { %5240 = vmatpush1.bf16.msra.mxu0 %v6727_v28 }
0x3394   :  { %5242 = vmatprep.subr.bf16.mxu0 %v6735_v31 }
0x3397   :  { %5244 = vmatpush1.bf16.msra.mxu0 %v6738_v34 }
0x345d   :  { %v3686_v18 = vpop.f32.mrb[22].mxu0 }
0x345e   :  { %v3693_v16 = vrot.slane %v3686_v18, 4  ;;  %v3688_v40 = vpop.f32.mrb[23].mxu0 }
0x345f   :  { %v3698_v32 = vrot.slane %v3688_v40, 6 }
0x3460   :  { %v3695_v2 = vadd.f32 %v3693_v16, %v3691_v25 }
0x3461   :  { %v3700_v23 = vadd.f32 %v3698_v32, %v3696_v41 }
0x3462   :  { %5612 = vtanh.f32 %v3695_v2  ;;  %v4803_v33 = vmul.f32 -1.442695, %v3695_v2 }
0x3463   :  { %5614 = vtanh.f32 %v3700_v23  ;;  %v4804_v19 = vmul.f32 -1.442695, %v3700_v23 }
0x3464   :  { %5616 = vpow2.f32 %v4803_v33 }
0x3465   :  { %5618 = vpow2.f32 %v4804_v19 }
0x346c   :  { %v5613_v6 = vpop.eup %5612 }
0x346d   :  { %v5615_v26 = vpop.eup %5614  ;;  %3713 = vrot.lane.b32.xlu1 %v5613_v6, %s5936_s5 }
0x346e   :  { %3740 = vrot.lane.b32.xlu0 %v5615_v26, %s5936_s5  ;;  %v5617_v21 = vpop.eup %5616 }
0x346f   :  { %v5619_v22 = vpop.eup %5618  ;;  %v3704_v12 = vadd.f32 1.0, %v5617_v21 }
0x3470   :  { %v3731_v39 = vadd.f32 1.0, %v5619_v22 }
0x3471   :  { %5620 = vrcp.f32 %v3704_v12 }
0x3472   :  { %5622 = vrcp.f32 %v3731_v39 }
0x347b   :  { %v5621_v63 = vpop.eup %5620 }
0x347c   :  { %v5623_v37 = vpop.eup %5622  ;;  %v3711_v50 = vmul.f32 %v5621_v63, %v3709_v46 }
0x347d   :  { %v3738_v3 = vmul.f32 %v5623_v37, %v3736_v47 }
0x34df   :  { %v3714_v20 = vpop.permute.xlu1 %3713 }
0x34e0   :  { %v3716_v44 = vmul.f32 %v5621_v63, %v3714_v20  ;;  %v3741_v45 = vpop.permute.xlu0 %3740 }
0x34e1   :  { %v3743_v35 = vmul.f32 %v5623_v37, %v3741_v45 }
0x34e2   :  { %3718 = vrot.lane.b32.xlu1 %v3716_v44, %s5937_s10 }
0x34e3   :  { %3745 = vrot.lane.b32.xlu0 %v3743_v35, %s5937_s10 }
0x3554   :  { %v3719_v52 = vpop.permute.xlu1 %3718 }
0x3555   :  { %v6848_v56 = vadd.f32 %v3719_v52, %v3711_v50  ;;  %v3746_v57 = vpop.permute.xlu0 %3745  ;;  %v4028_v52 = vld [vmem:[#allocation3 + $0x10] sm:$0x3] }
0x3556   :  { %v3748_v59 = vadd.f32 %v3746_v57, %v3738_v3 }
0x3557   :  { %5624 = vtanh.f32 %v6848_v56  ;;  %v3876_v41 = vrot.slane %v6848_v56, 6 }
0x3558   :  { %5626 = vtanh.f32 %v3748_v59  ;;  %v3903_v2 = vrot.slane %v3748_v59, 2  ;;  %v4030_v59 = vld [vmem:[#allocation3 + $0x8] sm:$0xc0] }
0x3561   :  { %v5625_v13 = vpop.eup %5624 }
0x3562   :  { %v5627_v48 = vpop.eup %5626  ;;  %3724 = vrot.lane.b32.xlu1 %v5625_v13, %s5936_s5 }
0x3563   :  { %3751 = vrot.lane.b32.xlu0 %v5627_v48, %s5936_s5 }
0x35d4   :  { %v3725_v36 = vpop.permute.xlu1 %3724 }
0x35d5   :  { %v3727_v60 = vmul.f32 %v5621_v63, %v3725_v36  ;;  %v3752_v61 = vpop.permute.xlu0 %3751 }
0x35d6   :  { %v6853_v49 = vmul.f32 %v5623_v37, %v3752_v61 }
0x35d7   :  { %3756 = vrot.lane.b32.xlu0 %v3727_v60, %s5937_s10 }
0x35d8   :  { %v3765_v58 = vrot.slane %v6853_v49, 6 }
0x35da   :  { %3766 = vrot.lane.b32.xlu1 %v3765_v58, %s5936_s5 }
0x3649   :  { %v3757_v51 = vpop.permute.xlu0 %3756 }
0x364a   :  { %3759 = vst.msk [vmem:[#allocation2] sm:$0x30] %vm859_vm5, %v3757_v51 }
0x364c   :  { %v3767_v0 = vpop.permute.xlu1 %3766 }
0x364d   :  { %v3769_v53 = vsel %vm278_vm1, %v3757_v51, %v3767_v0 }
0x364e   :  { %v3787_v55 = vrot.slane %v3769_v53, 4 }
0x3650   :  { %4805 = vmatmul.mubr.msk.f32.vlgmr.msra.gmra.mrb[28].mxu1 %vm382_vm3, %v3787_v55 }
0x3651   :  { %5248 = vmatpush1.bf16.msra.mxu1 %v6714_v5  ;;  %4187 = vmatprep.mubr.f32.mxu1 %v5935_v29 }
0x3652   :  { %5250 = vmatprep.subr.bf16.mxu1 %v6718_v14 }
0x3655   :  { %5252 = vmatpush1.bf16.msra.mxu1 %v6720_v17 }
0x3656   :  { %5254 = vmatprep.subr.bf16.mxu1 %v6725_v24 }
0x3659   :  { %5256 = vmatpush1.bf16.msra.mxu1 %v6727_v28 }
0x365a   :  { %5258 = vmatprep.subr.bf16.mxu1 %v6735_v31 }
0x365d   :  { %5260 = vmatpush1.bf16.msra.mxu1 %v6738_v34 }
0x3723   :  { %v3856_v62 = vpop.f32.mrb[28].mxu1 }
0x3724   :  { %v3863_v1 = vrot.slane %v3856_v62, 2  ;;  %v3858_v42 = vpop.f32.mrb[29].mxu1 }
0x3725   :  { %v3867_v5 = vadd.f32 %v3866_v54, %v3858_v42 }
0x3726   :  { %v3865_v4 = vadd.f32 %v3863_v1, %v3861_v7 }
0x3727   :  { %5628 = vtanh.f32 %v3867_v5  ;;  %v4807_v17 = vmul.f32 -1.442695, %v3867_v5 }
0x3728   :  { %5630 = vtanh.f32 %v3865_v4  ;;  %v4806_v43 = vmul.f32 -1.442695, %v3865_v4 }
0x3729   :  { %5632 = vpow2.f32 %v4807_v17 }
0x372a   :  { %5634 = vpow2.f32 %v4806_v43 }
0x3731   :  { %v5629_v14 = vpop.eup %5628 }
0x3732   :  { %v5631_v8 = vpop.eup %5630  ;;  %3907 = vrot.lane.b32.xlu0 %v5629_v14, %s5936_s5 }
0x3733   :  { %3880 = vrot.lane.b32.xlu1 %v5631_v8, %s5936_s5  ;;  %v5633_v27 = vpop.eup %5632 }
0x3734   :  { %v5635_v10 = vpop.eup %5634  ;;  %v3898_v11 = vadd.f32 1.0, %v5633_v27 }
0x3735   :  { %v3871_v15 = vadd.f32 1.0, %v5635_v10 }
0x3736   :  { %5636 = vrcp.f32 %v3898_v11 }
0x3737   :  { %5638 = vrcp.f32 %v3871_v15 }
0x3740   :  { %v5637_v38 = vpop.eup %5636 }
0x3741   :  { %v5639_v16 = vpop.eup %5638  ;;  %v3905_v23 = vmul.f32 %v5637_v38, %v3903_v2 }
0x3742   :  { %v3878_v26 = vmul.f32 %v5639_v16, %v3876_v41 }
0x37a4   :  { %v3908_v18 = vpop.permute.xlu0 %3907 }
0x37a5   :  { %v3910_v40 = vmul.f32 %v5637_v38, %v3908_v18  ;;  %v3881_v25 = vpop.permute.xlu1 %3880 }
0x37a6   :  { %v3883_v32 = vmul.f32 %v5639_v16, %v3881_v25 }
0x37a7   :  { %3912 = vrot.lane.b32.xlu0 %v3910_v40, %s5937_s10 }
0x37a8   :  { %3885 = vrot.lane.b32.xlu1 %v3883_v32, %s5937_s10 }
0x3819   :  { %v3913_v6 = vpop.permute.xlu0 %3912 }
0x381a   :  { %v3915_v33 = vadd.f32 %v3913_v6, %v3905_v23  ;;  %v3886_v19 = vpop.permute.xlu1 %3885 }
0x381b   :  { %v3888_v21 = vadd.f32 %v3886_v19, %v3878_v26 }
0x381c   :  { %5640 = vtanh.f32 %v3915_v33  ;;  %v4070_v14 = vrot.slane %v3915_v33, 2  ;;  %v4194_v33 = vld [vmem:[#allocation3 + $0x10] sm:$0xc] }
0x381d   :  { %5642 = vtanh.f32 %v3888_v21  ;;  %v4043_v5 = vrot.slane %v3888_v21, 6 }
0x3826   :  { %v5641_v22 = vpop.eup %5640 }
0x3827   :  { %v5643_v12 = vpop.eup %5642  ;;  %3918 = vrot.lane.b32.xlu0 %v5641_v22, %s5936_s5  ;;  %v4199_v22 = vld [vmem:[#allocation3 + $0x8] sm:$0x30] }
0x3828   :  { %3891 = vrot.lane.b32.xlu1 %v5643_v12, %s5936_s5 }
0x3899   :  { %v3919_v39 = vpop.permute.xlu0 %3918 }
0x389a   :  { %v6876_v63 = vmul.f32 %v5637_v38, %v3919_v39  ;;  %v3892_v20 = vpop.permute.xlu1 %3891 }
0x389b   :  { %v3894_v37 = vmul.f32 %v5639_v16, %v3892_v20 }
0x389c   :  { %v3932_v44 = vrot.slane %v6876_v63, 2 }
0x389d   :  { %3923 = vrot.lane.b32.xlu0 %v3894_v37, %s5937_s10 }
0x389e   :  { %3933 = vrot.lane.b32.xlu1 %v3932_v44, %s5936_s5 }
0x390f   :  { %v3924_v45 = vpop.permute.xlu0 %3923 }
0x3910   :  { %3926 = vst.msk [vmem:[#allocation2] sm:$0xc0] %vm1028_vm6, %v3924_v45  ;;  %v3934_v35 = vpop.permute.xlu1 %3933 }
0x3911   :  { %v3936_v46 = vsel %vm278_vm1, %v3924_v45, %v3934_v35 }
0x3912   :  { %v3954_v47 = vrot.slane %v3936_v46, 6 }
0x3914   :  { %4808 = vmatmul.mubr.msk.f32.vlgmr.msra.gmra.mrb[24].mxu0 %vm382_vm3, %v3954_v47 }
0x3915   :  { %4357 = vmatprep.mubr.f32.mxu0 %v5935_v29 }
0x39e7   :  { %v4023_v50 = vpop.f32.mrb[24].mxu0 }
0x39e8   :  { %v4029_v3 = vadd.f32 %v4028_v52, %v4023_v50  ;;  %v4025_v56 = vpop.f32.mrb[25].mxu0 }
0x39e9   :  { %v4032_v57 = vrot.slane %v4025_v56, 2 }
0x39ea   :  { %5644 = vtanh.f32 %v4029_v3  ;;  %v4809_v60 = vmul.f32 -1.442695, %v4029_v3 }
0x39eb   :  { %v4034_v13 = vadd.f32 %v4032_v57, %v4030_v59 }
0x39ed   :  { %5646 = vtanh.f32 %v4034_v13  ;;  %v4810_v61 = vmul.f32 -1.442695, %v4034_v13 }
0x39ee   :  { %5648 = vpow2.f32 %v4809_v60 }
0x39ef   :  { %5650 = vpow2.f32 %v4810_v61 }
0x39f4   :  { %v5645_v48 = vpop.eup %5644 }
0x39f5   :  { %4047 = vrot.lane.b32.xlu1 %v5645_v48, %s5936_s5 }
0x39f7   :  { %v5647_v36 = vpop.eup %5646 }
0x39f8   :  { %4074 = vrot.lane.b32.xlu0 %v5647_v36, %s5936_s5  ;;  %v5649_v58 = vpop.eup %5648 }
0x39f9   :  { %v5651_v51 = vpop.eup %5650  ;;  %v4038_v0 = vadd.f32 1.0, %v5649_v58 }
0x39fa   :  { %v4065_v53 = vadd.f32 1.0, %v5651_v51 }
0x39fb   :  { %5652 = vrcp.f32 %v4038_v0  ;;  %v4274_v0 = vld [vmem:[#allocation14 + $0x8] sm:$0xff] }
0x39fc   :  { %5654 = vrcp.f32 %v4065_v53  ;;  %v4276_v53 = vld [vmem:[#allocation14 + $0x18] sm:$0xff] }
0x3a05   :  { %v5653_v55 = vpop.eup %5652 }
0x3a06   :  { %v5655_v42 = vpop.eup %5654  ;;  %v4045_v4 = vmul.f32 %v5653_v55, %v4043_v5 }
0x3a07   :  { %v4072_v43 = vmul.f32 %v5655_v42, %v4070_v14  ;;  %v4279_v14 = vld [vmem:[#allocation14 + $0x30] sm:$0xff] }
0x3a67   :  { %v4048_v62 = vpop.permute.xlu1 %4047 }
0x3a68   :  { %v4050_v1 = vmul.f32 %v5653_v55, %v4048_v62  ;;  %v5261_v62 = vpack.c.bf16 %v4276_v53, %v4274_v0  ;;  %v4453_v53 = vld [vmem:[#allocation14 + $0x50] sm:$0xff] }
0x3a6a   :  { %4052 = vrot.lane.b32.xlu1 %v4050_v1, %s5937_s10  ;;  %v4075_v54 = vpop.permute.xlu0 %4074  ;;  %v4275_v1 = vld [vmem:[#allocation14 + $0x10] sm:$0xff]  ;;  %5262 = vmatprep.subr.bf16.mxu0 %v5261_v62 }
0x3a6b   :  { %v4077_v7 = vmul.f32 %v5655_v42, %v4075_v54  ;;  %v4280_v54 = vld [vmem:[#allocation14 + $0x38] sm:$0xff]  ;;  %5278 = vmatprep.subr.bf16.mxu1 %v5261_v62  ;;  %v4456_v62 = vld [vmem:[#allocation14 + $0x68] sm:$0xff] }
0x3a6d   :  { %4079 = vrot.lane.b32.xlu0 %v4077_v7, %s5937_s10 }
0x3adc   :  { %v4053_v8 = vpop.permute.xlu1 %4052 }
0x3add   :  { %v4055_v17 = vadd.f32 %v4053_v8, %v4045_v4  ;;  %v4277_v4 = vld [vmem:[#allocation14 + $0x20] sm:$0xff] }
0x3ade   :  { %v5267_v8 = vpack.c.bf16 %v4279_v14, %v4277_v4 }
0x3adf   :  { %5656 = vtanh.f32 %v4055_v17  ;;  %v4080_v27 = vpop.permute.xlu0 %4079  ;;  %v4212_v59 = vrot.slane %v4055_v17, 6 }
0x3ae0   :  { %v4082_v10 = vadd.f32 %v4080_v27, %v4072_v43 }
0x3ae2   :  { %5658 = vtanh.f32 %v4082_v10  ;;  %v4239_v13 = vrot.slane %v4082_v10, 2 }
0x3ae9   :  { %v5657_v11 = vpop.eup %5656 }
0x3aea   :  { %4058 = vrot.lane.b32.xlu1 %v5657_v11, %s5936_s5 }
0x3aec   :  { %v5659_v15 = vpop.eup %5658 }
0x3aed   :  { %4085 = vrot.lane.b32.xlu0 %v5659_v15, %s5936_s5 }
0x3b5c   :  { %v4059_v38 = vpop.permute.xlu1 %4058 }
0x3b5d   :  { %v4061_v18 = vmul.f32 %v5653_v55, %v4059_v38  ;;  %v4273_v55 = vld [vmem:[#allocation14] sm:$0xff] }
0x3b5e   :  { %v5263_v7 = vpack.c.bf16 %v4275_v1, %v4273_v55  ;;  %v4458_v1 = vld [vmem:[#allocation14 + $0x78] sm:$0xff] }
0x3b5f   :  { %4090 = vrot.lane.b32.xlu0 %v4061_v18, %s5937_s10  ;;  %v4086_v16 = vpop.permute.xlu0 %4085 }
0x3b60   :  { %v6892_v40 = vmul.f32 %v5655_v42, %v4086_v16  ;;  %v4278_v42 = vld [vmem:[#allocation14 + $0x28] sm:$0xff]  ;;  %5264 = vmatpush1.bf16.msra.mxu0 %v5263_v7 }
0x3b61   :  { %v5265_v5 = vpack.c.bf16 %v4280_v54, %v4278_v42  ;;  %v5289_v42 = vpack.c.bf16 %v4458_v1, %v4456_v62  ;;  %v4455_v54 = vld [vmem:[#allocation14 + $0x60] sm:$0xff] }
0x3b62   :  { %v4099_v25 = vrot.slane %v6892_v40, 6 }
0x3b63   :  { %5266 = vmatprep.subr.bf16.mxu0 %v5265_v5 }
0x3b64   :  { %4100 = vrot.lane.b32.xlu1 %v4099_v25, %s5936_s5  ;;  %5268 = vmatpush1.bf16.msra.mxu0 %v5267_v8 }
0x3b65   :  { %5270 = vmatprep.subr.bf16.mxu0 %v6725_v24 }
0x3b68   :  { %5272 = vmatpush1.bf16.msra.mxu0 %v6727_v28 }
0x3b69   :  { %5274 = vmatprep.subr.bf16.mxu0 %v6735_v31 }
0x3b6c   :  { %5276 = vmatpush1.bf16.msra.mxu0 %v6738_v34 }
0x3bd1   :  { %v6896_v32 = vpop.permute.xlu0 %4090 }
0x3bd6   :  { %v4101_v2 = vpop.permute.xlu1 %4100 }
0x3bd7   :  { %v4103_v41 = vsel %vm278_vm1, %v6896_v32, %v4101_v2  ;;  %v4364_v2 = vld [vmem:[#allocation3 + $0x10] sm:$0x30] }
0x3bd8   :  { %4811 = vmatmul.mubr.msk.f32.vlgmr.msra.gmra.mrb[30].mxu1 %vm382_vm3, %v4103_v41 }
0x3bd9   :  { %4527 = vmatprep.mubr.f32.mxu1 %v5935_v29  ;;  %5280 = vmatpush1.bf16.msra.mxu1 %v5263_v7  ;;  %v4457_v7 = vld [vmem:[#allocation14 + $0x70] sm:$0xff] }
0x3bda   :  { %5282 = vmatprep.subr.bf16.mxu1 %v5265_v5  ;;  %v5291_v5 = vpack.c.bf16 %v4457_v7, %v4455_v54 }
0x3bdd   :  { %5284 = vmatpush1.bf16.msra.mxu1 %v5267_v8 }
0x3cab   :  { %v4189_v23 = vpop.f32.mrb[30].mxu1 }
0x3cac   :  { %v4196_v6 = vrot.slane %v4189_v23, 6  ;;  %v4191_v26 = vpop.f32.mrb[31].mxu1 }
0x3cad   :  { %v4201_v19 = vrot.slane %v4191_v26, 4 }
0x3cae   :  { %v4198_v21 = vadd.f32 %v4196_v6, %v4194_v33  ;;  %v4369_v6 = vld [vmem:[#allocation3 + $0x8] sm:$0xc] }
0x3caf   :  { %v4203_v12 = vadd.f32 %v4201_v19, %v4199_v22 }
0x3cb0   :  { %5660 = vtanh.f32 %v4198_v21  ;;  %v4812_v37 = vmul.f32 -1.442695, %v4198_v21 }
0x3cb1   :  { %5662 = vtanh.f32 %v4203_v12  ;;  %v4813_v44 = vmul.f32 -1.442695, %v4203_v12 }
0x3cb2   :  { %5664 = vpow2.f32 %v4812_v37 }
0x3cb3   :  { %5666 = vpow2.f32 %v4813_v44 }
0x3cba   :  { %v5661_v39 = vpop.eup %5660 }
0x3cbb   :  { %v5663_v20 = vpop.eup %5662  ;;  %4216 = vrot.lane.b32.xlu1 %v5661_v39, %s5936_s5 }
0x3cbc   :  { %4243 = vrot.lane.b32.xlu0 %v5663_v20, %s5936_s5  ;;  %v5665_v29 = vpop.eup %5664 }
0x3cbd   :  { %v5667_v45 = vpop.eup %5666  ;;  %v4207_v35 = vadd.f32 1.0, %v5665_v29 }
0x3cbe   :  { %v4234_v46 = vadd.f32 1.0, %v5667_v45 }
0x3cbf   :  { %5668 = vrcp.f32 %v4207_v35 }
0x3cc0   :  { %5670 = vrcp.f32 %v4234_v46 }
0x3cc9   :  { %v5669_v47 = vpop.eup %5668 }
0x3cca   :  { %v5671_v52 = vpop.eup %5670  ;;  %v4214_v48 = vmul.f32 %v5669_v47, %v4212_v59 }
0x3ccb   :  { %v4241_v60 = vmul.f32 %v5671_v52, %v4239_v13 }
0x3d2d   :  { %v4217_v50 = vpop.permute.xlu1 %4216 }
0x3d2e   :  { %v4219_v3 = vmul.f32 %v5669_v47, %v4217_v50  ;;  %v4244_v56 = vpop.permute.xlu0 %4243 }
0x3d2f   :  { %v4246_v57 = vmul.f32 %v5671_v52, %v4244_v56 }
0x3d30   :  { %4221 = vrot.lane.b32.xlu1 %v4219_v3, %s5937_s10 }
0x3d31   :  { %4248 = vrot.lane.b32.xlu0 %v4246_v57, %s5937_s10 }
0x3da2   :  { %v4222_v36 = vpop.permute.xlu1 %4221 }
0x3da3   :  { %v6906_v61 = vadd.f32 %v4222_v36, %v4214_v48  ;;  %v4249_v58 = vpop.permute.xlu0 %4248  ;;  %v4452_v36 = vld [vmem:[#allocation14 + $0x48] sm:$0xff] }
0x3da4   :  { %v6908_v51 = vadd.f32 %v4249_v58, %v4241_v60  ;;  %v4454_v60 = vld [vmem:[#allocation14 + $0x58] sm:$0xff]  ;;  %v4451_v58 = vld [vmem:[#allocation14 + $0x40] sm:$0xff] }
0x3da5   :  { %5672 = vtanh.f32 %v6906_v61  ;;  %v4382_v50 = vrot.slane %v6906_v61, 6  ;;  %v5285_v0 = vpack.c.bf16 %v4454_v60, %v4452_v36  ;;  %v5287_v61 = vpack.c.bf16 %v4453_v53, %v4451_v58  ;;  %v4609_v36 = vld [vmem:[%s7041_s12 + $0x10] sm:$0xff]  ;;  %v4610_v58 = vld [vmem:[%s7041_s12 + $0x18] sm:$0xff] }
0x3da6   :  { %5674 = vtanh.f32 %v6908_v51 }
0x3da7   :  { %5286 = vmatprep.subr.bf16.mxu1 %v5285_v0  ;;  %v5297_v0 = vpack.c.bf16 %v4610_v58, %v4609_v36 }
0x3da8   :  { %5288 = vmatpush1.bf16.msra.mxu1 %v5287_v61 }
0x3da9   :  { %5290 = vmatprep.subr.bf16.mxu1 %v5289_v42 }
0x3dac   :  { %5292 = vmatpush1.bf16.msra.mxu1 %v5291_v5 }
0x3daf   :  { %v5673_v17 = vpop.eup %5672 }
0x3db0   :  { %v5675_v43 = vpop.eup %5674  ;;  %4227 = vrot.lane.b32.xlu1 %v5673_v17, %s5936_s5 }
0x3db1   :  { %4254 = vrot.lane.b32.xlu0 %v5675_v43, %s5936_s5 }
0x3e22   :  { %v4228_v27 = vpop.permute.xlu1 %4227 }
0x3e23   :  { %v4230_v10 = vmul.f32 %v5669_v47, %v4228_v27  ;;  %v4255_v11 = vpop.permute.xlu0 %4254 }
0x3e24   :  { %v6918_v15 = vmul.f32 %v5671_v52, %v4255_v11  ;;  %v4409_v52 = vrot.slane %v6908_v51, 2 }
0x3e25   :  { %4259 = vrot.lane.b32.xlu0 %v4230_v10, %s5937_s10 }
0x3e26   :  { %v4268_v38 = vrot.slane %v6918_v15, 2 }
0x3e28   :  { %4269 = vrot.lane.b32.xlu1 %v4268_v38, %s5936_s5 }
0x3e97   :  { %v6923_v18 = vpop.permute.xlu0 %4259 }
0x3e9a   :  { %v4270_v24 = vpop.permute.xlu1 %4269 }
0x3e9b   :  { %v4272_v28 = vsel %vm278_vm1, %v6923_v18, %v4270_v24 }
0x3e9c   :  { %v4290_v31 = vrot.slane %v4272_v28, 2 }
0x3e9e   :  { %4814 = vmatmul.mubr.msk.f32.vlgmr.msra.gmra.mrb[26].mxu0 %vm382_vm3, %v4290_v31 }
0x3f71   :  { %v4359_v34 = vpop.f32.mrb[26].mxu0 }
0x3f72   :  { %v4366_v16 = vrot.slane %v4359_v34, 4  ;;  %v4361_v25 = vpop.f32.mrb[27].mxu0  ;;  %v4539_v34 = vld [vmem:[#allocation3 + $0x8] sm:$0x3] }
0x3f73   :  { %v4371_v41 = vrot.slane %v4361_v25, 6 }
0x3f74   :  { %v4368_v23 = vadd.f32 %v4366_v16, %v4364_v2  ;;  %v4534_v16 = vld [vmem:[#allocation3 + $0x10] sm:$0xc0] }
0x3f75   :  { %v4373_v26 = vadd.f32 %v4371_v41, %v4369_v6 }
0x3f76   :  { %5676 = vtanh.f32 %v4368_v23  ;;  %v4815_v21 = vmul.f32 -1.442695, %v4368_v23 }
0x3f77   :  { %5678 = vtanh.f32 %v4373_v26  ;;  %v4816_v22 = vmul.f32 -1.442695, %v4373_v26 }
0x3f78   :  { %5680 = vpow2.f32 %v4815_v21 }
0x3f79   :  { %5682 = vpow2.f32 %v4816_v22 }
0x3f80   :  { %v5677_v33 = vpop.eup %5676 }
0x3f81   :  { %v5679_v19 = vpop.eup %5678  ;;  %4386 = vrot.lane.b32.xlu1 %v5677_v33, %s5936_s5 }
0x3f82   :  { %4413 = vrot.lane.b32.xlu0 %v5679_v19, %s5936_s5  ;;  %v5681_v12 = vpop.eup %5680 }
0x3f83   :  { %v5683_v39 = vpop.eup %5682  ;;  %v4377_v20 = vadd.f32 1.0, %v5681_v12 }
0x3f84   :  { %v4404_v37 = vadd.f32 1.0, %v5683_v39 }
0x3f85   :  { %5684 = vrcp.f32 %v4377_v20 }
0x3f86   :  { %5686 = vrcp.f32 %v4404_v37 }
0x3f8f   :  { %v5685_v44 = vpop.eup %5684 }
0x3f90   :  { %v5687_v45 = vpop.eup %5686  ;;  %v4384_v3 = vmul.f32 %v5685_v44, %v4382_v50 }
0x3f91   :  { %v4411_v57 = vmul.f32 %v5687_v45, %v4409_v52 }
0x3ff3   :  { %v4387_v29 = vpop.permute.xlu1 %4386 }
0x3ff4   :  { %v4389_v35 = vmul.f32 %v5685_v44, %v4387_v29  ;;  %v4414_v46 = vpop.permute.xlu0 %4413 }
0x3ff5   :  { %v4416_v47 = vmul.f32 %v5687_v45, %v4414_v46 }
0x3ff6   :  { %4391 = vrot.lane.b32.xlu1 %v4389_v35, %s5937_s10 }
0x3ff7   :  { %4418 = vrot.lane.b32.xlu0 %v4416_v47, %s5937_s10 }
0x4068   :  { %v4392_v56 = vpop.permute.xlu1 %4391 }
0x4069   :  { %v6934_v59 = vadd.f32 %v4392_v56, %v4384_v3  ;;  %v4419_v13 = vpop.permute.xlu0 %4418 }
0x406a   :  { %v6936_v48 = vadd.f32 %v4419_v13, %v4411_v57 }
0x406b   :  { %5688 = vtanh.f32 %v6934_v59  ;;  %v4549_v35 = vrot.slane %v6934_v59, 6  ;;  %v4608_v59 = vld [vmem:[%s7041_s12 + $0x8] sm:$0xff] }
0x406c   :  { %5690 = vtanh.f32 %v6936_v48 }
0x4075   :  { %v5689_v51 = vpop.eup %5688 }
0x4076   :  { %v5691_v55 = vpop.eup %5690  ;;  %4397 = vrot.lane.b32.xlu1 %v5689_v51, %s5936_s5 }
0x4077   :  { %4424 = vrot.lane.b32.xlu0 %v5691_v55, %s5936_s5 }
0x40e8   :  { %v4398_v4 = vpop.permute.xlu1 %4397 }
0x40e9   :  { %v4400_v14 = vmul.f32 %v5685_v44, %v4398_v4  ;;  %v4425_v8 = vpop.permute.xlu0 %4424 }
0x40ea   :  { %v6942_v17 = vmul.f32 %v5687_v45, %v4425_v8  ;;  %v4576_v45 = vrot.slane %v6936_v48, 2  ;;  %v4607_v48 = vld [vmem:[%s7041_s12] sm:$0xff] }
0x40eb   :  { %4429 = vrot.lane.b32.xlu0 %v4400_v14, %s5937_s10  ;;  %v5293_v60 = vpack.c.bf16 %v4608_v59, %v4607_v48 }
0x40ec   :  { %v4438_v43 = vrot.slane %v6942_v17, 6 }
0x40ed   :  { %5294 = vmatprep.subr.bf16.mxu0 %v5293_v60 }
0x40ee   :  { %4439 = vrot.lane.b32.xlu1 %v4438_v43, %s5936_s5  ;;  %5296 = vmatpush3.bf16.msra.mxu0 %v5293_v60 }
0x40ef   :  { %5298 = vmatprep.subr.bf16.mxu0 %v5297_v0 }
0x40f2   :  { %5300 = vmatpush3.bf16.msra.mxu0 %v5297_v0 }
0x415d   :  { %v6947_v27 = vpop.permute.xlu0 %4429 }
0x4160   :  { %v4440_v10 = vpop.permute.xlu1 %4439 }
0x4161   :  { %v4442_v11 = vsel %vm278_vm1, %v6947_v27, %v4440_v10 }
0x4162   :  { %v4460_v38 = vrot.slane %v4442_v11, 4 }
0x4164   :  { %4817 = vmatmul.mubr.msk.f32.vlgmr.msra.gmra.mrb[32].mxu1 %vm382_vm3, %v4460_v38 }
0x4237   :  { %v4529_v24 = vpop.f32.mrb[32].mxu1 }
0x4238   :  { %v4536_v28 = vrot.slane %v4529_v24, 2  ;;  %v4531_v31 = vpop.f32.mrb[33].mxu1 }
0x4239   :  { %v4540_v25 = vadd.f32 %v4539_v34, %v4531_v31 }
0x423a   :  { %v4538_v2 = vadd.f32 %v4536_v28, %v4534_v16 }
0x423b   :  { %5692 = vtanh.f32 %v4540_v25  ;;  %v4819_v6 = vmul.f32 -1.442695, %v4540_v25 }
0x423c   :  { %5694 = vtanh.f32 %v4538_v2  ;;  %v4818_v26 = vmul.f32 -1.442695, %v4538_v2 }
0x423d   :  { %5696 = vpow2.f32 %v4819_v6 }
0x423e   :  { %5698 = vpow2.f32 %v4818_v26 }
0x4245   :  { %v5693_v41 = vpop.eup %5692 }
0x4246   :  { %v5695_v23 = vpop.eup %5694  ;;  %4580 = vrot.lane.b32.xlu0 %v5693_v41, %s5936_s5 }
0x4247   :  { %4553 = vrot.lane.b32.xlu1 %v5695_v23, %s5936_s5  ;;  %v5697_v33 = vpop.eup %5696 }
0x4248   :  { %v5699_v19 = vpop.eup %5698  ;;  %v4571_v21 = vadd.f32 1.0, %v5697_v33 }
0x4249   :  { %v4544_v22 = vadd.f32 1.0, %v5699_v19 }
0x424a   :  { %5700 = vrcp.f32 %v4571_v21 }
0x424b   :  { %5702 = vrcp.f32 %v4544_v22 }
0x4254   :  { %v5701_v12 = vpop.eup %5700 }
0x4255   :  { %v5703_v20 = vpop.eup %5702  ;;  %v4578_v46 = vmul.f32 %v5701_v12, %v4576_v45 }
0x4256   :  { %v4551_v50 = vmul.f32 %v5703_v20, %v4549_v35 }
0x42b8   :  { %v4581_v39 = vpop.permute.xlu0 %4580 }
0x42b9   :  { %v4583_v37 = vmul.f32 %v5701_v12, %v4581_v39  ;;  %v4554_v44 = vpop.permute.xlu1 %4553 }
0x42ba   :  { %v4556_v29 = vmul.f32 %v5703_v20, %v4554_v44 }
0x42bb   :  { %4585 = vrot.lane.b32.xlu0 %v4583_v37, %s5937_s10 }
0x42bc   :  { %4558 = vrot.lane.b32.xlu1 %v4556_v29, %s5937_s10 }
0x432d   :  { %v4586_v47 = vpop.permute.xlu0 %4585 }
0x432e   :  { %v4588_v52 = vadd.f32 %v4586_v47, %v4578_v46  ;;  %v4559_v3 = vpop.permute.xlu1 %4558 }
0x432f   :  { %v4561_v56 = vadd.f32 %v4559_v3, %v4551_v50 }
0x4330   :  { %5704 = vtanh.f32 %v4588_v52 }
0x4331   :  { %5706 = vtanh.f32 %v4561_v56 }
0x433a   :  { %v5705_v57 = vpop.eup %5704 }
0x433b   :  { %v5707_v13 = vpop.eup %5706  ;;  %4591 = vrot.lane.b32.xlu0 %v5705_v57, %s5936_s5 }
0x433c   :  { %4564 = vrot.lane.b32.xlu1 %v5707_v13, %s5936_s5 }
0x433f   :  { %3422 = vrot.lane.b32.xlu0 %v6796_v30, %s5936_s5  ;;  %v4611_v30 = vld [vmem:[%s7041_s12 + $0x20] sm:$0xff] }
0x4340   :  { %3591 = vrot.lane.b32.xlu1 %v6826_v9, %s5936_s5  ;;  %v4612_v9 = vld [vmem:[%s7041_s12 + $0x28] sm:$0xff] }
0x4343   :  { %3761 = vrot.lane.b32.xlu0 %v6853_v49, %s5936_s5  ;;  %v5301_v49 = vpack.c.bf16 %v4612_v9, %v4611_v30 }
0x4344   :  { %3928 = vrot.lane.b32.xlu1 %v6876_v63, %s5936_s5  ;;  %v4613_v63 = vld [vmem:[%s7041_s12 + $0x30] sm:$0xff] }
0x4345   :  { %5302 = vmatprep.subr.bf16.mxu0 %v5301_v49 }
0x4346   :  { %5304 = vmatpush3.bf16.msra.mxu0 %v5301_v49 }
0x4347   :  { %4095 = vrot.lane.b32.xlu0 %v6892_v40, %s5936_s5  ;;  %v4614_v40 = vld [vmem:[%s7041_s12 + $0x38] sm:$0xff]  ;;  %s5938_s12 = smov 126  }
0x4348   :  { %4264 = vrot.lane.b32.xlu1 %v6918_v15, %s5936_s5  ;;  %v5305_v15 = vpack.c.bf16 %v4614_v40, %v4613_v63 }
0x434a   :  { %5306 = vmatprep.subr.bf16.mxu0 %v5305_v15 }
0x434b   :  { %4434 = vrot.lane.b32.xlu0 %v6942_v17, %s5936_s5  ;;  %5308 = vmatpush3.bf16.msra.mxu0 %v5305_v15 }
0x43ad   :  { %v4592_v53 = vpop.permute.xlu0 %4591 }
0x43ae   :  { %v4594_v61 = vmul.f32 %v5701_v12, %v4592_v53  ;;  %v4565_v51 = vpop.permute.xlu1 %4564 }
0x43af   :  { %v4567_v55 = vmul.f32 %v5703_v20, %v4565_v51 }
0x43b0   :  { %4601 = vrot.lane.b32.xlu1 %v4594_v61, %s5936_s5 }
0x43b1   :  { %4596 = vrot.lane.b32.xlu0 %v4567_v55, %s5937_s10  ;;  %v3423_v62 = vpop.permute.xlu0 %3422 }
0x43b2   :  { %3425 = vst.msk [vmem:[#allocation2 + $0x8] sm:$0xc0] %vm522_vm7, %v3423_v62  ;;  %v3592_v1 = vpop.permute.xlu1 %3591 }
0x43b3   :  { %3594 = vst.msk [vmem:[#allocation2 + $0x8] sm:$0x30] %vm693_vm8, %v3592_v1 }
0x43b4   :  { %4432 = vst.msk [vmem:[#allocation2 + $0x8] sm:$0x30] %vm859_vm5, %v6947_v27 }
0x43b5   :  { %v3762_v42 = vpop.permute.xlu0 %3761 }
0x43b6   :  { %3764 = vst.msk [vmem:[#allocation2 + $0x8] sm:$0xc] %vm865_vm9, %v3762_v42  ;;  %v3929_v54 = vpop.permute.xlu1 %3928 }
0x43b7   :  { %4262 = vst.msk [vmem:[#allocation2 + $0x8] sm:$0xc] %vm687_vm4, %v6923_v18 }
0x43b8   :  { %3931 = vst.msk [vmem:[#allocation2 + $0x8] sm:$0x3] %vm1034_vm10, %v3929_v54 }
0x43b9   :  { %4093 = vst.msk [vmem:[#allocation2 + $0x8] sm:$0x3] %vm516_vm2, %v6896_v32  ;;  %v4096_v7 = vpop.permute.xlu0 %4095  ;;  %v4820_v32 = vld [vmem:[#allocation17] ss:$0 sm:$0xff] }
0x43ba   :  { %4098 = vst.msk [vmem:[#allocation2] sm:$0xc0] %vm522_vm7, %v4096_v7  ;;  %v4265_v5 = vpop.permute.xlu1 %4264 }
0x43bb   :  { %4267 = vst.msk [vmem:[#allocation2] sm:$0x30] %vm693_vm8, %v4265_v5 }
0x43bd   :  { %v4435_v4 = vpop.permute.xlu0 %4434 }
0x43be   :  { %4437 = vst.msk [vmem:[#allocation2] sm:$0xc] %vm865_vm9, %v4435_v4 }
0x4422   :  { %v4602_v14 = vpop.permute.xlu1 %4601 }
0x4423   :  { %4604 = vst.msk [vmem:[#allocation2] sm:$0x3] %vm1034_vm10, %v4602_v14  ;;  %v4597_v8 = vpop.permute.xlu0 %4596 }
0x4424   :  { %4599 = vst.msk [vmem:[#allocation2 + $0x8] sm:$0xc0] %vm1028_vm6, %v4597_v8 }
0x442a   :  { %v4605_v18 = vld [vmem:[#allocation2] sm:$0xff] }
0x442b   :  { %4862 = vmatprep.mubr.msk.f32.mxu0 %vm382_vm3, %v4605_v18  ;;  %v4606_v17 = vld [vmem:[#allocation2 + $0x8] sm:$0xff] }
0x442c   :  { %4863 = vmatmul.mubr.msk.f32.vlgmr.msra.gmra.mrb[28].mxu0 %vm382_vm3, %v4606_v17 }
0x44ff   :  { %v4864_v43 = vpop.f32.mrb[28].mxu0 }
0x4500   :  { %v4700_v27 = vadd.f32 %v4864_v43, %v4820_v32  ;;  %v4694_v10 = vpop.f32.mrb[29].mxu0 }
0x4501   :  { %v4695_v11 = vadd.f32 %v4820_v32, %v4694_v10 }
0x4502   :  { %v4824_v38 = vmul.f32 -1.442695, %v4700_v27  ;;  %4722 = vrot.lane.b32.xlu0 %v4700_v27, %s5938_s12 }
0x4503   :  { %v4823_v24 = vmul.f32 -1.442695, %v4695_v11  ;;  %4720 = vrot.lane.b32.xlu1 %v4695_v11, %s5938_s12 }
0x4504   :  { %5708 = vpow2.f32 %v4824_v38 }
0x4505   :  { %5710 = vpow2.f32 %v4823_v24 }
0x450e   :  { %v5709_v28 = vpop.eup %5708 }
0x450f   :  { %v5711_v31 = vpop.eup %5710  ;;  %v4710_v34 = vadd.f32 1.0, %v5709_v28 }
0x4510   :  { %v4709_v16 = vadd.f32 1.0, %v5711_v31 }
0x4511   :  { %5712 = vrcp.f32 %v4710_v34 }
0x4512   :  { %5714 = vrcp.f32 %v4709_v16 }
0x451b   :  { %v5713_v25 = vpop.eup %5712 }
0x451c   :  { %v5715_v2 = vpop.eup %5714  ;;  %4717 = vst.msk [vmem:[%s7043_s14 + $0x8] sm:$0xff] %vm4715_vm11, %v5713_v25 }
0x451d   :  { %4716 = vst.msk [vmem:[%s7043_s14] sm:$0xff] %vm4715_vm11, %v5715_v2 }
0x4574   :  { %v4723_v41 = vpop.permute.xlu0 %4722 }
0x4575   :  { %4728 = vst.msk [vmem:[%s7047_s6 + $0x8] sm:$0xff] %vm4726_vm12, %v4723_v41  ;;  %v4721_v23 = vpop.permute.xlu1 %4720 }
0x4576   :  { %4727 = vst.msk [vmem:[%s7047_s6] sm:$0xff] %vm4726_vm12, %v4721_v23 }
0x4577   :  { %4737 = vsyncpa [#allocation5], 1 }
0x4578   :  { %4738 = vsyncpa [#allocation7], 1 }
0x4579   :  { %4739 = vsyncpa [#allocation10], 1 }
0x457a   :  { %4740 = vsyncpa [#allocation13], 1 }
0x457b   :  { %4741 = vsyncpa [#allocation16], 1 }

</bundles_post_ra>
